<compile_context>
chip_gen: v5e
topology: v5e:2x2
jax: 0.10.0
libtpu: 0.0.40
codegen_flags: <defaults>
</compile_context>

<pallas_src>
import jax
import jax.numpy as jnp
from jax.experimental import pallas as pl
from jax.experimental.pallas import tpu as pltpu


def _leaky_relu(x, slope=0.01):  # PyTorch nn.LeakyReLU() default slope
    return jnp.where(x > 0, x, slope * x)


def _sigmoid(x):  # f32 only inside the kernel; saturates cleanly
    return 1.0 / (1.0 + jnp.exp(-x))


# -----------------------------------------------------------------------------
# Kernel
# -----------------------------------------------------------------------------
def asmnet_pmhc_kernel(
    # resident activations (compute dtype)
    x3_ref, x2_ref,
    # streamed per-hidden-tile weights / biases / per-channel scales
    w3a_ref, b3a_ref, s3a_ref, w3b_ref,
    w2a_ref, b2a_ref, s2a_ref, w2b_ref,
    # small resident tail parameters
    s3b_ref, b3b_ref, w3c_ref, b3c_ref,
    s2b_ref, b2b_ref, w2c_ref, b2c_ref,
    # outputs
    out3_ref, out2_ref,
    # VMEM scratch accumulators (persist across grid steps)
    acc3_ref, acc2_ref,
):
    h = pl.program_id(0)
    f32 = jnp.float32

    @pl.when(h == 0)
    def _init():
        acc3_ref[...] = jnp.zeros_like(acc3_ref)
        acc2_ref[...] = jnp.zeros_like(acc2_ref)

    def load_w(ref):
        w = ref[...]
        if jnp.issubdtype(w.dtype, jnp.integer):
            # int8 -> bf16 dequant on the VPU (int8 values are exact in bf16);
            # the per-output-channel scale is applied after the matmul.
            w = w.astype(jnp.bfloat16)
        return w

    w3a = load_w(w3a_ref)
    w3b = load_w(w3b_ref)
    w2a = load_w(w2a_ref)
    w2b = load_w(w2b_ref)

    # ---- mlp_three: layer-A column tile -> scale/bias -> LeakyReLU -> acc B ----
    hA3 = jnp.dot(x3_ref[...], w3a, preferred_element_type=f32)
    hA3 = _leaky_relu(hA3 * s3a_ref[...] + b3a_ref[...])
    acc3_ref[...] += jnp.dot(hA3.astype(w3b.dtype), w3b,
                             preferred_element_type=f32)

    # ---- mlp_two ----
    hA2 = jnp.dot(x2_ref[...], w2a, preferred_element_type=f32)
    hA2 = _leaky_relu(hA2 * s2a_ref[...] + b2a_ref[...])
    acc2_ref[...] += jnp.dot(hA2.astype(w2b.dtype), w2b,
                             preferred_element_type=f32)

    # ---- finalize on the last hidden tile ----
    @pl.when(h == pl.num_programs(0) - 1)
    def _finalize():
        hB3 = _leaky_relu(acc3_ref[...] * s3b_ref[...] + b3b_ref[...])
        logit3 = jnp.sum(hB3 * w3c_ref[...], axis=-1, keepdims=True) + b3c_ref[...]
        out3_ref[...] = _sigmoid(logit3)

        hB2 = _leaky_relu(acc2_ref[...] * s2b_ref[...] + b2b_ref[...])
        logit2 = jnp.sum(hB2 * w2c_ref[...], axis=-1, keepdims=True) + b2c_ref[...]
        out2_ref[...] = _sigmoid(logit2)


# -----------------------------------------------------------------------------
# Wrapper
# -----------------------------------------------------------------------------
def asmnet_pmhc_forward(x3_sm, x3_am, x2_sm, x2_am, folded_params):
    """folded_params = prepare_params(raw_params, weight_dtype, tile_h)."""
    B = x3_sm.shape[0]
    (w3a, b3a, s3a, w3b,
     w2a, b2a, s2a, w2b,
     s3b, b3b, w3c, b3c,
     s2b, b2b, w2c, b2c) = folded_params

    n_h, fan3, tile_h = w3a.shape          # [n_h, 768, tile_h]
    _, fan2, _ = w2a.shape                 # [n_h, 512, tile_h]
    hidden = n_h * tile_h                  # 1024
    d_b = w3b.shape[1]                     # 512
    assert w3b.shape[0] == hidden and w2b.shape[0] == hidden

    # MXU-native compute dtype: bf16 unless full-f32 validation weights.
    compute_dtype = jnp.float32 if w3a.dtype == jnp.float32 else jnp.bfloat16
    x3 = jnp.concatenate([x3_sm, x3_am], axis=1).astype(compute_dtype)  # [B, 768]
    x2 = jnp.concatenate([x2_sm, x2_am], axis=1).astype(compute_dtype)  # [B, 512]

    inputs = (x3, x2,
              w3a, b3a, s3a, w3b,
              w2a, b2a, s2a, w2b,
              s3b, b3b, w3c, b3c,
              s2b, b2b, w2c, b2c)

    res = lambda h: (0, 0)                 # resident (never re-fetched)
    col = lambda h: (0, h)                 # tile over hidden columns
    row = lambda h: (h, 0)                 # tile over hidden rows (layer-B K)
    amaj = lambda h: (h, 0, 0)             # hidden-tile-major layer-A weights

    in_specs = [
        pl.BlockSpec((B, fan3), res),                            # x3
        pl.BlockSpec((B, fan2), res),                            # x2
        pl.BlockSpec((pl.Squeezed(), fan3, tile_h), amaj),       # w3a tile
        pl.BlockSpec((1, tile_h), col),                          # b3a tile
        pl.BlockSpec((1, tile_h), col),                          # s3a tile
        pl.BlockSpec((tile_h, d_b), row),                        # w3b tile
        pl.BlockSpec((pl.Squeezed(), fan2, tile_h), amaj),       # w2a tile
        pl.BlockSpec((1, tile_h), col),                          # b2a tile
        pl.BlockSpec((1, tile_h), col),                          # s2a tile
        pl.BlockSpec((tile_h, d_b), row),                        # w2b tile
        pl.BlockSpec((1, d_b), res),                             # s3b
        pl.BlockSpec((1, d_b), res),                             # b3b
        pl.BlockSpec((1, d_b), res),                             # w3c
        pl.BlockSpec((1, 1), res),                               # b3c
        pl.BlockSpec((1, d_b), res),                             # s2b
        pl.BlockSpec((1, d_b), res),                             # b2b
        pl.BlockSpec((1, d_b), res),                             # w2c
        pl.BlockSpec((1, 1), res),                               # b2c
    ]
    out_specs = (pl.BlockSpec((B, 1), res), pl.BlockSpec((B, 1), res))

    # Advisory cost estimate (the kernel is memory bound; help XLA schedule
    # surrounding ops around it).
    flops = 2 * B * (fan3 * hidden + hidden * d_b + fan2 * hidden + hidden * d_b)
    bytes_accessed = sum(int(a.size) * a.dtype.itemsize for a in inputs) + 2 * B * 4
    cost = pl.CostEstimate(flops=flops, transcendentals=2 * B,
                           bytes_accessed=bytes_accessed)

    grid_spec = pltpu.PrefetchScalarGridSpec(
        num_scalar_prefetch=0,
        grid=(n_h,),
        in_specs=in_specs,
        out_specs=out_specs,
        scratch_shapes=[
            pltpu.VMEM((B, d_b), jnp.float32),   # acc3
            pltpu.VMEM((B, d_b), jnp.float32),   # acc2
        ],
    )

    out3, out2 = pl.pallas_call(
        asmnet_pmhc_kernel,
        out_shape=(jax.ShapeDtypeStruct((B, 1), jnp.float32),
                   jax.ShapeDtypeStruct((B, 1), jnp.float32)),
        grid_spec=grid_spec,
        compiler_params=pltpu.CompilerParams(
            dimension_semantics=("arbitrary",),        # hidden axis is a reduction
            vmem_limit_bytes=32 * 1024 * 1024,         # fits v5e/v6e/v7x
        ),
        cost_estimate=cost,
    )(*inputs)
    return out3, out2


# -----------------------------------------------------------------------------
# Parameters
# -----------------------------------------------------------------------------
def init_params(key):
    """PyTorch-style uniform(-1/sqrt(fan_in), 1/sqrt(fan_in)) init (raw module params)."""
    keys = iter(jax.random.split(key, 32))

    def lin(shape, fan_in):
        s = 1.0 / jnp.sqrt(float(fan_in))
        return jax.random.uniform(next(keys), shape, jnp.float32, -s, s)

    # 5 AttentionWithResidual blocks (algebraically dead in the forward pass:
    # softmax over a size-1 axis is identically 1.0).
    aw1 = lin((5, 256, 128), 256)
    ab1 = lin((5, 128), 256)
    aw2 = lin((5, 128), 128)          # Linear(128, 1) weight stored as a vector
    ab2 = lin((5, 1), 128)
    # mlp_three: [768, 1024, 512, 1]
    w3a, b3a = lin((768, 1024), 768), lin((1, 1024), 768)
    w3b, b3b = lin((1024, 512), 1024), lin((1, 512), 1024)
    w3c, b3c = lin((1, 512), 512), lin((1, 1), 512)
    # mlp_two: [512, 1024, 512, 1]
    w2a, b2a = lin((512, 1024), 512), lin((1, 1024), 512)
    w2b, b2b = lin((1024, 512), 1024), lin((1, 512), 1024)
    w2c, b2c = lin((1, 512), 512), lin((1, 1), 512)

    return (aw1, ab1, aw2, ab2,
            w3a, b3a, w3b, b3b, w3c, b3c,
            w2a, b2a, w2b, b2b, w2c, b2c)


def prepare_params(params, weight_dtype=jnp.int8, tile_h=512):
    """One-time host-side fold / quantize / re-layout.

    * softmax over a size-1 axis == 1.0 -> every AttentionWithResidual block is
      exactly `2 * x`; the 2x and the combined_* concat ordering are folded into
      the layer-A weights, row-permuted so the kernel contracts against
      concat([sm, am], axis=1) directly.
    * weight_dtype in {int8, bfloat16, float32}.  int8 uses per-output-channel
      f32 scales (applied post-matmul in-kernel); bf16/f32 get unit scales.
    * layer-A weights stored hidden-tile-major [n_h, fan_in, tile_h] so each
      grid step's weight DMA is contiguous in HBM.
    """
    (aw1, ab1, aw2, ab2,
     w3a, b3a, w3b, b3b, w3c, b3c,
     w2a, b2a, w2b, b2b, w2c, b2c) = params
    del aw1, ab1, aw2, ab2  # dead in the forward pass (size-1 softmax == 1)

    w3a2 = 2.0 * w3a
    # combined_three columns = [2*sm0, 2*am0, 2*sm1, 2*am1, 2*sm2, 2*am2]
    # kernel x3 columns      = [sm0, sm1, sm2, am0, am1, am2]
    w3a_cat = jnp.concatenate(
        [w3a2[0:128], w3a2[256:384], w3a2[512:640],      # sm rows
         w3a2[128:256], w3a2[384:512], w3a2[640:768]],   # am rows
        axis=0)
    w2a2 = 2.0 * w2a
    w2a_cat = jnp.concatenate(
        [w2a2[0:128], w2a2[256:384],                     # sm rows
         w2a2[128:256], w2a2[384:512]],                  # am rows
        axis=0)

    def quant_or_cast(w):
        if weight_dtype == jnp.int8:
            scale = jnp.max(jnp.abs(w), axis=0, keepdims=True) / 127.0
            scale = jnp.maximum(scale, 1e-12).astype(jnp.float32)
            q = jnp.clip(jnp.round(w / scale), -127, 127).astype(jnp.int8)
            return q, scale
        ones = jnp.ones((1, w.shape[1]), jnp.float32)
        return w.astype(weight_dtype), ones

    q3a, s3a = quant_or_cast(w3a_cat)
    q3b, s3b = quant_or_cast(w3b)
    q2a, s2a = quant_or_cast(w2a_cat)
    q2b, s2b = quant_or_cast(w2b)

    hidden = q3a.shape[1]
    assert hidden % tile_h == 0
    n_h = hidden // tile_h

    def tile_major(q):   # [fan_in, hidden] -> [n_h, fan_in, tile_h] (contiguous tiles)
        fan_in = q.shape[0]
        return q.reshape(fan_in, n_h, tile_h).transpose(1, 0, 2)

    return (tile_major(q3a), b3a, s3a, q3b,
            tile_major(q2a), b2a, s2a, q2b,
            s3b, b3b, w3c, b3c,
            s2b, b2b, w2c, b2c)


# -----------------------------------------------------------------------------
# Pure-JAX reference (faithful to the PyTorch forward, full attention path, f32)
# -----------------------------------------------------------------------------
def reference_forward(x3_sm, x3_am, x2_sm, x2_am, params):
    (aw1, ab1, aw2, ab2,
     w3a, b3a, w3b, b3b, w3c, b3c,
     w2a, b2a, w2b, b2b, w2c, b2c) = params

    def attn(x, i):
        h = jnp.maximum(x @ aw1[i] + ab1[i], 0.0)
        scores = jnp.sum(h * aw2[i], axis=-1, keepdims=True) + ab2[i]
        weights = jax.nn.softmax(scores, axis=1)   # size-1 axis -> all ones
        return weights * x + x

    x3p = attn(jnp.concatenate([x3_sm[:, 0:128], x3_am[:, 0:128]], 1), 0)
    x3c = attn(jnp.concatenate([x3_sm[:, 128:256], x3_am[:, 128:256]], 1), 1)
    x3r = attn(jnp.concatenate([x3_sm[:, 256:384], x3_am[:, 256:384]], 1), 2)
    x2p = attn(jnp.concatenate([x2_sm[:, 0:128], x2_am[:, 0:128]], 1), 3)
    x2r = attn(jnp.concatenate([x2_sm[:, 128:256], x2_am[:, 128:256]], 1), 4)

    c3 = jnp.concatenate([x3p, x3c, x3r], 1)
    c2 = jnp.concatenate([x2p, x2r], 1)

    def mlp(x, wa, ba, wb, bb, wc, bc):
        # TODO(synk): nn.Dropout(0.25) omitted -- eval-mode (identity) semantics.
        h = _leaky_relu(x @ wa + ba)
        h = _leaky_relu(h @ wb + bb)
        return jnp.sum(h * wc, axis=-1, keepdims=True) + bc

    p3 = jax.nn.sigmoid(mlp(c3, w3a, b3a, w3b, b3b, w3c, b3c))
    p2 = jax.nn.sigmoid(mlp(c2, w2a, b2a, w2b, b2b, w2c, b2c))
    return p3, p2


# -----------------------------------------------------------------------------
# Test
# -----------------------------------------------------------------------------
if __name__ == "__main__":
    B = 8
    key = jax.random.PRNGKey(0)
    k_in, k_p = jax.random.split(key)
    k1, k2, k3, k4 = jax.random.split(k_in, 4)

    x_fea_three_smnet = jax.random.normal(k1, (B, 384), jnp.float32)
    x_fea_three_amnet = jax.random.normal(k2, (B, 384), jnp.float32)
    x_fea_two_smnet = jax.random.normal(k3, (B, 256), jnp.float32)
    x_fea_two_amnet = jax.random.normal(k4, (B, 256), jnp.float32)

    params = init_params(k_p)

    ref_three, ref_two = reference_forward(
        x_fea_three_smnet, x_fea_three_amnet,
        x_fea_two_smnet, x_fea_two_amnet, params)

    fwd = jax.jit(asmnet_pmhc_forward)

    # 1) f32 weight storage: tight match against the f32 reference.
    folded_f32 = prepare_params(params, weight_dtype=jnp.float32)
    p3, p2 = fwd(x_fea_three_smnet, x_fea_three_amnet,
                 x_fea_two_smnet, x_fea_two_amnet, folded_f32)
    jax.block_until_ready((p3, p2))
    assert p3.shape == (B, 1) and p2.shape == (B, 1)
    assert jnp.allclose(p3, ref_three, atol=1e-4, rtol=1e-4)
    assert jnp.allclose(p2, ref_two, atol=1e-4, rtol=1e-4)

    # 2) bf16 weight + activation storage: looser tolerance.
    folded_bf16 = prepare_params(params, weight_dtype=jnp.bfloat16)
    p3b, p2b = fwd(x_fea_three_smnet, x_fea_three_amnet,
                   x_fea_two_smnet, x_fea_two_amnet, folded_bf16)
    jax.block_until_ready((p3b, p2b))
    assert jnp.allclose(p3b, ref_three, atol=2e-2, rtol=2e-2)
    assert jnp.allclose(p2b, ref_two, atol=2e-2, rtol=2e-2)

    # 3) int8 weight storage (default perf config): per-channel scales, loosest.
    folded_i8 = prepare_params(params)  # weight_dtype=int8, tile_h=512
    p3q, p2q = fwd(x_fea_three_smnet, x_fea_three_amnet,
                   x_fea_two_smnet, x_fea_two_amnet, folded_i8)
    jax.block_until_ready((p3q, p2q))
    assert jnp.allclose(p3q, ref_three, atol=5e-2, rtol=5e-2)
    assert jnp.allclose(p2q, ref_two, atol=5e-2, rtol=5e-2)

    print("KERNEL_OK")
</pallas_src>

<mosaic_0001>
module attributes {stable_mosaic.version = 11 : i64} {
  func.func @asmnet_pmhc_kernel(%arg0: i32, %arg1: memref<8x768xf32, #tpu.memory_space<vmem>>, %arg2: memref<8x512xf32, #tpu.memory_space<vmem>>, %arg3: memref<1x768x512xf32, #tpu.memory_space<vmem>>, %arg4: memref<1x512xf32, #tpu.memory_space<vmem>>, %arg5: memref<1x512xf32, #tpu.memory_space<vmem>>, %arg6: memref<512x512xf32, #tpu.memory_space<vmem>>, %arg7: memref<1x512x512xf32, #tpu.memory_space<vmem>>, %arg8: memref<1x512xf32, #tpu.memory_space<vmem>>, %arg9: memref<1x512xf32, #tpu.memory_space<vmem>>, %arg10: memref<512x512xf32, #tpu.memory_space<vmem>>, %arg11: memref<1x512xf32, #tpu.memory_space<vmem>>, %arg12: memref<1x512xf32, #tpu.memory_space<vmem>>, %arg13: memref<1x512xf32, #tpu.memory_space<vmem>>, %arg14: memref<1x1xf32, #tpu.memory_space<vmem>>, %arg15: memref<1x512xf32, #tpu.memory_space<vmem>>, %arg16: memref<1x512xf32, #tpu.memory_space<vmem>>, %arg17: memref<1x512xf32, #tpu.memory_space<vmem>>, %arg18: memref<1x1xf32, #tpu.memory_space<vmem>>, %arg19: memref<8x1xf32, #tpu.memory_space<vmem>>, %arg20: memref<8x1xf32, #tpu.memory_space<vmem>>, %arg21: memref<8x512xf32, #tpu.memory_space<vmem>>, %arg22: memref<8x512xf32, #tpu.memory_space<vmem>>) attributes {dimension_semantics = [#tpu.dimension_semantics<arbitrary>], iteration_bounds = array<i64: 2>, scalar_prefetch = 0 : i64, scratch_operands = 2 : i64, tpu.core_type = #tpu.core_type<tc>, window_params = [{pipeline_mode = #tpu.pipeline_mode<synchronous>, transform_indices = @transform_0, window_bounds = array<i64: 8, 768>}, {pipeline_mode = #tpu.pipeline_mode<synchronous>, transform_indices = @transform_1, window_bounds = array<i64: 8, 512>}, {transform_indices = @transform_2, window_bounds = array<i64: 1, 768, 512>}, {transform_indices = @transform_3, window_bounds = array<i64: 1, 512>}, {transform_indices = @transform_4, window_bounds = array<i64: 1, 512>}, {transform_indices = @transform_5, window_bounds = array<i64: 512, 512>}, {transform_indices = @transform_6, window_bounds = array<i64: 1, 512, 512>}, {transform_indices = @transform_7, window_bounds = array<i64: 1, 512>}, {transform_indices = @transform_8, window_bounds = array<i64: 1, 512>}, {transform_indices = @transform_9, window_bounds = array<i64: 512, 512>}, {pipeline_mode = #tpu.pipeline_mode<synchronous>, transform_indices = @transform_10, window_bounds = array<i64: 1, 512>}, {pipeline_mode = #tpu.pipeline_mode<synchronous>, transform_indices = @transform_11, window_bounds = array<i64: 1, 512>}, {pipeline_mode = #tpu.pipeline_mode<synchronous>, transform_indices = @transform_12, window_bounds = array<i64: 1, 512>}, {pipeline_mode = #tpu.pipeline_mode<synchronous>, transform_indices = @transform_13, window_bounds = array<i64: 1, 1>}, {pipeline_mode = #tpu.pipeline_mode<synchronous>, transform_indices = @transform_14, window_bounds = array<i64: 1, 512>}, {pipeline_mode = #tpu.pipeline_mode<synchronous>, transform_indices = @transform_15, window_bounds = array<i64: 1, 512>}, {pipeline_mode = #tpu.pipeline_mode<synchronous>, transform_indices = @transform_16, window_bounds = array<i64: 1, 512>}, {pipeline_mode = #tpu.pipeline_mode<synchronous>, transform_indices = @transform_17, window_bounds = array<i64: 1, 1>}, {pipeline_mode = #tpu.pipeline_mode<synchronous>, transform_indices = @transform_18, window_bounds = array<i64: 8, 1>}, {pipeline_mode = #tpu.pipeline_mode<synchronous>, transform_indices = @transform_19, window_bounds = array<i64: 8, 1>}]} {
    %c0_i32 = arith.constant 0 : i32
    %0 = arith.cmpi eq, %arg0, %c0_i32 : i32
    %1 = arith.extui %0 : i1 to i32
    %c0_i32_0 = arith.constant 0 : i32
    %2 = arith.cmpi ne, %1, %c0_i32_0 : i32
    scf.if %2 {
      %cst_38 = arith.constant 0.000000e+00 : f32
      %46 = vector.broadcast %cst_38 : f32 to vector<8x512xf32>
      %c0_39 = arith.constant 0 : index
      %c0_40 = arith.constant 0 : index
      %47 = vector.load %arg21[%c0_39, %c0_40] : memref<8x512xf32, #tpu.memory_space<vmem>>, vector<8x512xf32>
      tpu.vector_store %arg21[%c0_39, %c0_40], %46 {strides = array<i32>} : memref<8x512xf32, #tpu.memory_space<vmem>>, vector<8x512xf32>,
      %cst_41 = arith.constant 0.000000e+00 : f32
      %48 = vector.broadcast %cst_41 : f32 to vector<8x512xf32>
      %c0_42 = arith.constant 0 : index
      %c0_43 = arith.constant 0 : index
      %49 = vector.load %arg22[%c0_42, %c0_43] : memref<8x512xf32, #tpu.memory_space<vmem>>, vector<8x512xf32>
      tpu.vector_store %arg22[%c0_42, %c0_43], %48 {strides = array<i32>} : memref<8x512xf32, #tpu.memory_space<vmem>>, vector<8x512xf32>,
    } else {
    }
    %c0 = arith.constant 0 : index
    %c0_1 = arith.constant 0 : index
    %c0_2 = arith.constant 0 : index
    %3 = vector.load %arg3[%c0, %c0_1, %c0_2] : memref<1x768x512xf32, #tpu.memory_space<vmem>>, vector<1x768x512xf32>
    %4 = vector.shape_cast %3 : vector<1x768x512xf32> to vector<768x512xf32>
    %c0_3 = arith.constant 0 : index
    %c0_4 = arith.constant 0 : index
    %5 = vector.load %arg6[%c0_3, %c0_4] : memref<512x512xf32, #tpu.memory_space<vmem>>, vector<512x512xf32>
    %c0_5 = arith.constant 0 : index
    %c0_6 = arith.constant 0 : index
    %c0_7 = arith.constant 0 : index
    %6 = vector.load %arg7[%c0_5, %c0_6, %c0_7] : memref<1x512x512xf32, #tpu.memory_space<vmem>>, vector<1x512x512xf32>
    %7 = vector.shape_cast %6 : vector<1x512x512xf32> to vector<512x512xf32>
    %c0_8 = arith.constant 0 : index
    %c0_9 = arith.constant 0 : index
    %8 = vector.load %arg10[%c0_8, %c0_9] : memref<512x512xf32, #tpu.memory_space<vmem>>, vector<512x512xf32>
    %c0_10 = arith.constant 0 : index
    %c0_11 = arith.constant 0 : index
    %9 = vector.load %arg1[%c0_10, %c0_11] : memref<8x768xf32, #tpu.memory_space<vmem>>, vector<8x768xf32>
    %cst = arith.constant dense<0.000000e+00> : vector<8x512xf32>
    %10 = tpu.matmul %9, %4, %cst {dimension_numbers = #tpu.dot_dimension_numbers<[1], [0], [0], [1], [0, 0, 1, 1], [], []>} : vector<8x768xf32>, vector<768x512xf32>, vector<8x512xf32> -> vector<8x512xf32>
    %c0_12 = arith.constant 0 : index
    %c0_13 = arith.constant 0 : index
    %11 = vector.load %arg5[%c0_12, %c0_13] : memref<1x512xf32, #tpu.memory_space<vmem>>, vector<1x512xf32>
    %12 = vector.broadcast %11 : vector<1x512xf32> to vector<8x512xf32>
    %13 = arith.mulf %10, %12 : vector<8x512xf32>
    %c0_14 = arith.constant 0 : index
    %c0_15 = arith.constant 0 : index
    %14 = vector.load %arg4[%c0_14, %c0_15] : memref<1x512xf32, #tpu.memory_space<vmem>>, vector<1x512xf32>
    %15 = vector.broadcast %14 : vector<1x512xf32> to vector<8x512xf32>
    %16 = arith.addf %13, %15 : vector<8x512xf32>
    %cst_16 = arith.constant 0.000000e+00 : f32
    %17 = vector.broadcast %cst_16 : f32 to vector<8x512xf32>
    %18 = arith.cmpf ogt, %16, %17 : vector<8x512xf32>
    %cst_17 = arith.constant 0.00999999977 : f32
    %19 = vector.broadcast %cst_17 : f32 to vector<8x512xf32>
    %20 = arith.mulf %19, %16 : vector<8x512xf32>
    %21 = arith.select %18, %16, %20 : vector<8x512xi1>, vector<8x512xf32>
    %c0_18 = arith.constant 0 : index
    %c0_19 = arith.constant 0 : index
    %22 = vector.load %arg21[%c0_18, %c0_19] : memref<8x512xf32, #tpu.memory_space<vmem>>, vector<8x512xf32>
    %cst_20 = arith.constant dense<0.000000e+00> : vector<8x512xf32>
    %23 = tpu.matmul %21, %5, %cst_20 {dimension_numbers = #tpu.dot_dimension_numbers<[1], [0], [0], [1], [0, 0, 1, 1], [], []>} : vector<8x512xf32>, vector<512x512xf32>, vector<8x512xf32> -> vector<8x512xf32>
    %24 = arith.addf %22, %23 : vector<8x512xf32>
    %c0_21 = arith.constant 0 : index
    %c0_22 = arith.constant 0 : index
    %25 = vector.load %arg21[%c0_21, %c0_22] : memref<8x512xf32, #tpu.memory_space<vmem>>, vector<8x512xf32>
    tpu.vector_store %arg21[%c0_21, %c0_22], %24 {strides = array<i32>} : memref<8x512xf32, #tpu.memory_space<vmem>>, vector<8x512xf32>,
    %c0_23 = arith.constant 0 : index
    %c0_24 = arith.constant 0 : index
    %26 = vector.load %arg2[%c0_23, %c0_24] : memref<8x512xf32, #tpu.memory_space<vmem>>, vector<8x512xf32>
    %cst_25 = arith.constant dense<0.000000e+00> : vector<8x512xf32>
    %27 = tpu.matmul %26, %7, %cst_25 {dimension_numbers = #tpu.dot_dimension_numbers<[1], [0], [0], [1], [0, 0, 1, 1], [], []>} : vector<8x512xf32>, vector<512x512xf32>, vector<8x512xf32> -> vector<8x512xf32>
    %c0_26 = arith.constant 0 : index
    %c0_27 = arith.constant 0 : index
    %28 = vector.load %arg9[%c0_26, %c0_27] : memref<1x512xf32, #tpu.memory_space<vmem>>, vector<1x512xf32>
    %29 = vector.broadcast %28 : vector<1x512xf32> to vector<8x512xf32>
    %30 = arith.mulf %27, %29 : vector<8x512xf32>
    %c0_28 = arith.constant 0 : index
    %c0_29 = arith.constant 0 : index
    %31 = vector.load %arg8[%c0_28, %c0_29] : memref<1x512xf32, #tpu.memory_space<vmem>>, vector<1x512xf32>
    %32 = vector.broadcast %31 : vector<1x512xf32> to vector<8x512xf32>
    %33 = arith.addf %30, %32 : vector<8x512xf32>
    %cst_30 = arith.constant 0.000000e+00 : f32
    %34 = vector.broadcast %cst_30 : f32 to vector<8x512xf32>
    %35 = arith.cmpf ogt, %33, %34 : vector<8x512xf32>
    %cst_31 = arith.constant 0.00999999977 : f32
    %36 = vector.broadcast %cst_31 : f32 to vector<8x512xf32>
    %37 = arith.mulf %36, %33 : vector<8x512xf32>
    %38 = arith.select %35, %33, %37 : vector<8x512xi1>, vector<8x512xf32>
    %c0_32 = arith.constant 0 : index
    %c0_33 = arith.constant 0 : index
    %39 = vector.load %arg22[%c0_32, %c0_33] : memref<8x512xf32, #tpu.memory_space<vmem>>, vector<8x512xf32>
    %cst_34 = arith.constant dense<0.000000e+00> : vector<8x512xf32>
    %40 = tpu.matmul %38, %8, %cst_34 {dimension_numbers = #tpu.dot_dimension_numbers<[1], [0], [0], [1], [0, 0, 1, 1], [], []>} : vector<8x512xf32>, vector<512x512xf32>, vector<8x512xf32> -> vector<8x512xf32>
    %41 = arith.addf %39, %40 : vector<8x512xf32>
    %c0_35 = arith.constant 0 : index
    %c0_36 = arith.constant 0 : index
    %42 = vector.load %arg22[%c0_35, %c0_36] : memref<8x512xf32, #tpu.memory_space<vmem>>, vector<8x512xf32>
    tpu.vector_store %arg22[%c0_35, %c0_36], %41 {strides = array<i32>} : memref<8x512xf32, #tpu.memory_space<vmem>>, vector<8x512xf32>,
    %c1_i32 = arith.constant 1 : i32
    %43 = arith.cmpi eq, %arg0, %c1_i32 : i32
    %44 = arith.extui %43 : i1 to i32
    %c0_i32_37 = arith.constant 0 : i32
    %45 = arith.cmpi ne, %44, %c0_i32_37 : i32
    scf.if %45 {
      %c0_38 = arith.constant 0 : index
      %c0_39 = arith.constant 0 : index
      %46 = vector.load %arg21[%c0_38, %c0_39] : memref<8x512xf32, #tpu.memory_space<vmem>>, vector<8x512xf32>
      %c0_40 = arith.constant 0 : index
      %c0_41 = arith.constant 0 : index
      %47 = vector.load %arg11[%c0_40, %c0_41] : memref<1x512xf32, #tpu.memory_space<vmem>>, vector<1x512xf32>
      %48 = vector.broadcast %47 : vector<1x512xf32> to vector<8x512xf32>
      %49 = arith.mulf %46, %48 : vector<8x512xf32>
      %c0_42 = arith.constant 0 : index
      %c0_43 = arith.constant 0 : index
      %50 = vector.load %arg12[%c0_42, %c0_43] : memref<1x512xf32, #tpu.memory_space<vmem>>, vector<1x512xf32>
      %51 = vector.broadcast %50 : vector<1x512xf32> to vector<8x512xf32>
      %52 = arith.addf %49, %51 : vector<8x512xf32>
      %cst_44 = arith.constant 0.000000e+00 : f32
      %53 = vector.broadcast %cst_44 : f32 to vector<8x512xf32>
      %54 = arith.cmpf ogt, %52, %53 : vector<8x512xf32>
      %cst_45 = arith.constant 0.00999999977 : f32
      %55 = vector.broadcast %cst_45 : f32 to vector<8x512xf32>
      %56 = arith.mulf %55, %52 : vector<8x512xf32>
      %57 = arith.select %54, %52, %56 : vector<8x512xi1>, vector<8x512xf32>
      %c0_46 = arith.constant 0 : index
      %c0_47 = arith.constant 0 : index
      %58 = vector.load %arg13[%c0_46, %c0_47] : memref<1x512xf32, #tpu.memory_space<vmem>>, vector<1x512xf32>
      %59 = vector.broadcast %58 : vector<1x512xf32> to vector<8x512xf32>
      %60 = arith.mulf %57, %59 : vector<8x512xf32>
      %cst_48 = arith.constant dense<0.000000e+00> : vector<8xf32>
      %61 = vector.multi_reduction <add>, %60, %cst_48 [1] : vector<8x512xf32> to vector<8xf32>
      %62 = vector.shape_cast %61 : vector<8xf32> to vector<8x1xf32>
      %c0_49 = arith.constant 0 : index
      %c0_50 = arith.constant 0 : index
      %63 = vector.load %arg14[%c0_49, %c0_50] : memref<1x1xf32, #tpu.memory_space<vmem>>, vector<1x1xf32>
      %64 = vector.broadcast %63 : vector<1x1xf32> to vector<8x1xf32>
      %65 = arith.addf %62, %64 : vector<8x1xf32>
      %cst_51 = arith.constant 0.000000e+00 : f32
      %66 = vector.broadcast %cst_51 : f32 to vector<8x1xf32>
      %67 = arith.subf %66, %65 : vector<8x1xf32>
      %68 = math.exp %67 : vector<8x1xf32>
      %cst_52 = arith.constant 1.000000e+00 : f32
      %69 = vector.broadcast %cst_52 : f32 to vector<8x1xf32>
      %70 = arith.addf %69, %68 : vector<8x1xf32>
      %cst_53 = arith.constant 1.000000e+00 : f32
      %71 = vector.broadcast %cst_53 : f32 to vector<8x1xf32>
      %72 = arith.divf %71, %70 : vector<8x1xf32>
      %c0_54 = arith.constant 0 : index
      %c0_55 = arith.constant 0 : index
      %73 = vector.load %arg19[%c0_54, %c0_55] : memref<8x1xf32, #tpu.memory_space<vmem>>, vector<8x1xf32>
      tpu.vector_store %arg19[%c0_54, %c0_55], %72 {strides = array<i32>} : memref<8x1xf32, #tpu.memory_space<vmem>>, vector<8x1xf32>,
      %c0_56 = arith.constant 0 : index
      %c0_57 = arith.constant 0 : index
      %74 = vector.load %arg22[%c0_56, %c0_57] : memref<8x512xf32, #tpu.memory_space<vmem>>, vector<8x512xf32>
      %c0_58 = arith.constant 0 : index
      %c0_59 = arith.constant 0 : index
      %75 = vector.load %arg15[%c0_58, %c0_59] : memref<1x512xf32, #tpu.memory_space<vmem>>, vector<1x512xf32>
      %76 = vector.broadcast %75 : vector<1x512xf32> to vector<8x512xf32>
      %77 = arith.mulf %74, %76 : vector<8x512xf32>
      %c0_60 = arith.constant 0 : index
      %c0_61 = arith.constant 0 : index
      %78 = vector.load %arg16[%c0_60, %c0_61] : memref<1x512xf32, #tpu.memory_space<vmem>>, vector<1x512xf32>
      %79 = vector.broadcast %78 : vector<1x512xf32> to vector<8x512xf32>
      %80 = arith.addf %77, %79 : vector<8x512xf32>
      %cst_62 = arith.constant 0.000000e+00 : f32
      %81 = vector.broadcast %cst_62 : f32 to vector<8x512xf32>
      %82 = arith.cmpf ogt, %80, %81 : vector<8x512xf32>
      %cst_63 = arith.constant 0.00999999977 : f32
      %83 = vector.broadcast %cst_63 : f32 to vector<8x512xf32>
      %84 = arith.mulf %83, %80 : vector<8x512xf32>
      %85 = arith.select %82, %80, %84 : vector<8x512xi1>, vector<8x512xf32>
      %c0_64 = arith.constant 0 : index
      %c0_65 = arith.constant 0 : index
      %86 = vector.load %arg17[%c0_64, %c0_65] : memref<1x512xf32, #tpu.memory_space<vmem>>, vector<1x512xf32>
      %87 = vector.broadcast %86 : vector<1x512xf32> to vector<8x512xf32>
      %88 = arith.mulf %85, %87 : vector<8x512xf32>
      %cst_66 = arith.constant dense<0.000000e+00> : vector<8xf32>
      %89 = vector.multi_reduction <add>, %88, %cst_66 [1] : vector<8x512xf32> to vector<8xf32>
      %90 = vector.shape_cast %89 : vector<8xf32> to vector<8x1xf32>
      %c0_67 = arith.constant 0 : index
      %c0_68 = arith.constant 0 : index
      %91 = vector.load %arg18[%c0_67, %c0_68] : memref<1x1xf32, #tpu.memory_space<vmem>>, vector<1x1xf32>
      %92 = vector.broadcast %91 : vector<1x1xf32> to vector<8x1xf32>
      %93 = arith.addf %90, %92 : vector<8x1xf32>
      %cst_69 = arith.constant 0.000000e+00 : f32
      %94 = vector.broadcast %cst_69 : f32 to vector<8x1xf32>
      %95 = arith.subf %94, %93 : vector<8x1xf32>
      %96 = math.exp %95 : vector<8x1xf32>
      %cst_70 = arith.constant 1.000000e+00 : f32
      %97 = vector.broadcast %cst_70 : f32 to vector<8x1xf32>
      %98 = arith.addf %97, %96 : vector<8x1xf32>
      %cst_71 = arith.constant 1.000000e+00 : f32
      %99 = vector.broadcast %cst_71 : f32 to vector<8x1xf32>
      %100 = arith.divf %99, %98 : vector<8x1xf32>
      %c0_72 = arith.constant 0 : index
      %c0_73 = arith.constant 0 : index
      %101 = vector.load %arg20[%c0_72, %c0_73] : memref<8x1xf32, #tpu.memory_space<vmem>>, vector<8x1xf32>
      tpu.vector_store %arg20[%c0_72, %c0_73], %100 {strides = array<i32>} : memref<8x1xf32, #tpu.memory_space<vmem>>, vector<8x1xf32>,
    } else {
    }
    return
  }
  func.func @transform_0(%arg0: i32) -> (i32, i32) {
    %c0_i32 = arith.constant 0 : i32
    %c0_i32_0 = arith.constant 0 : i32
    %c0_i32_1 = arith.constant 0 : i32
    return %c0_i32, %c0_i32_0 : i32, i32
  }
  func.func @transform_1(%arg0: i32) -> (i32, i32) {
    %c0_i32 = arith.constant 0 : i32
    %c0_i32_0 = arith.constant 0 : i32
    %c0_i32_1 = arith.constant 0 : i32
    return %c0_i32, %c0_i32_0 : i32, i32
  }
  func.func @transform_2(%arg0: i32) -> (i32, i32, i32) {
    %c0_i32 = arith.constant 0 : i32
    %c0_i32_0 = arith.constant 0 : i32
    %c0_i32_1 = arith.constant 0 : i32
    return %arg0, %c0_i32, %c0_i32_0 : i32, i32, i32
  }
  func.func @transform_3(%arg0: i32) -> (i32, i32) {
    %c0_i32 = arith.constant 0 : i32
    %c0_i32_0 = arith.constant 0 : i32
    return %c0_i32, %arg0 : i32, i32
  }
  func.func @transform_4(%arg0: i32) -> (i32, i32) {
    %c0_i32 = arith.constant 0 : i32
    %c0_i32_0 = arith.constant 0 : i32
    return %c0_i32, %arg0 : i32, i32
  }
  func.func @transform_5(%arg0: i32) -> (i32, i32) {
    %c0_i32 = arith.constant 0 : i32
    %c0_i32_0 = arith.constant 0 : i32
    return %arg0, %c0_i32 : i32, i32
  }
  func.func @transform_6(%arg0: i32) -> (i32, i32, i32) {
    %c0_i32 = arith.constant 0 : i32
    %c0_i32_0 = arith.constant 0 : i32
    %c0_i32_1 = arith.constant 0 : i32
    return %arg0, %c0_i32, %c0_i32_0 : i32, i32, i32
  }
  func.func @transform_7(%arg0: i32) -> (i32, i32) {
    %c0_i32 = arith.constant 0 : i32
    %c0_i32_0 = arith.constant 0 : i32
    return %c0_i32, %arg0 : i32, i32
  }
  func.func @transform_8(%arg0: i32) -> (i32, i32) {
    %c0_i32 = arith.constant 0 : i32
    %c0_i32_0 = arith.constant 0 : i32
    return %c0_i32, %arg0 : i32, i32
  }
  func.func @transform_9(%arg0: i32) -> (i32, i32) {
    %c0_i32 = arith.constant 0 : i32
    %c0_i32_0 = arith.constant 0 : i32
    return %arg0, %c0_i32 : i32, i32
  }
  func.func @transform_10(%arg0: i32) -> (i32, i32) {
    %c0_i32 = arith.constant 0 : i32
    %c0_i32_0 = arith.constant 0 : i32
    %c0_i32_1 = arith.constant 0 : i32
    return %c0_i32, %c0_i32_0 : i32, i32
  }
  func.func @transform_11(%arg0: i32) -> (i32, i32) {
    %c0_i32 = arith.constant 0 : i32
    %c0_i32_0 = arith.constant 0 : i32
    %c0_i32_1 = arith.constant 0 : i32
    return %c0_i32, %c0_i32_0 : i32, i32
  }
  func.func @transform_12(%arg0: i32) -> (i32, i32) {
    %c0_i32 = arith.constant 0 : i32
    %c0_i32_0 = arith.constant 0 : i32
    %c0_i32_1 = arith.constant 0 : i32
    return %c0_i32, %c0_i32_0 : i32, i32
  }
  func.func @transform_13(%arg0: i32) -> (i32, i32) {
    %c0_i32 = arith.constant 0 : i32
    %c0_i32_0 = arith.constant 0 : i32
    %c0_i32_1 = arith.constant 0 : i32
    return %c0_i32, %c0_i32_0 : i32, i32
  }
  func.func @transform_14(%arg0: i32) -> (i32, i32) {
    %c0_i32 = arith.constant 0 : i32
    %c0_i32_0 = arith.constant 0 : i32
    %c0_i32_1 = arith.constant 0 : i32
    return %c0_i32, %c0_i32_0 : i32, i32
  }
  func.func @transform_15(%arg0: i32) -> (i32, i32) {
    %c0_i32 = arith.constant 0 : i32
    %c0_i32_0 = arith.constant 0 : i32
    %c0_i32_1 = arith.constant 0 : i32
    return %c0_i32, %c0_i32_0 : i32, i32
  }
  func.func @transform_16(%arg0: i32) -> (i32, i32) {
    %c0_i32 = arith.constant 0 : i32
    %c0_i32_0 = arith.constant 0 : i32
    %c0_i32_1 = arith.constant 0 : i32
    return %c0_i32, %c0_i32_0 : i32, i32
  }
  func.func @transform_17(%arg0: i32) -> (i32, i32) {
    %c0_i32 = arith.constant 0 : i32
    %c0_i32_0 = arith.constant 0 : i32
    %c0_i32_1 = arith.constant 0 : i32
    return %c0_i32, %c0_i32_0 : i32, i32
  }
  func.func @transform_18(%arg0: i32) -> (i32, i32) {
    %c0_i32 = arith.constant 0 : i32
    %c0_i32_0 = arith.constant 0 : i32
    %c0_i32_1 = arith.constant 0 : i32
    return %c0_i32, %c0_i32_0 : i32, i32
  }
  func.func @transform_19(%arg0: i32) -> (i32, i32) {
    %c0_i32 = arith.constant 0 : i32
    %c0_i32_0 = arith.constant 0 : i32
    %c0_i32_1 = arith.constant 0 : i32
    return %c0_i32, %c0_i32_0 : i32, i32
  }
}

</mosaic_0001>

<bundles_post_ra>
// kernel: asmnet_pmhc_forward.1
= control target key start
LH: loop header
LB: loop body
LE: loop exit
PB: predicated region body
PF: predicated region fallthrough
CT: control target
= control target key end

     0   :  { %s6624_s0 = inlined_call_operand.vmem [shape: f32[8,768], index: 0, kind: input, shape index: {}]   ;;  %s6625_s1 = inlined_call_operand.vmem [shape: f32[8,512], index: 1, kind: input, shape index: {}]   ;;  %s6626_s2 = inlined_call_operand.hbm [shape: f32[2,768,512], index: 2, kind: input, shape index: {}]   ;;  %s6627_s3 = inlined_call_operand.hbm [shape: f32[1,1024], index: 3, kind: input, shape index: {}]   ;;  %s6628_s4 = inlined_call_operand.hbm [shape: f32[1,1024], index: 4, kind: input, shape index: {}]   ;;  %s6629_s5 = inlined_call_operand.hbm [shape: f32[1024,512], index: 5, kind: input, shape index: {}]   ;;  %s6630_s6 = inlined_call_operand.hbm [shape: f32[2,512,512], index: 6, kind: input, shape index: {}]   ;;  %s6631_s7 = inlined_call_operand.hbm [shape: f32[1,1024], index: 7, kind: input, shape index: {}]   ;;  %s6632_s8 = inlined_call_operand.hbm [shape: f32[1,1024], index: 8, kind: input, shape index: {}]   ;;  %s6633_s9 = inlined_call_operand.hbm [shape: f32[1024,512], index: 9, kind: input, shape index: {}]   ;;  %s6634_s10 = inlined_call_operand.hbm [shape: f32[1,512], index: 10, kind: input, shape index: {}]   ;;  %s6635_s11 = inlined_call_operand.hbm [shape: f32[1,512], index: 11, kind: input, shape index: {}]   ;;  %s6636_s12 = inlined_call_operand.hbm [shape: f32[1,512], index: 12, kind: input, shape index: {}]   ;;  %s6637_s13 = inlined_call_operand.<no memory space> [shape: f32[1,1], index: 13, kind: input, shape index: {}]   ;;  %s6638_s14 = inlined_call_operand.hbm [shape: f32[1,512], index: 14, kind: input, shape index: {}]   ;;  %s6639_s15 = inlined_call_operand.hbm [shape: f32[1,512], index: 15, kind: input, shape index: {}]   ;;  %s6640_s16 = inlined_call_operand.hbm [shape: f32[1,512], index: 16, kind: input, shape index: {}]   ;;  %s6641_s18 = inlined_call_operand.vmem [shape: f32[8,1], index: 18, kind: output, shape index: {0}]   ;;  %s6642_s19 = inlined_call_operand.vmem [shape: f32[8,1], index: 19, kind: output, shape index: {1}]   ;;  %s6643_s17 = inlined_call_operand.<no memory space> [shape: f32[1,1], index: 17, kind: input, shape index: {}]  }
   0x1   :  { %6668 = sst [smem:[#allocation45_spill]] %s6624_s0  ;;  %v25_v0 = vstv %s6637_s13  ;;  %v27_v1 = vstv %s6643_s17 }
   0x2   :  { %6669 = sst [smem:[#allocation46_spill]] %s6625_s1  ;;  %26 = vst [vmem:[#allocation4] sm:$0x1] %v25_v0 }
   0x3   :  { %6670 = sst [smem:[#allocation47_spill]] %s6626_s2  ;;  %28 = vst [vmem:[#allocation5] sm:$0x1] %v27_v1 }
   0x4   :  { %6671 = sst [smem:[#allocation48_spill]] %s6627_s3 }
   0x5   :  { %6672 = sst [smem:[#allocation49_spill]] %s6629_s5 }
   0x6   :  { %6673 = sst [smem:[#allocation50_spill]] %s6630_s6 }
   0x7   :  { %6674 = sst [smem:[#allocation51_spill]] %s6632_s8 }
   0x8   :  { %6675 = sst [smem:[#allocation52_spill]] %s6633_s9 }
   0x9   :  { %6676 = sst [smem:[#allocation53_spill]] %s6634_s10 }
   0xa   :  { %6677 = sst [smem:[#allocation54_spill]] %s6635_s11 }
   0xb   :  { %6678 = sst [smem:[#allocation55_spill]] %s6638_s14 }
   0xc   :  { %6679 = sst [smem:[#allocation56_spill]] %s6641_s18 }
   0xd   :  { %6680 = sst [smem:[#allocation57_spill]] %s6642_s19 }
   0xe   :  { %29 = vsyncpa [#allocation7], 0 }
   0xf   :  { %31 = vsyncpa [#allocation7 + $0x1], 0 }
  0x10   :  { %32 = vsyncpa [#allocation9], 0 }
  0x11   :  { %34 = vsyncpa [#allocation9 + $0x1], 0 }
  0x12   :  { %35 = vsyncpa [#allocation12], 0 }
  0x13   :  { %37 = vsyncpa [#allocation12 + $0x1], 0 }
  0x14   :  { %38 = vsyncpa [#allocation15], 0 }
  0x15   :  { %40 = vsyncpa [#allocation15 + $0x1], 0 }
  0x16   :  { %41 = vsyncpa [#allocation18], 0 }
  0x17   :  { %43 = vsyncpa [#allocation18 + $0x1], 0 }
  0x18   :  { %44 = vsyncpa [#allocation21], 0 }
  0x19   :  { %45 = vsyncpa [#allocation24], 0 }
  0x1a   :  { %46 = vsyncpa [#allocation27], 0  ;;  %s4944_s13 = smov 0   ;;  %s4946_s1 = smov 0  }
  0x1b   :  { %s4948_s17 = smov 0   ;;  %s4950_s22 = smov 0  }
  0x1c LB: > { %6681 = sst [smem:[#allocation37_spill]] %s4819_s1  ;;  %s4968_s25 = sadd.s32 4294967295, %s4827_s22   ;;  %s4827_s22 = sphi %s4950_s22, %s6718_s22   ;;  %s4823_s17 = sphi %s4948_s17, %s6721_s17   ;;  %s4819_s1 = sphi %s4946_s1, %s6720_s1   ;;  %s4815_s13 = sphi %s4944_s13, %s6719_s13  }
  0x1d   : > { %6682 = sst [smem:[#allocation38_spill]] %s4823_s17  ;;  %p4134_p0 = scmp.ge.s32.totalorder %s4827_s22, 1 }
  0x1e   : > { %s6683_s10 = sld [smem:[#allocation53_spill]]  ;;  %p115_p1 = scmp.eq.s32.totalorder %s4968_s25, 0 }
  0x1f   : > { %6684 = sst [smem:[#allocation39_spill]] %s4968_s25  ;;  %p517_p2 = scmp.lt.s32.totalorder %s4827_s22, 3 }
  0x20   : > { %p4135_p3 = scmp.ne.s32.totalorder %s4968_s25, 0  ;;  %s4829_s26 = smov [#allocation19]  }
  0x21   : > { %p4974_p4 = pnand %p4134_p0, %p517_p2  ;;  %s537_s27 = sshll.u32 %s4829_s26, 4  ;;  %s538_s27 = int_to_ptr.vmem [resolvable:$true] %s537_s27 }
  0x22   : > { %s6687_s11 = sld [smem:[#allocation54_spill]]  ;;  %s4830_s20 = smov [#allocation20]  }
  0x23   : > { %s6685_s3 = scalar_select %p4974_p4, 1, 0 }
  0x24   : > { %s535_s24 = sshll.u32 %s6683_s10, 4  ;;  %p4228_p5 = pneg %p4974_p4  ;;  %s536_s24 = int_to_ptr.hbm [resolvable:$true] %s535_s24 }
  0x25   : > { %6686 = sst [smem:[#allocation40_spill]] %s6685_s3  ;;  %s549_s21 = sshll.u32 %s4830_s20, 4  ;;  %s550_s21 = int_to_ptr.vmem [resolvable:$true] %s549_s21 }
  0x26   : > { %p4985_p6 = pnand %p4228_p5, %p115_p1  ;;  %s6689_s14 = sld [smem:[#allocation55_spill]] }
  0x27   : > { %s4831_s28 = smov [#allocation23]   ;;  %s4999_s20 = sadd.s32 1, %s4827_s22  }
  0x28   : > { %s547_s0 = sshll.u32 %s6687_s11, 4  ;;  %s576_s29 = sshll.u32 %s4831_s28, 4  ;;  %s548_s0 = int_to_ptr.hbm [resolvable:$true] %s547_s0  ;;  %s577_s29 = int_to_ptr.vmem [resolvable:$true] %s576_s29 }
  0x29   : > { %4231 = dma.hbm_to_vmem [thread:$0]  (!%p4985_p6), %s536_s24, 64, %s538_s27, [#allocation18]  }
  0x2a   : > { %4234 = dma.hbm_to_vmem [thread:$0]  (!%p4985_p6), %s548_s0, 64, %s550_s21, [#allocation21]  }
  0x2b   : > { %6690 = sst [smem:[#allocation41_spill]] %s4999_s20  ;;  %s98_s2 = ssub.s32 %s4827_s22, %s4999_s20 }
  0x2c   : > { %s574_s26 = sshll.u32 %s6689_s14, 4  ;;  %s101_s23 = sadd.s32 1, %s4823_s17  ;;  %s575_s26 = int_to_ptr.hbm [resolvable:$true] %s574_s26 }
  0x2d   : > { %4240 = dma.hbm_to_vmem [thread:$0]  (!%p4985_p6), %s575_s26, 64, %s577_s29, [#allocation24]  }
  0x2e   : > { %p99_p7 = scmp.eq.s32.totalorder %s98_s2, 0  ;;  %p108_p8 = scmp.ne.s32.totalorder %s4823_s17, %s4819_s1 }
  0x2f   : > { %p109_p9 = scmp.eq.s32.totalorder %s4827_s22, 0  ;;  %p114_p10 = scmp.ne.s32.totalorder %s4819_s1, %s4815_s13 }
  0x30   : > { %s5010_s24 = scalar_select %p99_p7, %s4823_s17, %s101_s23  }
  0x31   : > { %p110_p11 = por %p109_p9, %p108_p8  ;;  %p5014_p12 = por %p115_p1, %p114_p10 }
  0x32   : > { %6691 = sst [smem:[#allocation42_spill]] %s5010_s24  ;;  %p4278_p13 = scmp.lt.s32.totalorder %s4827_s22, 2 }
  0x33   : > { %s6692_s27 = scalar_select %p5014_p12, 1, 0 }
  0x34   : > { %s5020_s0 = sand.u32 1, %s4823_s17   ;;  %s5023_s21 = sand.u32 1, %s4827_s22  }
  0x35   : > { %6693 = sst [smem:[#allocation43_spill]] %s6692_s27  ;;  %s5026_s26 = sshll.u32 %s5020_s0, 2 }
  0x36   : > { %p5028_p0 = pnand %p4278_p13, %p110_p11  ;;  %s5033_s28 = sshll.u32 %s4827_s22, 2 }
  0x37   : > { %s6695_s23 = sld [smem:[#allocation48_spill]]  ;;  %s640_s14 = scalar_lea.vmem [#allocation8], %s5026_s26 }
  0x38   : > { %s648_s24 = sshll.u32 %s640_s14, 4  ;;  %s6658_s17 = scalar_lea.sflag [#allocation9], %s5023_s21  ;;  %s649_s24 = int_to_ptr.vmem [resolvable:$true] %s648_s24 }
  0x39   : > { %p5043_p5 = pneg %p5028_p0 }
  0x3d   : > { %s644_s10 = scalar_lea.hbm %s6695_s23, %s5033_s28  ;;  %s4438_s14 = scalar_lea.hbm %s6695_s23, 8 }
  0x3e   : > { %s646_s11 = sshll.u32 %s644_s10, 4  ;;  %s647_s11 = int_to_ptr.hbm [resolvable:$true] %s646_s11 }
  0x3f   : > { %s4431_s20 = sshra.s32 %s647_s11, 4  ;;  %s4432_s20 = int_to_ptr.hbm [resolvable:$true] %s4431_s20 }
  0x40   : > { %s4433_s19 = scalar_lea.hbm %s4432_s20, 4  ;;  %p4439_p9 = scmp.lt.s32.totalorder %s4432_s20, %s6695_s23 }
  0x41   : > { %p4434_p2 = scmp.ne.s32.totalorder %s4432_s20, %s4433_s19  ;;  %p4440_p10 = scmp.lt.s32.totalorder %s4438_s14, %s4433_s19 }
  0x43   : > { %p4436_p7 = pnand %p5043_p5, %p4434_p2  ;;  %p4441_p11 = por %p4440_p10, %p4439_p9 }
  0x45   : > { %p4437_p8 = pneg %p4436_p7 }
  0x47   : > { %p4442_p13 = pnand %p4441_p11, %p4437_p8 }
  0x49   : > { %4445 = shalt.err (!%p4442_p13)
}
  0x4a   : > { %4253 = dma.hbm_to_vmem [thread:$0]  (!%p5028_p0), %s647_s11, 64, %s649_s24, %s6658_s17  }
  0x4b   : > { %s5060_s27 = sshll.u32 %s5020_s0, 11  ;;  %s5063_s29 = sshll.u32 %s4827_s22, 11 }
  0x4c   : > { %6697 = sst [smem:[#allocation44_spill]] %s5060_s27  ;;  %s678_s14 = scalar_lea.vmem [#allocation11], %s5060_s27 }
  0x4d   : > { %s6698_s5 = sld [smem:[#allocation49_spill]]  ;;  %s687_s2 = sshll.u32 %s678_s14, 4  ;;  %s688_s2 = int_to_ptr.vmem [resolvable:$true] %s687_s2 }
  0x4e   : > { %s6665_s23 = scalar_lea.sflag [#allocation12], %s5023_s21 }
  0x53   : > { %s684_s20 = scalar_lea.hbm %s6698_s5, %s5063_s29  ;;  %s4468_s17 = scalar_lea.hbm %s6698_s5, 4096 }
  0x54   : > { %s685_s10 = sshll.u32 %s684_s20, 4  ;;  %s686_s10 = int_to_ptr.hbm [resolvable:$true] %s685_s10 }
  0x55   : > { %s4461_s1 = sshra.s32 %s686_s10, 4  ;;  %s4462_s1 = int_to_ptr.hbm [resolvable:$true] %s4461_s1 }
  0x56   : > { %s4463_s3 = scalar_lea.hbm %s4462_s1, 2048  ;;  %p4469_p9 = scmp.lt.s32.totalorder %s4462_s1, %s6698_s5 }
  0x57   : > { %p4464_p2 = scmp.ne.s32.totalorder %s4462_s1, %s4463_s3  ;;  %p4470_p10 = scmp.lt.s32.totalorder %s4468_s17, %s4463_s3 }
  0x59   : > { %p4466_p7 = pnand %p4464_p2, %p5043_p5  ;;  %p4471_p11 = por %p4470_p10, %p4469_p9 }
  0x5b   : > { %p4467_p8 = pneg %p4466_p7 }
  0x5d   : > { %p4472_p13 = pnand %p4471_p11, %p4467_p8 }
  0x5f   : > { %4475 = shalt.err (!%p4472_p13)
}
  0x60   : > { %s6666_s19 = smov 512   ;;  %s4833_s20 = smov 32  }
  0x61   : > { %4259 = dma.hbm_to_vmem [thread:$0]  (!%p5028_p0), %s686_s10, 32768, %s688_s2, %s6665_s23, %s6666_s19, %s6666_s19, %s4833_s20  }
  0x62   : > { %s727_s17 = scalar_lea.hbm %s6631_s7, %s5033_s28  ;;  %s723_s3 = scalar_lea.vmem [#allocation14], %s5026_s26 }
  0x63   : > { %s731_s14 = sshll.u32 %s723_s3, 4  ;;  %s729_s11 = sshll.u32 %s727_s17, 4  ;;  %s732_s14 = int_to_ptr.vmem [resolvable:$true] %s731_s14  ;;  %s730_s11 = int_to_ptr.hbm [resolvable:$true] %s729_s11 }
  0x64   : > { %s559_s5 = sshll.u32 %s6636_s12, 4  ;;  %s6664_s8 = scalar_lea.sflag [#allocation15], %s5023_s21  ;;  %s560_s5 = int_to_ptr.hbm [resolvable:$true] %s559_s5 }
  0x65   : > { %s4491_s6 = sshra.s32 %s730_s11, 4  ;;  %s4498_s9 = scalar_lea.hbm %s6631_s7, 8  ;;  %s4492_s6 = int_to_ptr.hbm [resolvable:$true] %s4491_s6 }
  0x66   : > { %s4493_s27 = scalar_lea.hbm %s4492_s6, 4  ;;  %p4499_p9 = scmp.lt.s32.totalorder %s4492_s6, %s6631_s7 }
  0x67   : > { %p4494_p2 = scmp.ne.s32.totalorder %s4492_s6, %s4493_s27  ;;  %p4500_p10 = scmp.lt.s32.totalorder %s4498_s9, %s4493_s27 }
  0x69   : > { %p4496_p7 = pnand %p4494_p2, %p5043_p5  ;;  %p4501_p11 = por %p4500_p10, %p4499_p9 }
  0x6b   : > { %p4497_p8 = pneg %p4496_p7 }
  0x6d   : > { %p4502_p13 = pnand %p4501_p11, %p4497_p8 }
  0x6f   : > { %4505 = shalt.err (!%p4502_p13)
}
  0x70   : > { %4265 = dma.hbm_to_vmem [thread:$0]  (!%p5028_p0), %s730_s11, 64, %s732_s14, %s6664_s8  }
  0x71   : > { %s4834_s3 = smov [#allocation22]   ;;  %s586_s6 = sshll.u32 %s6639_s15, 4  ;;  %s587_s6 = int_to_ptr.hbm [resolvable:$true] %s586_s6 }
  0x72   : > { %s561_s24 = sshll.u32 %s4834_s3, 4  ;;  %s598_s9 = sshll.u32 %s6640_s16, 4  ;;  %s562_s24 = int_to_ptr.vmem [resolvable:$true] %s561_s24  ;;  %s599_s9 = int_to_ptr.hbm [resolvable:$true] %s598_s9 }
  0x73   : > { %4237 = dma.hbm_to_vmem [thread:$0]  (!%p4985_p6), %s560_s5, 64, %s562_s24, [#allocation21]  }
  0x74   : > { %s4835_s1 = smov [#allocation25]   ;;  %s4836_s11 = smov [#allocation26]  }
  0x75   : > { %s588_s14 = sshll.u32 %s4835_s1, 4  ;;  %s600_s17 = sshll.u32 %s4836_s11, 4  ;;  %s589_s14 = int_to_ptr.vmem [resolvable:$true] %s588_s14  ;;  %s601_s17 = int_to_ptr.vmem [resolvable:$true] %s600_s17 }
  0x76   : > { %4243 = dma.hbm_to_vmem [thread:$0]  (!%p4985_p6), %s587_s6, 64, %s589_s14, [#allocation24]  }
  0x77   : > { %s4185_s3 = smul.u32 3072, %s5020_s0  ;;  %s6699_s2 = sld [smem:[#allocation47_spill]] }
  0x78   : > { %4246 = dma.hbm_to_vmem [thread:$0]  (!%p4985_p6), %s599_s9, 64, %s601_s17, [#allocation27]  }
  0x79   : > { %s4186_s5 = smul.u32 3072, %s4827_s22  ;;  %s618_s24 = scalar_lea.vmem [#allocation6], %s4185_s3 }
  0x7a   : > { %s626_s25 = sshll.u32 %s618_s24, 4  ;;  %s663_s6 = scalar_lea.hbm %s6628_s4, %s5033_s28  ;;  %s627_s25 = int_to_ptr.vmem [resolvable:$true] %s626_s25 }
  0x7b   : > { %s5128_s14 = sshll.u32 %s663_s6, 4  ;;  %s615_s11 = scalar_lea.sflag [#allocation7], %s5020_s0  ;;  %s666_s14 = int_to_ptr.hbm [resolvable:$true] %s5128_s14 }
  0x7d   : > { %s623_s8 = scalar_lea.hbm %s6699_s2, %s4186_s5  ;;  %s4618_s3 = scalar_lea.hbm %s6699_s2, 6144 }
  0x7e   : > { %s624_s1 = sshll.u32 %s623_s8, 4  ;;  %s625_s1 = int_to_ptr.hbm [resolvable:$true] %s624_s1 }
  0x7f   : > { %s4611_s30 = sshra.s32 %s625_s1, 4  ;;  %s4612_s30 = int_to_ptr.hbm [resolvable:$true] %s4611_s30 }
  0x80   : > { %s4613_s9 = scalar_lea.hbm %s4612_s30, 3072  ;;  %p4619_p8 = scmp.lt.s32.totalorder %s4612_s30, %s6699_s2 }
  0x81   : > { %p4614_p6 = scmp.ne.s32.totalorder %s4612_s30, %s4613_s9  ;;  %p4620_p9 = scmp.lt.s32.totalorder %s4618_s3, %s4613_s9 }
  0x83   : > { %p4616_p2 = pnand %p4614_p6, %p5043_p5  ;;  %p4621_p10 = por %p4620_p9, %p4619_p8 }
  0x85   : > { %p4617_p7 = pneg %p4616_p2 }
  0x87   : > { %p4622_p11 = pnand %p4621_p10, %p4617_p7 }
  0x89   : > { %4625 = shalt.err (!%p4622_p11)
}
  0x8a   : > { %s6700_s0 = smov 512   ;;  %s659_s23 = scalar_lea.vmem [#allocation10], %s5026_s26 }
  0x8b   : > { %4250 = dma.hbm_to_vmem [thread:$0]  (!%p5028_p0), %s625_s1, 49152, %s627_s25, %s615_s11, %s6700_s0, %s6700_s0, %s4833_s20  }
  0x8c   : > { %s667_s19 = sshll.u32 %s659_s23, 4  ;;  %s4641_s24 = sshra.s32 %s666_s14, 4  ;;  %s668_s19 = int_to_ptr.vmem [resolvable:$true] %s667_s19  ;;  %s4642_s24 = int_to_ptr.hbm [resolvable:$true] %s4641_s24 }
  0x8d   : > { %s4643_s10 = scalar_lea.hbm %s4642_s24, 4  ;;  %s4648_s30 = scalar_lea.hbm %s6628_s4, 8 }
  0x8e   : > { %p4644_p13 = scmp.ne.s32.totalorder %s4642_s24, %s4643_s10  ;;  %p4649_p7 = scmp.lt.s32.totalorder %s4642_s24, %s6628_s4 }
  0x8f   : > { %p4650_p8 = scmp.lt.s32.totalorder %s4648_s30, %s4643_s10 }
  0x90   : > { %p4646_p6 = pnand %p4644_p13, %p5043_p5 }
  0x91   : > { %p4651_p9 = por %p4650_p8, %p4649_p7 }
  0x92   : > { %p4647_p2 = pneg %p4646_p6 }
  0x94   : > { %p4652_p10 = pnand %p4651_p9, %p4647_p2 }
  0x96   : > { %4655 = shalt.err (!%p4652_p10)
}
  0x97   : > { %s6701_s25 = scalar_lea.sflag [#allocation9], %s5023_s21  ;;  %s6702_s1 = sld [smem:[#allocation44_spill]] }
  0x98   : > { %4256 = dma.hbm_to_vmem [thread:$0]  (!%p5028_p0), %s666_s14, 64, %s668_s19, %s6701_s25  }
  0x99   : > { %s6703_s3 = sld [smem:[#allocation50_spill]] }
  0x9d   : > { %s701_s5 = scalar_lea.vmem [#allocation13], %s6702_s1 }
  0x9e   : > { %s709_s23 = sshll.u32 %s701_s5, 4  ;;  %s710_s23 = int_to_ptr.vmem [resolvable:$true] %s709_s23 }
  0x9f   : > { %s706_s8 = scalar_lea.hbm %s6703_s3, %s5063_s29  ;;  %s4678_s14 = scalar_lea.hbm %s6703_s3, 4096 }
  0xa0   : > { %s707_s27 = sshll.u32 %s706_s8, 4  ;;  %s708_s27 = int_to_ptr.hbm [resolvable:$true] %s707_s27 }
  0xa1   : > { %s4671_s24 = sshra.s32 %s708_s27, 4  ;;  %s4672_s24 = int_to_ptr.hbm [resolvable:$true] %s4671_s24 }
  0xa2   : > { %s4673_s10 = scalar_lea.hbm %s4672_s24, 2048  ;;  %p4679_p2 = scmp.lt.s32.totalorder %s4672_s24, %s6703_s3 }
  0xa3   : > { %p4674_p11 = scmp.ne.s32.totalorder %s4672_s24, %s4673_s10  ;;  %p4680_p7 = scmp.lt.s32.totalorder %s4678_s14, %s4673_s10 }
  0xa5   : > { %p4676_p13 = pnand %p4674_p11, %p5043_p5  ;;  %p4681_p8 = por %p4680_p7, %p4679_p2 }
  0xa7   : > { %p4677_p6 = pneg %p4676_p13 }
  0xa9   : > { %p4682_p9 = pnand %p4681_p8, %p4677_p6 }
  0xab   : > { %4685 = shalt.err (!%p4682_p9)
}
  0xac   : > { %s6704_s22 = scalar_lea.sflag [#allocation12], %s5023_s21  ;;  %s6705_s17 = sld [smem:[#allocation51_spill]] }
  0xad   : > { %4262 = dma.hbm_to_vmem [thread:$0]  (!%p5028_p0), %s708_s27, 32768, %s710_s23, %s6704_s22, %s6700_s0, %s6700_s0, %s4833_s20  }
  0xae   : > { %s742_s24 = scalar_lea.vmem [#allocation16], %s5026_s26 }
  0xaf   : > { %s750_s10 = sshll.u32 %s742_s24, 4  ;;  %s751_s10 = int_to_ptr.vmem [resolvable:$true] %s750_s10 }
  0xb2   : > { %s6706_s8 = smov %s6705_s17  ;;  %s746_s5 = scalar_lea.hbm %s6705_s17, %s5033_s28 }
  0xb3   : > { %s748_s6 = sshll.u32 %s746_s5, 4  ;;  %s4708_s23 = scalar_lea.hbm %s6706_s8, 8  ;;  %s749_s6 = int_to_ptr.hbm [resolvable:$true] %s748_s6 }
  0xb4   : > { %s4701_s30 = sshra.s32 %s749_s6, 4  ;;  %s4702_s30 = int_to_ptr.hbm [resolvable:$true] %s4701_s30 }
  0xb5   : > { %s4703_s14 = scalar_lea.hbm %s4702_s30, 4  ;;  %p4709_p6 = scmp.lt.s32.totalorder %s4702_s30, %s6706_s8 }
  0xb6   : > { %p4704_p10 = scmp.ne.s32.totalorder %s4702_s30, %s4703_s14  ;;  %p4710_p2 = scmp.lt.s32.totalorder %s4708_s23, %s4703_s14 }
  0xb8   : > { %p4706_p11 = pnand %p4704_p10, %p5043_p5  ;;  %p4711_p7 = por %p4710_p2, %p4709_p6 }
  0xba   : > { %p4707_p13 = pneg %p4706_p11 }
  0xbc   : > { %p4712_p8 = pnand %p4711_p7, %p4707_p13 }
  0xbe   : > { %4715 = shalt.err (!%p4712_p8)
}
  0xbf   : > { %s6707_s26 = scalar_lea.sflag [#allocation15], %s5023_s21  ;;  %s6708_s11 = sld [smem:[#allocation52_spill]] }
  0xc0   : > { %4268 = dma.hbm_to_vmem [thread:$0]  (!%p5028_p0), %s749_s6, 64, %s751_s10, %s6707_s26  }
  0xc1   : > { %s761_s5 = scalar_lea.vmem [#allocation17], %s6702_s1  ;;  %s758_s14 = scalar_lea.sflag [#allocation18], %s5023_s21 }
  0xc2   : > { %s770_s24 = sshll.u32 %s761_s5, 4  ;;  %s771_s24 = int_to_ptr.vmem [resolvable:$true] %s770_s24 }
  0xc5   : > { %s767_s17 = scalar_lea.hbm %s6708_s11, %s5063_s29  ;;  %s4738_s10 = scalar_lea.hbm %s6708_s11, 4096 }
  0xc6   : > { %s768_s30 = sshll.u32 %s767_s17, 4  ;;  %s769_s30 = int_to_ptr.hbm [resolvable:$true] %s768_s30 }
  0xc7   : > { %s4731_s19 = sshra.s32 %s769_s30, 4  ;;  %s4732_s19 = int_to_ptr.hbm [resolvable:$true] %s4731_s19 }
  0xc8   : > { %s4733_s9 = scalar_lea.hbm %s4732_s19, 2048  ;;  %p4739_p13 = scmp.lt.s32.totalorder %s4732_s19, %s6708_s11 }
  0xc9   : > { %p4734_p9 = scmp.ne.s32.totalorder %s4732_s19, %s4733_s9  ;;  %p4740_p6 = scmp.lt.s32.totalorder %s4738_s10, %s4733_s9 }
  0xcb   : > { %p4736_p10 = pnand %p4734_p9, %p5043_p5  ;;  %p4741_p2 = por %p4740_p6, %p4739_p13 }
  0xcd   : > { %p4737_p11 = pneg %p4736_p10 }
  0xcf   : > { %p4742_p7 = pnand %p4741_p2, %p4737_p11 }
  0xd1   : > { %4745 = shalt.err (!%p4742_p7)
}
  0xd2   : > { %4271 = dma.hbm_to_vmem [thread:$0]  (!%p5028_p0), %s769_s30, 32768, %s771_s24, %s758_s14, %s6700_s0, %s6700_s0, %s4833_s20  }
  0xd3   : > { %782 = sbr.rel (%p4974_p4) target bundleno = 1353 (0x549), region = 92  ;;  %s6710_s21 = sld [smem:[#allocation37_spill]] (!%p4974_p4) }
  0xd9   : > { %s784_s1 = sand.u32 1, %s6710_s21  }
  0xda   : > { %s4187_s26 = smul.u32 3072, %s784_s1  ;;  %s785_s28 = scalar_lea.sflag [#allocation7], %s784_s1 }
  0xdc   : > { %s5217_s25 = scalar_lea.vmem [#allocation6], %s4187_s26 }
  0xdd   : > { %4778 = dma.done.wait (%p5014_p12), %s785_s28, 49152  }
  0xde   : > { %4780 = vsyncadd (%p5014_p12), %s785_s28, 4294918144  ;;  %s6712_s13 = sld [smem:[#allocation39_spill]]  ;;  %s5224_s5 = sshll.u32 %s784_s1, 2 }
  0xdf   : > { %s798_s0 = scalar_lea.vmem [#allocation8], %s5224_s5 }
  0xe4   : > { %s794_s17 = sand.u32 1, %s6712_s13  }
  0xe5   : > { %s795_s20 = scalar_lea.sflag [#allocation9], %s794_s17 }
  0xe6   : > { %4782 = dma.done.wait (%p5014_p12), %s795_s20, 128  }
  0xe7   : > { %4784 = vsyncadd (%p5014_p12), %s795_s20, 4294967168  ;;  %s4165_s24 = sshll.u32 %s784_s1, 11  ;;  %s808_s30 = scalar_lea.vmem [#allocation10], %s5224_s5 }
  0xe8   : > { %s815_s14 = scalar_lea.sflag [#allocation12], %s794_s17  ;;  %s5232_s19 = scalar_lea.vmem [#allocation11], %s4165_s24 }
  0xe9   : > { %4786 = dma.done.wait (%p5014_p12), %s815_s14, 65536  }
  0xea   : > { %4788 = vsyncadd (%p5014_p12), %s815_s14, 4294901760  ;;  %s5238_s9 = scalar_lea.vmem [#allocation13], %s4165_s24  ;;  %s835_s23 = scalar_lea.sflag [#allocation15], %s794_s17 }
  0xeb   : > { %s838_s27 = scalar_lea.vmem [#allocation14], %s5224_s5 }
  0xec   : > { %4790 = dma.done.wait (%p5014_p12), %s835_s23, 128  }
  0xed   : > { %4792 = vsyncadd (%p5014_p12), %s835_s23, 4294967168  ;;  %s848_s10 = scalar_lea.vmem [#allocation16], %s5224_s5  ;;  %s855_s6 = scalar_lea.sflag [#allocation18], %s794_s17 }
  0xee   : > { %s5246_s22 = scalar_lea.vmem [#allocation17], %s4165_s24 }
  0xef   : > { %4794 = dma.done.wait (%p5014_p12), %s855_s6, 32768  }
  0xf0   : > { %4796 = vsyncadd (%p5014_p12), %s855_s6, 4294934528 }
  0xf1   : > { %4798 = dma.done.wait (%p115_p1), [#allocation18], 64  }
  0xf2   : > { %4800 = vsyncadd (%p115_p1), [#allocation18], 4294967232 }
  0xf3   : > { %4802 = dma.done.wait (%p115_p1), [#allocation21], 128  }
  0xf4   : > { %4804 = vsyncadd (%p115_p1), [#allocation21], 4294967168 }
  0xf5   : > { %4806 = dma.done.wait (%p115_p1), [#allocation24], 128  }
  0xf6   : > { %4808 = vsyncadd (%p115_p1), [#allocation24], 4294967168 }
  0xf7   : > { %4810 = dma.done.wait (%p115_p1), [#allocation27], 64  }
  0xf8   : > { %4812 = vsyncadd (%p115_p1), [#allocation27], 4294967232  ;;  %983 = sbr.rel (%p4135_p3) target bundleno = 262 (0x106), region = 152 }
  0xfd   : > { %v4837_v2 = vmov 0.0  }
  0xfe   : > { %984 = vst [vmem:[#allocation2 + $0x10] sm:$0xff] %v4837_v2 }
  0xff   : > { %985 = vst [vmem:[#allocation2] sm:$0xff] %v4837_v2 }
 0x100   : > { %986 = vst [vmem:[#allocation2 + $0x18] sm:$0xff] %v4837_v2 }
 0x101   : > { %987 = vst [vmem:[#allocation2 + $0x8] sm:$0xff] %v4837_v2 }
 0x102   : > { %988 = vst [vmem:[#allocation3] sm:$0xff] %v4837_v2 }
 0x103   : > { %989 = vst [vmem:[#allocation3 + $0x18] sm:$0xff] %v4837_v2 }
 0x104   : > { %990 = vst [vmem:[#allocation3 + $0x8] sm:$0xff] %v4837_v2 }
 0x105   : > { %991 = vst [vmem:[#allocation3 + $0x10] sm:$0xff] %v4837_v2 }
 0x106 PF: > { %v1052_v3 = vld [vmem:[%s5217_s25 + $0x1e0] sm:$0xff]  ;;  %s6713_s29 = sld [smem:[#allocation45_spill]] }
 0x107   : > { %v1116_v4 = vld [vmem:[%s5217_s25 + $0x3e0] sm:$0xff]  ;;  %2150 = vmatpush.msra.mxu0 %v1052_v3  ;;  %s6714_s14 = sld [smem:[#allocation46_spill]] }
 0x108   : > { %v1180_v5 = vld [vmem:[%s5217_s25 + $0x5e0] sm:$0xff]  ;;  %2170 = vmatpush.msra.mxu1 %v1116_v4  ;;  %v1053_v4 = vld [vmem:[%s5217_s25 + $0x1e8] sm:$0xff]  ;;  %s6715_s5 = sld [smem:[#allocation39_spill]] }
 0x109   : > { %v1048_v6 = vld [vmem:[%s5217_s25 + $0x1c0] sm:$0xff]  ;;  %2190 = vmatpush.msra.mxu2 %v1180_v5 }
 0x10a   : > { %v1112_v7 = vld [vmem:[%s5217_s25 + $0x3c0] sm:$0xff]  ;;  %2151 = vmatpush.msra.mxu0 %v1048_v6 }
 0x10b   : > { %v1176_v8 = vld [vmem:[%s5217_s25 + $0x5c0] sm:$0xff]  ;;  %2171 = vmatpush.msra.mxu1 %v1112_v7 }
 0x10c   : > { %v1244_v9 = vld [vmem:[%s5217_s25 + $0x7e0] sm:$0xff]  ;;  %2191 = vmatpush.msra.mxu2 %v1176_v8  ;;  %v1049_v8 = vld [vmem:[%s5217_s25 + $0x1c8] sm:$0xff] }
 0x10d   : > { %v1044_v10 = vld [vmem:[%s5217_s25 + $0x1a0] sm:$0xff]  ;;  %2210 = vmatpush.msra.mxu3 %v1244_v9  ;;  %v1117_v9 = vld [vmem:[%s5217_s25 + $0x3e8] sm:$0xff] }
 0x10e   : > { %v1108_v11 = vld [vmem:[%s5217_s25 + $0x3a0] sm:$0xff]  ;;  %2152 = vmatpush.msra.mxu0 %v1044_v10  ;;  %p4177_p1 = scmp.ne.s32.totalorder %s6715_s5, 1 }
 0x10f   : > { %v1172_v12 = vld [vmem:[%s5217_s25 + $0x5a0] sm:$0xff]  ;;  %2172 = vmatpush.msra.mxu1 %v1108_v11  ;;  %s6717_s28 = sld [smem:[#allocation57_spill]] (!%p4177_p1) }
 0x110   : > { %v1240_v13 = vld [vmem:[%s5217_s25 + $0x7c0] sm:$0xff]  ;;  %2192 = vmatpush.msra.mxu2 %v1172_v12  ;;  %v1045_v12 = vld [vmem:[%s5217_s25 + $0x1a8] sm:$0xff] }
 0x111   : > { %v1040_v14 = vld [vmem:[%s5217_s25 + $0x180] sm:$0xff]  ;;  %2211 = vmatpush.msra.mxu3 %v1240_v13  ;;  %v1113_v13 = vld [vmem:[%s5217_s25 + $0x3c8] sm:$0xff] }
 0x112   : > { %v1104_v15 = vld [vmem:[%s5217_s25 + $0x380] sm:$0xff]  ;;  %2153 = vmatpush.msra.mxu0 %v1040_v14 }
 0x113   : > { %v1168_v16 = vld [vmem:[%s5217_s25 + $0x580] sm:$0xff]  ;;  %2173 = vmatpush.msra.mxu1 %v1104_v15 }
 0x114   : > { %v1236_v17 = vld [vmem:[%s5217_s25 + $0x7a0] sm:$0xff]  ;;  %2193 = vmatpush.msra.mxu2 %v1168_v16  ;;  %v1041_v16 = vld [vmem:[%s5217_s25 + $0x188] sm:$0xff] }
 0x115   : > { %v1036_v18 = vld [vmem:[%s5217_s25 + $0x160] sm:$0xff]  ;;  %2212 = vmatpush.msra.mxu3 %v1236_v17  ;;  %v1109_v17 = vld [vmem:[%s5217_s25 + $0x3a8] sm:$0xff] }
 0x116   : > { %v1100_v19 = vld [vmem:[%s5217_s25 + $0x360] sm:$0xff]  ;;  %2154 = vmatpush.msra.mxu0 %v1036_v18 }
 0x117   : > { %v1164_v20 = vld [vmem:[%s5217_s25 + $0x560] sm:$0xff]  ;;  %2174 = vmatpush.msra.mxu1 %v1100_v19 }
 0x118   : > { %v1232_v21 = vld [vmem:[%s5217_s25 + $0x780] sm:$0xff]  ;;  %2194 = vmatpush.msra.mxu2 %v1164_v20  ;;  %v1037_v20 = vld [vmem:[%s5217_s25 + $0x168] sm:$0xff] }
 0x119   : > { %v1032_v22 = vld [vmem:[%s5217_s25 + $0x140] sm:$0xff]  ;;  %2213 = vmatpush.msra.mxu3 %v1232_v21  ;;  %v1105_v21 = vld [vmem:[%s5217_s25 + $0x388] sm:$0xff] }
 0x11a   : > { %v1096_v23 = vld [vmem:[%s5217_s25 + $0x340] sm:$0xff]  ;;  %2155 = vmatpush.msra.mxu0 %v1032_v22 }
 0x11b   : > { %v1160_v24 = vld [vmem:[%s5217_s25 + $0x540] sm:$0xff]  ;;  %2175 = vmatpush.msra.mxu1 %v1096_v23 }
 0x11c   : > { %v1228_v25 = vld [vmem:[%s5217_s25 + $0x760] sm:$0xff]  ;;  %2195 = vmatpush.msra.mxu2 %v1160_v24  ;;  %v1033_v24 = vld [vmem:[%s5217_s25 + $0x148] sm:$0xff] }
 0x11d   : > { %v1028_v26 = vld [vmem:[%s5217_s25 + $0x120] sm:$0xff]  ;;  %2214 = vmatpush.msra.mxu3 %v1228_v25  ;;  %v1101_v25 = vld [vmem:[%s5217_s25 + $0x368] sm:$0xff] }
 0x11e   : > { %v1092_v27 = vld [vmem:[%s5217_s25 + $0x320] sm:$0xff]  ;;  %2156 = vmatpush.msra.mxu0 %v1028_v26 }
 0x11f   : > { %v1156_v28 = vld [vmem:[%s5217_s25 + $0x520] sm:$0xff]  ;;  %2176 = vmatpush.msra.mxu1 %v1092_v27 }
 0x120   : > { %v1224_v29 = vld [vmem:[%s5217_s25 + $0x740] sm:$0xff]  ;;  %2196 = vmatpush.msra.mxu2 %v1156_v28  ;;  %v1029_v28 = vld [vmem:[%s5217_s25 + $0x128] sm:$0xff] }
 0x121   : > { %v1024_v30 = vld [vmem:[%s5217_s25 + $0x100] sm:$0xff]  ;;  %2215 = vmatpush.msra.mxu3 %v1224_v29  ;;  %v1097_v29 = vld [vmem:[%s5217_s25 + $0x348] sm:$0xff] }
 0x122   : > { %v1088_v31 = vld [vmem:[%s5217_s25 + $0x300] sm:$0xff]  ;;  %2157 = vmatpush.msra.mxu0 %v1024_v30 }
 0x123   : > { %v1152_v32 = vld [vmem:[%s5217_s25 + $0x500] sm:$0xff]  ;;  %2177 = vmatpush.msra.mxu1 %v1088_v31 }
 0x124   : > { %v1220_v33 = vld [vmem:[%s5217_s25 + $0x720] sm:$0xff]  ;;  %2197 = vmatpush.msra.mxu2 %v1152_v32  ;;  %v1025_v32 = vld [vmem:[%s5217_s25 + $0x108] sm:$0xff] }
 0x125   : > { %v1020_v34 = vld [vmem:[%s5217_s25 + $0xe0] sm:$0xff]  ;;  %2216 = vmatpush.msra.mxu3 %v1220_v33  ;;  %v1093_v33 = vld [vmem:[%s5217_s25 + $0x328] sm:$0xff] }
 0x126   : > { %v1084_v35 = vld [vmem:[%s5217_s25 + $0x2e0] sm:$0xff]  ;;  %2158 = vmatpush.msra.mxu0 %v1020_v34 }
 0x127   : > { %v1148_v36 = vld [vmem:[%s5217_s25 + $0x4e0] sm:$0xff]  ;;  %2178 = vmatpush.msra.mxu1 %v1084_v35 }
 0x128   : > { %v1216_v37 = vld [vmem:[%s5217_s25 + $0x700] sm:$0xff]  ;;  %2198 = vmatpush.msra.mxu2 %v1148_v36  ;;  %v1021_v36 = vld [vmem:[%s5217_s25 + $0xe8] sm:$0xff] }
 0x129   : > { %v1016_v38 = vld [vmem:[%s5217_s25 + $0xc0] sm:$0xff]  ;;  %2217 = vmatpush.msra.mxu3 %v1216_v37  ;;  %v1089_v37 = vld [vmem:[%s5217_s25 + $0x308] sm:$0xff] }
 0x12a   : > { %v1080_v39 = vld [vmem:[%s5217_s25 + $0x2c0] sm:$0xff]  ;;  %2159 = vmatpush.msra.mxu0 %v1016_v38 }
 0x12b   : > { %v1144_v40 = vld [vmem:[%s5217_s25 + $0x4c0] sm:$0xff]  ;;  %2179 = vmatpush.msra.mxu1 %v1080_v39 }
 0x12c   : > { %v1212_v41 = vld [vmem:[%s5217_s25 + $0x6e0] sm:$0xff]  ;;  %2199 = vmatpush.msra.mxu2 %v1144_v40  ;;  %v1017_v40 = vld [vmem:[%s5217_s25 + $0xc8] sm:$0xff] }
 0x12d   : > { %v1012_v42 = vld [vmem:[%s5217_s25 + $0xa0] sm:$0xff]  ;;  %2218 = vmatpush.msra.mxu3 %v1212_v41  ;;  %v1085_v41 = vld [vmem:[%s5217_s25 + $0x2e8] sm:$0xff] }
 0x12e   : > { %v1076_v43 = vld [vmem:[%s5217_s25 + $0x2a0] sm:$0xff]  ;;  %2160 = vmatpush.msra.mxu0 %v1012_v42 }
 0x12f   : > { %v1140_v44 = vld [vmem:[%s5217_s25 + $0x4a0] sm:$0xff]  ;;  %2180 = vmatpush.msra.mxu1 %v1076_v43 }
 0x130   : > { %v1208_v45 = vld [vmem:[%s5217_s25 + $0x6c0] sm:$0xff]  ;;  %2200 = vmatpush.msra.mxu2 %v1140_v44  ;;  %v1013_v44 = vld [vmem:[%s5217_s25 + $0xa8] sm:$0xff] }
 0x131   : > { %v1008_v46 = vld [vmem:[%s5217_s25 + $0x80] sm:$0xff]  ;;  %2219 = vmatpush.msra.mxu3 %v1208_v45  ;;  %v1081_v45 = vld [vmem:[%s5217_s25 + $0x2c8] sm:$0xff] }
 0x132   : > { %v1072_v47 = vld [vmem:[%s5217_s25 + $0x280] sm:$0xff]  ;;  %2161 = vmatpush.msra.mxu0 %v1008_v46 }
 0x133   : > { %v1136_v48 = vld [vmem:[%s5217_s25 + $0x480] sm:$0xff]  ;;  %2181 = vmatpush.msra.mxu1 %v1072_v47 }
 0x134   : > { %v1204_v49 = vld [vmem:[%s5217_s25 + $0x6a0] sm:$0xff]  ;;  %2201 = vmatpush.msra.mxu2 %v1136_v48  ;;  %v1009_v48 = vld [vmem:[%s5217_s25 + $0x88] sm:$0xff] }
 0x135   : > { %v1004_v50 = vld [vmem:[%s5217_s25 + $0x60] sm:$0xff]  ;;  %2220 = vmatpush.msra.mxu3 %v1204_v49  ;;  %v1077_v49 = vld [vmem:[%s5217_s25 + $0x2a8] sm:$0xff] }
 0x136   : > { %v1068_v51 = vld [vmem:[%s5217_s25 + $0x260] sm:$0xff]  ;;  %2162 = vmatpush.msra.mxu0 %v1004_v50 }
 0x137   : > { %v1132_v52 = vld [vmem:[%s5217_s25 + $0x460] sm:$0xff]  ;;  %2182 = vmatpush.msra.mxu1 %v1068_v51 }
 0x138   : > { %v1200_v53 = vld [vmem:[%s5217_s25 + $0x680] sm:$0xff]  ;;  %2202 = vmatpush.msra.mxu2 %v1132_v52  ;;  %v1005_v52 = vld [vmem:[%s5217_s25 + $0x68] sm:$0xff] }
 0x139   : > { %v1000_v54 = vld [vmem:[%s5217_s25 + $0x40] sm:$0xff]  ;;  %2221 = vmatpush.msra.mxu3 %v1200_v53  ;;  %v1073_v53 = vld [vmem:[%s5217_s25 + $0x288] sm:$0xff] }
 0x13a   : > { %v1064_v55 = vld [vmem:[%s5217_s25 + $0x240] sm:$0xff]  ;;  %2163 = vmatpush.msra.mxu0 %v1000_v54 }
 0x13b   : > { %v1128_v56 = vld [vmem:[%s5217_s25 + $0x440] sm:$0xff]  ;;  %2183 = vmatpush.msra.mxu1 %v1064_v55 }
 0x13c   : > { %v1196_v57 = vld [vmem:[%s5217_s25 + $0x660] sm:$0xff]  ;;  %2203 = vmatpush.msra.mxu2 %v1128_v56  ;;  %v1001_v56 = vld [vmem:[%s5217_s25 + $0x48] sm:$0xff] }
 0x13d   : > { %v996_v58 = vld [vmem:[%s5217_s25 + $0x20] sm:$0xff]  ;;  %2222 = vmatpush.msra.mxu3 %v1196_v57  ;;  %v1069_v57 = vld [vmem:[%s5217_s25 + $0x268] sm:$0xff] }
 0x13e   : > { %v1060_v59 = vld [vmem:[%s5217_s25 + $0x220] sm:$0xff]  ;;  %2164 = vmatpush.msra.mxu0 %v996_v58  ;;  %v5392_v58 = vld [vmem:[%s6713_s29 + $0x10] sm:$0xff] }
 0x13f   : > { %v1124_v60 = vld [vmem:[%s5217_s25 + $0x420] sm:$0xff]  ;;  %2184 = vmatpush.msra.mxu1 %v1060_v59 }
 0x140   : > { %v1192_v61 = vld [vmem:[%s5217_s25 + $0x640] sm:$0xff]  ;;  %2204 = vmatpush.msra.mxu2 %v1124_v60 }
 0x141   : > { %v992_v62 = vld [vmem:[%s5217_s25] sm:$0xff]  ;;  %2223 = vmatpush.msra.mxu3 %v1192_v61  ;;  %v997_v61 = vld [vmem:[%s5217_s25 + $0x28] sm:$0xff] }
 0x142   : > { %v1056_v63 = vld [vmem:[%s5217_s25 + $0x200] sm:$0xff]  ;;  %2165 = vmatpush.msra.mxu0 %v992_v62  ;;  %v1065_v62 = vld [vmem:[%s5217_s25 + $0x248] sm:$0xff] }
 0x143   : > { %v1120_v0 = vld [vmem:[%s5217_s25 + $0x400] sm:$0xff]  ;;  %2185 = vmatpush.msra.mxu1 %v1056_v63 }
 0x144   : > { %v1188_v1 = vld [vmem:[%s5217_s25 + $0x620] sm:$0xff]  ;;  %2205 = vmatpush.msra.mxu2 %v1120_v0  ;;  %v5407_v0 = vld [vmem:[%s6713_s29 + $0x18] sm:$0xff] }
 0x145   : > { %v1308_v2 = vld [vmem:[%s5217_s25 + $0x9e0] sm:$0xff]  ;;  %2224 = vmatpush.msra.mxu3 %v1188_v1  ;;  %2206 = vmatmul.f32.vlgmr.msra.gmra.mxu2 %v5392_v58 }
 0x146   : > { %v1372_v3 = vld [vmem:[%s5217_s25 + $0xbe0] sm:$0xff]  ;;  %2230 = vmatpush.msrb.mxu0 %v1308_v2  ;;  %2270 = vmatpush.msrb.mxu2 %v1053_v4  ;;  %v1061_v4 = vld [vmem:[%s5217_s25 + $0x228] sm:$0xff] }
 0x147   : > { %v1184_v5 = vld [vmem:[%s5217_s25 + $0x600] sm:$0xff]  ;;  %2250 = vmatpush.msrb.mxu1 %v1372_v3  ;;  %v993_v3 = vld [vmem:[%s5217_s25 + $0x8] sm:$0xff] }
 0x148   : > { %v1304_v6 = vld [vmem:[%s5217_s25 + $0x9c0] sm:$0xff]  ;;  %2225 = vmatpush.msra.mxu3 %v1184_v5  ;;  %2271 = vmatpush.msrb.mxu2 %v1049_v8  ;;  %v1309_v8 = vld [vmem:[%s5217_s25 + $0x9e8] sm:$0xff] }
 0x149   : > { %v1368_v7 = vld [vmem:[%s5217_s25 + $0xbc0] sm:$0xff]  ;;  %2231 = vmatpush.msrb.mxu0 %v1304_v6  ;;  %2226 = vmatmul.f32.vlgmr.msra.gmra.mxu3 %v5407_v0  ;;  %v1181_v6 = vld [vmem:[%s5217_s25 + $0x5e8] sm:$0xff] }
 0x14a   : > { %v1300_v10 = vld [vmem:[%s5217_s25 + $0x9a0] sm:$0xff]  ;;  %2251 = vmatpush.msrb.mxu1 %v1368_v7  ;;  %2290 = vmatpush.msrb.mxu3 %v1117_v9  ;;  %v1245_v7 = vld [vmem:[%s5217_s25 + $0x7e8] sm:$0xff] }
 0x14b   : > { %v1364_v11 = vld [vmem:[%s5217_s25 + $0xba0] sm:$0xff]  ;;  %2232 = vmatpush.msrb.mxu0 %v1300_v10  ;;  %2272 = vmatpush.msrb.mxu2 %v1045_v12  ;;  %v1057_v9 = vld [vmem:[%s5217_s25 + $0x208] sm:$0xff] }
 0x14c   : > { %v1296_v14 = vld [vmem:[%s5217_s25 + $0x980] sm:$0xff]  ;;  %2252 = vmatpush.msrb.mxu1 %v1364_v11  ;;  %2291 = vmatpush.msrb.mxu3 %v1113_v13  ;;  %v1177_v10 = vld [vmem:[%s5217_s25 + $0x5c8] sm:$0xff] }
 0x14d   : > { %v1360_v15 = vld [vmem:[%s5217_s25 + $0xb80] sm:$0xff]  ;;  %2233 = vmatpush.msrb.mxu0 %v1296_v14  ;;  %2273 = vmatpush.msrb.mxu2 %v1041_v16  ;;  %v1241_v11 = vld [vmem:[%s5217_s25 + $0x7c8] sm:$0xff] }
 0x14e   : > { %v1292_v18 = vld [vmem:[%s5217_s25 + $0x960] sm:$0xff]  ;;  %2253 = vmatpush.msrb.mxu1 %v1360_v15  ;;  %2292 = vmatpush.msrb.mxu3 %v1109_v17  ;;  %v1305_v12 = vld [vmem:[%s5217_s25 + $0x9c8] sm:$0xff] }
 0x14f   : > { %v1356_v19 = vld [vmem:[%s5217_s25 + $0xb60] sm:$0xff]  ;;  %2234 = vmatpush.msrb.mxu0 %v1292_v18  ;;  %2274 = vmatpush.msrb.mxu2 %v1037_v20  ;;  %v1373_v13 = vld [vmem:[%s5217_s25 + $0xbe8] sm:$0xff] }
 0x150   : > { %v1288_v22 = vld [vmem:[%s5217_s25 + $0x940] sm:$0xff]  ;;  %2254 = vmatpush.msrb.mxu1 %v1356_v19  ;;  %2293 = vmatpush.msrb.mxu3 %v1105_v21  ;;  %v1173_v14 = vld [vmem:[%s5217_s25 + $0x5a8] sm:$0xff] }
 0x151   : > { %v1352_v23 = vld [vmem:[%s5217_s25 + $0xb40] sm:$0xff]  ;;  %2235 = vmatpush.msrb.mxu0 %v1288_v22  ;;  %2275 = vmatpush.msrb.mxu2 %v1033_v24  ;;  %v1237_v15 = vld [vmem:[%s5217_s25 + $0x7a8] sm:$0xff] }
 0x152   : > { %v1284_v26 = vld [vmem:[%s5217_s25 + $0x920] sm:$0xff]  ;;  %2255 = vmatpush.msrb.mxu1 %v1352_v23  ;;  %2294 = vmatpush.msrb.mxu3 %v1101_v25  ;;  %v1301_v16 = vld [vmem:[%s5217_s25 + $0x9a8] sm:$0xff] }
 0x153   : > { %v1348_v27 = vld [vmem:[%s5217_s25 + $0xb20] sm:$0xff]  ;;  %2236 = vmatpush.msrb.mxu0 %v1284_v26  ;;  %2276 = vmatpush.msrb.mxu2 %v1029_v28  ;;  %v1369_v17 = vld [vmem:[%s5217_s25 + $0xbc8] sm:$0xff] }
 0x154   : > { %v1280_v30 = vld [vmem:[%s5217_s25 + $0x900] sm:$0xff]  ;;  %2256 = vmatpush.msrb.mxu1 %v1348_v27  ;;  %2295 = vmatpush.msrb.mxu3 %v1097_v29  ;;  %v1233_v19 = vld [vmem:[%s5217_s25 + $0x788] sm:$0xff] }
 0x155   : > { %v1344_v31 = vld [vmem:[%s5217_s25 + $0xb00] sm:$0xff]  ;;  %2237 = vmatpush.msrb.mxu0 %v1280_v30  ;;  %2277 = vmatpush.msrb.mxu2 %v1025_v32  ;;  %v1169_v20 = vld [vmem:[%s5217_s25 + $0x588] sm:$0xff] }
 0x156   : > { %v1276_v34 = vld [vmem:[%s5217_s25 + $0x8e0] sm:$0xff]  ;;  %2257 = vmatpush.msrb.mxu1 %v1344_v31  ;;  %2296 = vmatpush.msrb.mxu3 %v1093_v33  ;;  %v1297_v21 = vld [vmem:[%s5217_s25 + $0x988] sm:$0xff] }
 0x157   : > { %v1340_v35 = vld [vmem:[%s5217_s25 + $0xae0] sm:$0xff]  ;;  %2238 = vmatpush.msrb.mxu0 %v1276_v34  ;;  %2278 = vmatpush.msrb.mxu2 %v1021_v36  ;;  %v1365_v22 = vld [vmem:[%s5217_s25 + $0xba8] sm:$0xff] }
 0x158   : > { %v1272_v38 = vld [vmem:[%s5217_s25 + $0x8c0] sm:$0xff]  ;;  %2258 = vmatpush.msrb.mxu1 %v1340_v35  ;;  %2297 = vmatpush.msrb.mxu3 %v1089_v37  ;;  %v1165_v24 = vld [vmem:[%s5217_s25 + $0x568] sm:$0xff] }
 0x159   : > { %v1336_v39 = vld [vmem:[%s5217_s25 + $0xac0] sm:$0xff]  ;;  %2239 = vmatpush.msrb.mxu0 %v1272_v38  ;;  %2279 = vmatpush.msrb.mxu2 %v1017_v40  ;;  %v1229_v25 = vld [vmem:[%s5217_s25 + $0x768] sm:$0xff] }
 0x15a   : > { %v1268_v42 = vld [vmem:[%s5217_s25 + $0x8a0] sm:$0xff]  ;;  %2259 = vmatpush.msrb.mxu1 %v1336_v39  ;;  %2298 = vmatpush.msrb.mxu3 %v1085_v41  ;;  %v1293_v26 = vld [vmem:[%s5217_s25 + $0x968] sm:$0xff] }
 0x15b   : > { %v1332_v43 = vld [vmem:[%s5217_s25 + $0xaa0] sm:$0xff]  ;;  %2240 = vmatpush.msrb.mxu0 %v1268_v42  ;;  %2280 = vmatpush.msrb.mxu2 %v1013_v44  ;;  %v1361_v27 = vld [vmem:[%s5217_s25 + $0xb88] sm:$0xff] }
 0x15c   : > { %v1264_v46 = vld [vmem:[%s5217_s25 + $0x880] sm:$0xff]  ;;  %2260 = vmatpush.msrb.mxu1 %v1332_v43  ;;  %2299 = vmatpush.msrb.mxu3 %v1081_v45  ;;  %v1161_v28 = vld [vmem:[%s5217_s25 + $0x548] sm:$0xff] }
 0x15d   : > { %v1328_v47 = vld [vmem:[%s5217_s25 + $0xa80] sm:$0xff]  ;;  %2241 = vmatpush.msrb.mxu0 %v1264_v46  ;;  %2281 = vmatpush.msrb.mxu2 %v1009_v48  ;;  %v1225_v29 = vld [vmem:[%s5217_s25 + $0x748] sm:$0xff] }
 0x15e   : > { %v1260_v50 = vld [vmem:[%s5217_s25 + $0x860] sm:$0xff]  ;;  %2261 = vmatpush.msrb.mxu1 %v1328_v47  ;;  %2300 = vmatpush.msrb.mxu3 %v1077_v49  ;;  %v1289_v30 = vld [vmem:[%s5217_s25 + $0x948] sm:$0xff] }
 0x15f   : > { %v1324_v51 = vld [vmem:[%s5217_s25 + $0xa60] sm:$0xff]  ;;  %2242 = vmatpush.msrb.mxu0 %v1260_v50  ;;  %2282 = vmatpush.msrb.mxu2 %v1005_v52  ;;  %v1357_v31 = vld [vmem:[%s5217_s25 + $0xb68] sm:$0xff] }
 0x160   : > { %v1256_v54 = vld [vmem:[%s5217_s25 + $0x840] sm:$0xff]  ;;  %2262 = vmatpush.msrb.mxu1 %v1324_v51  ;;  %2301 = vmatpush.msrb.mxu3 %v1073_v53  ;;  %v1157_v32 = vld [vmem:[%s5217_s25 + $0x528] sm:$0xff] }
 0x161   : > { %v1320_v55 = vld [vmem:[%s5217_s25 + $0xa40] sm:$0xff]  ;;  %2243 = vmatpush.msrb.mxu0 %v1256_v54  ;;  %2283 = vmatpush.msrb.mxu2 %v1001_v56  ;;  %v1221_v33 = vld [vmem:[%s5217_s25 + $0x728] sm:$0xff] }
 0x162   : > { %v1252_v59 = vld [vmem:[%s5217_s25 + $0x820] sm:$0xff]  ;;  %2263 = vmatpush.msrb.mxu1 %v1320_v55  ;;  %2302 = vmatpush.msrb.mxu3 %v1069_v57  ;;  %v1285_v34 = vld [vmem:[%s5217_s25 + $0x928] sm:$0xff] }
 0x163   : > { %v1316_v60 = vld [vmem:[%s5217_s25 + $0xa20] sm:$0xff]  ;;  %2244 = vmatpush.msrb.mxu0 %v1252_v59  ;;  %2284 = vmatpush.msrb.mxu2 %v997_v61  ;;  %v1353_v35 = vld [vmem:[%s5217_s25 + $0xb48] sm:$0xff] }
 0x164   : > { %v5401_v63 = vld [vmem:[%s6713_s29] sm:$0xff]  ;;  %2264 = vmatpush.msrb.mxu1 %v1316_v60  ;;  %2303 = vmatpush.msrb.mxu3 %v1065_v62  ;;  %v5417_v5 = vld [vmem:[%s6713_s29 + $0x8] sm:$0xff] }
 0x165   : > { %v1248_v1 = vld [vmem:[%s5217_s25 + $0x800] sm:$0xff]  ;;  %2166 = vmatmul.f32.vlgmr.msra.gmra.mxu0 %v5401_v63  ;;  %2285 = vmatpush.msrb.mxu2 %v993_v3  ;;  %v1153_v36 = vld [vmem:[%s5217_s25 + $0x508] sm:$0xff] }
 0x166   : > { %v1312_v2 = vld [vmem:[%s5217_s25 + $0xa00] sm:$0xff]  ;;  %2245 = vmatpush.msrb.mxu0 %v1248_v1  ;;  %2304 = vmatpush.msrb.mxu3 %v1061_v4  ;;  %v1217_v37 = vld [vmem:[%s5217_s25 + $0x708] sm:$0xff] }
 0x167   : > { %2265 = vmatpush.msrb.mxu1 %v1312_v2  ;;  %2350 = vmatpush.msra.mxu2 %v1309_v8  ;;  %v5436_v18 = vld [vmem:[%s6713_s29 + $0x20] sm:$0xff]  ;;  %v5445_v23 = vld [vmem:[%s6713_s29 + $0x28] sm:$0xff] }
 0x168   : > { %2186 = vmatmul.f32.vlgmr.msra.gmra.mxu1 %v5417_v5  ;;  %2310 = vmatpush.msra.mxu0 %v1181_v6  ;;  %v1281_v38 = vld [vmem:[%s5217_s25 + $0x908] sm:$0xff] }
 0x169   : > { %2330 = vmatpush.msra.mxu1 %v1245_v7  ;;  %2305 = vmatpush.msrb.mxu3 %v1057_v9  ;;  %v1349_v39 = vld [vmem:[%s5217_s25 + $0xb28] sm:$0xff] }
 0x16a   : > { %2311 = vmatpush.msra.mxu0 %v1177_v10  ;;  %2351 = vmatpush.msra.mxu2 %v1305_v12  ;;  %v1149_v40 = vld [vmem:[%s5217_s25 + $0x4e8] sm:$0xff]  ;;  %v1054_v12 = vld [vmem:[%s5217_s25 + $0x1f0] sm:$0xff] }
 0x16b   : > { %2331 = vmatpush.msra.mxu1 %v1241_v11  ;;  %2370 = vmatpush.msra.mxu3 %v1373_v13  ;;  %v1213_v41 = vld [vmem:[%s5217_s25 + $0x6e8] sm:$0xff]  ;;  %v1118_v13 = vld [vmem:[%s5217_s25 + $0x3f0] sm:$0xff] }
 0x16c   : > { %2312 = vmatpush.msra.mxu0 %v1173_v14  ;;  %2352 = vmatpush.msra.mxu2 %v1301_v16  ;;  %v1277_v42 = vld [vmem:[%s5217_s25 + $0x8e8] sm:$0xff]  ;;  %v1182_v14 = vld [vmem:[%s5217_s25 + $0x5f0] sm:$0xff] }
 0x16d   : > { %2332 = vmatpush.msra.mxu1 %v1237_v15  ;;  %2371 = vmatpush.msra.mxu3 %v1369_v17  ;;  %v1345_v43 = vld [vmem:[%s5217_s25 + $0xb08] sm:$0xff]  ;;  %v1050_v16 = vld [vmem:[%s5217_s25 + $0x1d0] sm:$0xff] }
 0x16e   : > { %2246 = vmatmul.f32.vlgmr.msrb.gmra.mxu0 %v5436_v18  ;;  %2353 = vmatpush.msra.mxu2 %v1297_v21  ;;  %v1145_v44 = vld [vmem:[%s5217_s25 + $0x4c8] sm:$0xff]  ;;  %v1114_v17 = vld [vmem:[%s5217_s25 + $0x3d0] sm:$0xff] }
 0x16f   : > { %2333 = vmatpush.msra.mxu1 %v1233_v19  ;;  %2313 = vmatpush.msra.mxu0 %v1169_v20  ;;  %v1209_v45 = vld [vmem:[%s5217_s25 + $0x6c8] sm:$0xff]  ;;  %v1178_v19 = vld [vmem:[%s5217_s25 + $0x5d0] sm:$0xff] }
 0x170   : > { %2372 = vmatpush.msra.mxu3 %v1365_v22  ;;  %2266 = vmatmul.f32.vlgmr.msrb.gmra.mxu1 %v5445_v23  ;;  %v1273_v46 = vld [vmem:[%s5217_s25 + $0x8c8] sm:$0xff]  ;;  %v1246_v20 = vld [vmem:[%s5217_s25 + $0x7f0] sm:$0xff] }
 0x171   : > { %2314 = vmatpush.msra.mxu0 %v1165_v24  ;;  %2334 = vmatpush.msra.mxu1 %v1229_v25  ;;  %v1341_v47 = vld [vmem:[%s5217_s25 + $0xae8] sm:$0xff]  ;;  %v1046_v21 = vld [vmem:[%s5217_s25 + $0x1b0] sm:$0xff] }
 0x172   : > { %2354 = vmatpush.msra.mxu2 %v1293_v26  ;;  %2373 = vmatpush.msra.mxu3 %v1361_v27  ;;  %v1141_v48 = vld [vmem:[%s5217_s25 + $0x4a8] sm:$0xff]  ;;  %v1110_v22 = vld [vmem:[%s5217_s25 + $0x3b0] sm:$0xff] }
 0x173   : > { %2315 = vmatpush.msra.mxu0 %v1161_v28  ;;  %2335 = vmatpush.msra.mxu1 %v1225_v29  ;;  %v1205_v49 = vld [vmem:[%s5217_s25 + $0x6a8] sm:$0xff]  ;;  %v1174_v24 = vld [vmem:[%s5217_s25 + $0x5b0] sm:$0xff] }
 0x174   : > { %2355 = vmatpush.msra.mxu2 %v1289_v30  ;;  %2374 = vmatpush.msra.mxu3 %v1357_v31  ;;  %v1269_v50 = vld [vmem:[%s5217_s25 + $0x8a8] sm:$0xff]  ;;  %v1242_v25 = vld [vmem:[%s5217_s25 + $0x7d0] sm:$0xff] }
 0x175   : > { %2316 = vmatpush.msra.mxu0 %v1157_v32  ;;  %2336 = vmatpush.msra.mxu1 %v1221_v33  ;;  %v1337_v51 = vld [vmem:[%s5217_s25 + $0xac8] sm:$0xff]  ;;  %v1042_v26 = vld [vmem:[%s5217_s25 + $0x190] sm:$0xff] }
 0x176   : > { %2356 = vmatpush.msra.mxu2 %v1285_v34  ;;  %2375 = vmatpush.msra.mxu3 %v1353_v35  ;;  %v1137_v52 = vld [vmem:[%s5217_s25 + $0x488] sm:$0xff]  ;;  %v1106_v27 = vld [vmem:[%s5217_s25 + $0x390] sm:$0xff] }
 0x177   : > { %2317 = vmatpush.msra.mxu0 %v1153_v36  ;;  %2337 = vmatpush.msra.mxu1 %v1217_v37  ;;  %v1201_v53 = vld [vmem:[%s5217_s25 + $0x688] sm:$0xff]  ;;  %v1170_v28 = vld [vmem:[%s5217_s25 + $0x590] sm:$0xff] }
 0x178   : > { %2357 = vmatpush.msra.mxu2 %v1281_v38  ;;  %2376 = vmatpush.msra.mxu3 %v1349_v39  ;;  %v1265_v54 = vld [vmem:[%s5217_s25 + $0x888] sm:$0xff]  ;;  %v1238_v29 = vld [vmem:[%s5217_s25 + $0x7b0] sm:$0xff] }
 0x179   : > { %2318 = vmatpush.msra.mxu0 %v1149_v40  ;;  %2338 = vmatpush.msra.mxu1 %v1213_v41  ;;  %v1333_v55 = vld [vmem:[%s5217_s25 + $0xaa8] sm:$0xff]  ;;  %v1038_v30 = vld [vmem:[%s5217_s25 + $0x170] sm:$0xff] }
 0x17a   : > { %2358 = vmatpush.msra.mxu2 %v1277_v42  ;;  %2377 = vmatpush.msra.mxu3 %v1345_v43  ;;  %v1133_v56 = vld [vmem:[%s5217_s25 + $0x468] sm:$0xff]  ;;  %v1102_v31 = vld [vmem:[%s5217_s25 + $0x370] sm:$0xff] }
 0x17b   : > { %2319 = vmatpush.msra.mxu0 %v1145_v44  ;;  %2339 = vmatpush.msra.mxu1 %v1209_v45  ;;  %v1197_v57 = vld [vmem:[%s5217_s25 + $0x668] sm:$0xff]  ;;  %v1166_v32 = vld [vmem:[%s5217_s25 + $0x570] sm:$0xff] }
 0x17c   : > { %2359 = vmatpush.msra.mxu2 %v1273_v46  ;;  %2378 = vmatpush.msra.mxu3 %v1341_v47  ;;  %v1261_v59 = vld [vmem:[%s5217_s25 + $0x868] sm:$0xff]  ;;  %v1234_v33 = vld [vmem:[%s5217_s25 + $0x790] sm:$0xff] }
 0x17d   : > { %2320 = vmatpush.msra.mxu0 %v1141_v48  ;;  %2340 = vmatpush.msra.mxu1 %v1205_v49  ;;  %v1329_v60 = vld [vmem:[%s5217_s25 + $0xa88] sm:$0xff]  ;;  %v1034_v34 = vld [vmem:[%s5217_s25 + $0x150] sm:$0xff] }
 0x17e   : > { %2360 = vmatpush.msra.mxu2 %v1269_v50  ;;  %2379 = vmatpush.msra.mxu3 %v1337_v51  ;;  %v1129_v61 = vld [vmem:[%s5217_s25 + $0x448] sm:$0xff]  ;;  %v1098_v35 = vld [vmem:[%s5217_s25 + $0x350] sm:$0xff] }
 0x17f   : > { %2321 = vmatpush.msra.mxu0 %v1137_v52  ;;  %2341 = vmatpush.msra.mxu1 %v1201_v53  ;;  %v1193_v62 = vld [vmem:[%s5217_s25 + $0x648] sm:$0xff]  ;;  %v1162_v36 = vld [vmem:[%s5217_s25 + $0x550] sm:$0xff] }
 0x180   : > { %2361 = vmatpush.msra.mxu2 %v1265_v54  ;;  %2380 = vmatpush.msra.mxu3 %v1333_v55  ;;  %v1257_v1 = vld [vmem:[%s5217_s25 + $0x848] sm:$0xff]  ;;  %v1230_v37 = vld [vmem:[%s5217_s25 + $0x770] sm:$0xff] }
 0x181   : > { %2286 = vmatmul.f32.vlgmr.msrb.gmra.mxu2 %v5401_v63  ;;  %2322 = vmatpush.msra.mxu0 %v1133_v56  ;;  %v1325_v2 = vld [vmem:[%s5217_s25 + $0xa68] sm:$0xff]  ;;  %v1030_v38 = vld [vmem:[%s5217_s25 + $0x130] sm:$0xff] }
 0x182   : > { %2342 = vmatpush.msra.mxu1 %v1197_v57  ;;  %2362 = vmatpush.msra.mxu2 %v1261_v59  ;;  %v1125_v3 = vld [vmem:[%s5217_s25 + $0x428] sm:$0xff]  ;;  %v1094_v39 = vld [vmem:[%s5217_s25 + $0x330] sm:$0xff] }
 0x183   : > { %2381 = vmatpush.msra.mxu3 %v1329_v60  ;;  %2323 = vmatpush.msra.mxu0 %v1129_v61  ;;  %v1189_v4 = vld [vmem:[%s5217_s25 + $0x628] sm:$0xff]  ;;  %v1158_v40 = vld [vmem:[%s5217_s25 + $0x530] sm:$0xff] }
 0x184   : > { %2306 = vmatmul.f32.vlgmr.msrb.gmra.mxu3 %v5417_v5  ;;  %2343 = vmatpush.msra.mxu1 %v1193_v62  ;;  %v1253_v6 = vld [vmem:[%s5217_s25 + $0x828] sm:$0xff]  ;;  %v1226_v41 = vld [vmem:[%s5217_s25 + $0x750] sm:$0xff] }
 0x185   : > { %v1321_v7 = vld [vmem:[%s5217_s25 + $0xa48] sm:$0xff]  ;;  %2363 = vmatpush.msra.mxu2 %v1257_v1  ;;  %2382 = vmatpush.msra.mxu3 %v1325_v2  ;;  %v1026_v42 = vld [vmem:[%s5217_s25 + $0x110] sm:$0xff] }
 0x186   : > { %v1121_v8 = vld [vmem:[%s5217_s25 + $0x408] sm:$0xff]  ;;  %2324 = vmatpush.msra.mxu0 %v1125_v3  ;;  %2344 = vmatpush.msra.mxu1 %v1189_v4  ;;  %v1090_v43 = vld [vmem:[%s5217_s25 + $0x310] sm:$0xff] }
 0x187   : > { %v1185_v9 = vld [vmem:[%s5217_s25 + $0x608] sm:$0xff]  ;;  %2364 = vmatpush.msra.mxu2 %v1253_v6  ;;  %2383 = vmatpush.msra.mxu3 %v1321_v7  ;;  %v1154_v44 = vld [vmem:[%s5217_s25 + $0x510] sm:$0xff] }
 0x188   : > { %v1249_v10 = vld [vmem:[%s5217_s25 + $0x808] sm:$0xff]  ;;  %2325 = vmatpush.msra.mxu0 %v1121_v8  ;;  %2345 = vmatpush.msra.mxu1 %v1185_v9  ;;  %v1222_v45 = vld [vmem:[%s5217_s25 + $0x730] sm:$0xff] }
 0x189   : > { %v1317_v11 = vld [vmem:[%s5217_s25 + $0xa28] sm:$0xff]  ;;  %2365 = vmatpush.msra.mxu2 %v1249_v10  ;;  %2326 = vmatmul.f32.vlgmr.msra.gmra.mxu0 %v5392_v58  ;;  %v1022_v46 = vld [vmem:[%s5217_s25 + $0xf0] sm:$0xff] }
 0x18a   : > { %2384 = vmatpush.msra.mxu3 %v1317_v11  ;;  %v1313_v15 = vld [vmem:[%s5217_s25 + $0xa08] sm:$0xff]  ;;  %2366 = vmatmul.f32.vlgmr.msra.gmra.mxu2 %v5436_v18  ;;  %v1086_v47 = vld [vmem:[%s5217_s25 + $0x2f0] sm:$0xff] }
 0x18b   : > { %2390 = vmatpush.msrb.mxu0 %v1054_v12  ;;  %2410 = vmatpush.msrb.mxu1 %v1118_v13  ;;  %v1150_v48 = vld [vmem:[%s5217_s25 + $0x4f0] sm:$0xff] }
 0x18c   : > { %2430 = vmatpush.msrb.mxu2 %v1182_v14  ;;  %2385 = vmatpush.msra.mxu3 %v1313_v15  ;;  %v1218_v49 = vld [vmem:[%s5217_s25 + $0x710] sm:$0xff] }
 0x18d   : > { %2386 = vmatmul.f32.vlgmr.msra.gmra.mxu3 %v5445_v23  ;;  %2391 = vmatpush.msrb.mxu0 %v1050_v16  ;;  %v1018_v50 = vld [vmem:[%s5217_s25 + $0xd0] sm:$0xff] }
 0x18e   : > { %2411 = vmatpush.msrb.mxu1 %v1114_v17  ;;  %2431 = vmatpush.msrb.mxu2 %v1178_v19  ;;  %v1082_v51 = vld [vmem:[%s5217_s25 + $0x2d0] sm:$0xff] }
 0x18f   : > { %2450 = vmatpush.msrb.mxu3 %v1246_v20  ;;  %2346 = vmatmul.f32.vlgmr.msra.gmra.mxu1 %v5407_v0  ;;  %v1146_v52 = vld [vmem:[%s5217_s25 + $0x4d0] sm:$0xff] }
 0x190   : > { %2392 = vmatpush.msrb.mxu0 %v1046_v21  ;;  %2412 = vmatpush.msrb.mxu1 %v1110_v22  ;;  %v1214_v53 = vld [vmem:[%s5217_s25 + $0x6f0] sm:$0xff]  ;;  %v1055_v21 = vld [vmem:[%s5217_s25 + $0x1f8] sm:$0xff] }
 0x191   : > { %2432 = vmatpush.msrb.mxu2 %v1174_v24  ;;  %2451 = vmatpush.msrb.mxu3 %v1242_v25  ;;  %v1014_v54 = vld [vmem:[%s5217_s25 + $0xb0] sm:$0xff] }
 0x192   : > { %2393 = vmatpush.msrb.mxu0 %v1042_v26  ;;  %2413 = vmatpush.msrb.mxu1 %v1106_v27  ;;  %v1078_v55 = vld [vmem:[%s5217_s25 + $0x2b0] sm:$0xff]  ;;  %v1051_v26 = vld [vmem:[%s5217_s25 + $0x1d8] sm:$0xff] }
 0x193   : > { %2433 = vmatpush.msrb.mxu2 %v1170_v28  ;;  %2452 = vmatpush.msrb.mxu3 %v1238_v29  ;;  %v1142_v56 = vld [vmem:[%s5217_s25 + $0x4b0] sm:$0xff]  ;;  %v1119_v27 = vld [vmem:[%s5217_s25 + $0x3f8] sm:$0xff] }
 0x194   : > { %2394 = vmatpush.msrb.mxu0 %v1038_v30  ;;  %2414 = vmatpush.msrb.mxu1 %v1102_v31  ;;  %v1210_v57 = vld [vmem:[%s5217_s25 + $0x6d0] sm:$0xff]  ;;  %v1047_v30 = vld [vmem:[%s5217_s25 + $0x1b8] sm:$0xff] }
 0x195   : > { %2434 = vmatpush.msrb.mxu2 %v1166_v32  ;;  %2453 = vmatpush.msrb.mxu3 %v1234_v33  ;;  %v1010_v59 = vld [vmem:[%s5217_s25 + $0x90] sm:$0xff]  ;;  %v1115_v31 = vld [vmem:[%s5217_s25 + $0x3d8] sm:$0xff] }
 0x196   : > { %2395 = vmatpush.msrb.mxu0 %v1034_v34  ;;  %2415 = vmatpush.msrb.mxu1 %v1098_v35  ;;  %v1074_v60 = vld [vmem:[%s5217_s25 + $0x290] sm:$0xff]  ;;  %v1043_v34 = vld [vmem:[%s5217_s25 + $0x198] sm:$0xff] }
 0x197   : > { %2435 = vmatpush.msrb.mxu2 %v1162_v36  ;;  %2454 = vmatpush.msrb.mxu3 %v1230_v37  ;;  %v1138_v61 = vld [vmem:[%s5217_s25 + $0x490] sm:$0xff]  ;;  %v1111_v35 = vld [vmem:[%s5217_s25 + $0x3b8] sm:$0xff] }
 0x198   : > { %2396 = vmatpush.msrb.mxu0 %v1030_v38  ;;  %2416 = vmatpush.msrb.mxu1 %v1094_v39  ;;  %v1206_v62 = vld [vmem:[%s5217_s25 + $0x6b0] sm:$0xff]  ;;  %v1039_v38 = vld [vmem:[%s5217_s25 + $0x178] sm:$0xff] }
 0x199   : > { %2436 = vmatpush.msrb.mxu2 %v1158_v40  ;;  %2455 = vmatpush.msrb.mxu3 %v1226_v41  ;;  %v1006_v1 = vld [vmem:[%s5217_s25 + $0x70] sm:$0xff]  ;;  %v1107_v39 = vld [vmem:[%s5217_s25 + $0x398] sm:$0xff] }
 0x19a   : > { %2397 = vmatpush.msrb.mxu0 %v1026_v42  ;;  %2417 = vmatpush.msrb.mxu1 %v1090_v43  ;;  %v1070_v2 = vld [vmem:[%s5217_s25 + $0x270] sm:$0xff]  ;;  %v1035_v42 = vld [vmem:[%s5217_s25 + $0x158] sm:$0xff] }
 0x19b   : > { %2437 = vmatpush.msrb.mxu2 %v1154_v44  ;;  %2456 = vmatpush.msrb.mxu3 %v1222_v45  ;;  %v1134_v3 = vld [vmem:[%s5217_s25 + $0x470] sm:$0xff]  ;;  %v1103_v43 = vld [vmem:[%s5217_s25 + $0x378] sm:$0xff] }
 0x19c   : > { %2398 = vmatpush.msrb.mxu0 %v1022_v46  ;;  %2418 = vmatpush.msrb.mxu1 %v1086_v47  ;;  %v1202_v4 = vld [vmem:[%s5217_s25 + $0x690] sm:$0xff]  ;;  %v1031_v46 = vld [vmem:[%s5217_s25 + $0x138] sm:$0xff] }
 0x19d   : > { %2438 = vmatpush.msrb.mxu2 %v1150_v48  ;;  %2457 = vmatpush.msrb.mxu3 %v1218_v49  ;;  %v1002_v6 = vld [vmem:[%s5217_s25 + $0x50] sm:$0xff]  ;;  %v1099_v47 = vld [vmem:[%s5217_s25 + $0x358] sm:$0xff] }
 0x19e   : > { %2399 = vmatpush.msrb.mxu0 %v1018_v50  ;;  %2419 = vmatpush.msrb.mxu1 %v1082_v51  ;;  %v1066_v7 = vld [vmem:[%s5217_s25 + $0x250] sm:$0xff]  ;;  %v1027_v50 = vld [vmem:[%s5217_s25 + $0x118] sm:$0xff] }
 0x19f   : > { %2439 = vmatpush.msrb.mxu2 %v1146_v52  ;;  %2458 = vmatpush.msrb.mxu3 %v1214_v53  ;;  %v1130_v8 = vld [vmem:[%s5217_s25 + $0x450] sm:$0xff]  ;;  %v1095_v51 = vld [vmem:[%s5217_s25 + $0x338] sm:$0xff] }
 0x1a0   : > { %2400 = vmatpush.msrb.mxu0 %v1014_v54  ;;  %2420 = vmatpush.msrb.mxu1 %v1078_v55  ;;  %v1198_v9 = vld [vmem:[%s5217_s25 + $0x670] sm:$0xff]  ;;  %v1023_v54 = vld [vmem:[%s5217_s25 + $0xf8] sm:$0xff] }
 0x1a1   : > { %2440 = vmatpush.msrb.mxu2 %v1142_v56  ;;  %2459 = vmatpush.msrb.mxu3 %v1210_v57  ;;  %v998_v10 = vld [vmem:[%s5217_s25 + $0x30] sm:$0xff]  ;;  %v1091_v55 = vld [vmem:[%s5217_s25 + $0x318] sm:$0xff] }
 0x1a2   : > { %2401 = vmatpush.msrb.mxu0 %v1010_v59  ;;  %2421 = vmatpush.msrb.mxu1 %v1074_v60  ;;  %v1062_v11 = vld [vmem:[%s5217_s25 + $0x230] sm:$0xff]  ;;  %v1019_v59 = vld [vmem:[%s5217_s25 + $0xd8] sm:$0xff] }
 0x1a3   : > { %2441 = vmatpush.msrb.mxu2 %v1138_v61  ;;  %2460 = vmatpush.msrb.mxu3 %v1206_v62  ;;  %v1126_v12 = vld [vmem:[%s5217_s25 + $0x430] sm:$0xff]  ;;  %v1087_v60 = vld [vmem:[%s5217_s25 + $0x2f8] sm:$0xff] }
 0x1a4   : > { %2402 = vmatpush.msrb.mxu0 %v1006_v1  ;;  %2422 = vmatpush.msrb.mxu1 %v1070_v2  ;;  %v1194_v13 = vld [vmem:[%s5217_s25 + $0x650] sm:$0xff]  ;;  %v1015_v1 = vld [vmem:[%s5217_s25 + $0xb8] sm:$0xff] }
 0x1a5   : > { %2442 = vmatpush.msrb.mxu2 %v1134_v3  ;;  %2461 = vmatpush.msrb.mxu3 %v1202_v4  ;;  %v994_v14 = vld [vmem:[%s5217_s25 + $0x10] sm:$0xff]  ;;  %v1083_v2 = vld [vmem:[%s5217_s25 + $0x2d8] sm:$0xff] }
 0x1a6   : > { %2403 = vmatpush.msrb.mxu0 %v1002_v6  ;;  %2423 = vmatpush.msrb.mxu1 %v1066_v7  ;;  %v1058_v15 = vld [vmem:[%s5217_s25 + $0x210] sm:$0xff]  ;;  %v1011_v6 = vld [vmem:[%s5217_s25 + $0x98] sm:$0xff] }
 0x1a7   : > { %2443 = vmatpush.msrb.mxu2 %v1130_v8  ;;  %2462 = vmatpush.msrb.mxu3 %v1198_v9  ;;  %v1122_v16 = vld [vmem:[%s5217_s25 + $0x410] sm:$0xff]  ;;  %v1079_v7 = vld [vmem:[%s5217_s25 + $0x2b8] sm:$0xff] }
 0x1a8   : > { %2404 = vmatpush.msrb.mxu0 %v998_v10  ;;  %2424 = vmatpush.msrb.mxu1 %v1062_v11  ;;  %v1190_v17 = vld [vmem:[%s5217_s25 + $0x630] sm:$0xff]  ;;  %v1007_v10 = vld [vmem:[%s5217_s25 + $0x78] sm:$0xff] }
 0x1a9   : > { %2444 = vmatpush.msrb.mxu2 %v1126_v12  ;;  %2463 = vmatpush.msrb.mxu3 %v1194_v13  ;;  %v1310_v19 = vld [vmem:[%s5217_s25 + $0x9f0] sm:$0xff]  ;;  %v1075_v11 = vld [vmem:[%s5217_s25 + $0x298] sm:$0xff] }
 0x1aa   : > { %v1374_v20 = vld [vmem:[%s5217_s25 + $0xbf0] sm:$0xff]  ;;  %2405 = vmatpush.msrb.mxu0 %v994_v14  ;;  %2425 = vmatpush.msrb.mxu1 %v1058_v15  ;;  %v1003_v13 = vld [vmem:[%s5217_s25 + $0x58] sm:$0xff] }
 0x1ab   : > { %v1186_v22 = vld [vmem:[%s5217_s25 + $0x610] sm:$0xff]  ;;  %2445 = vmatpush.msrb.mxu2 %v1122_v16  ;;  %2464 = vmatpush.msrb.mxu3 %v1190_v17  ;;  %v1071_v14 = vld [vmem:[%s5217_s25 + $0x278] sm:$0xff] }
 0x1ac   : > { %v1306_v24 = vld [vmem:[%s5217_s25 + $0x9d0] sm:$0xff]  ;;  %2470 = vmatpush.msra.mxu0 %v1310_v19  ;;  %2490 = vmatpush.msra.mxu1 %v1374_v20  ;;  %v1067_v16 = vld [vmem:[%s5217_s25 + $0x258] sm:$0xff] }
 0x1ad   : > { %v1370_v25 = vld [vmem:[%s5217_s25 + $0xbd0] sm:$0xff]  ;;  %2510 = vmatpush.msra.mxu2 %v1055_v21  ;;  %2465 = vmatpush.msrb.mxu3 %v1186_v22  ;;  %v995_v20 = vld [vmem:[%s5217_s25 + $0x18] sm:$0xff] }
 0x1ae   : > { %v1302_v28 = vld [vmem:[%s5217_s25 + $0x9b0] sm:$0xff]  ;;  %2471 = vmatpush.msra.mxu0 %v1306_v24  ;;  %2491 = vmatpush.msra.mxu1 %v1370_v25  ;;  %v1063_v21 = vld [vmem:[%s5217_s25 + $0x238] sm:$0xff] }
 0x1af   : > { %v1366_v29 = vld [vmem:[%s5217_s25 + $0xbb0] sm:$0xff]  ;;  %2511 = vmatpush.msra.mxu2 %v1051_v26  ;;  %2530 = vmatpush.msra.mxu3 %v1119_v27  ;;  %v1247_v22 = vld [vmem:[%s5217_s25 + $0x7f8] sm:$0xff] }
 0x1b0   : > { %v1298_v32 = vld [vmem:[%s5217_s25 + $0x990] sm:$0xff]  ;;  %2472 = vmatpush.msra.mxu0 %v1302_v28  ;;  %2492 = vmatpush.msra.mxu1 %v1366_v29  ;;  %v1183_v24 = vld [vmem:[%s5217_s25 + $0x5f8] sm:$0xff] }
 0x1b1   : > { %v1362_v33 = vld [vmem:[%s5217_s25 + $0xb90] sm:$0xff]  ;;  %2512 = vmatpush.msra.mxu2 %v1047_v30  ;;  %2531 = vmatpush.msra.mxu3 %v1115_v31  ;;  %v1311_v25 = vld [vmem:[%s5217_s25 + $0x9f8] sm:$0xff] }
 0x1b2   : > { %v1294_v36 = vld [vmem:[%s5217_s25 + $0x970] sm:$0xff]  ;;  %2473 = vmatpush.msra.mxu0 %v1298_v32  ;;  %2493 = vmatpush.msra.mxu1 %v1362_v33  ;;  %v1059_v26 = vld [vmem:[%s5217_s25 + $0x218] sm:$0xff] }
 0x1b3   : > { %v1358_v37 = vld [vmem:[%s5217_s25 + $0xb70] sm:$0xff]  ;;  %2513 = vmatpush.msra.mxu2 %v1043_v34  ;;  %2532 = vmatpush.msra.mxu3 %v1111_v35  ;;  %v1179_v27 = vld [vmem:[%s5217_s25 + $0x5d8] sm:$0xff] }
 0x1b4   : > { %v1290_v40 = vld [vmem:[%s5217_s25 + $0x950] sm:$0xff]  ;;  %2474 = vmatpush.msra.mxu0 %v1294_v36  ;;  %2494 = vmatpush.msra.mxu1 %v1358_v37  ;;  %v1243_v28 = vld [vmem:[%s5217_s25 + $0x7d8] sm:$0xff] }
 0x1b5   : > { %v1354_v41 = vld [vmem:[%s5217_s25 + $0xb50] sm:$0xff]  ;;  %2514 = vmatpush.msra.mxu2 %v1039_v38  ;;  %2533 = vmatpush.msra.mxu3 %v1107_v39  ;;  %v1307_v29 = vld [vmem:[%s5217_s25 + $0x9d8] sm:$0xff] }
 0x1b6   : > { %v1286_v44 = vld [vmem:[%s5217_s25 + $0x930] sm:$0xff]  ;;  %2475 = vmatpush.msra.mxu0 %v1290_v40  ;;  %2495 = vmatpush.msra.mxu1 %v1354_v41  ;;  %v1375_v30 = vld [vmem:[%s5217_s25 + $0xbf8] sm:$0xff] }
 0x1b7   : > { %v1350_v45 = vld [vmem:[%s5217_s25 + $0xb30] sm:$0xff]  ;;  %2515 = vmatpush.msra.mxu2 %v1035_v42  ;;  %2534 = vmatpush.msra.mxu3 %v1103_v43  ;;  %v1175_v31 = vld [vmem:[%s5217_s25 + $0x5b8] sm:$0xff] }
 0x1b8   : > { %v1282_v48 = vld [vmem:[%s5217_s25 + $0x910] sm:$0xff]  ;;  %2476 = vmatpush.msra.mxu0 %v1286_v44  ;;  %2496 = vmatpush.msra.mxu1 %v1350_v45  ;;  %v1239_v32 = vld [vmem:[%s5217_s25 + $0x7b8] sm:$0xff] }
 0x1b9   : > { %v1346_v49 = vld [vmem:[%s5217_s25 + $0xb10] sm:$0xff]  ;;  %2516 = vmatpush.msra.mxu2 %v1031_v46  ;;  %2535 = vmatpush.msra.mxu3 %v1099_v47  ;;  %v1371_v33 = vld [vmem:[%s5217_s25 + $0xbd8] sm:$0xff] }
 0x1ba   : > { %v1278_v52 = vld [vmem:[%s5217_s25 + $0x8f0] sm:$0xff]  ;;  %2477 = vmatpush.msra.mxu0 %v1282_v48  ;;  %2497 = vmatpush.msra.mxu1 %v1346_v49  ;;  %v1171_v34 = vld [vmem:[%s5217_s25 + $0x598] sm:$0xff] }
 0x1bb   : > { %v1342_v53 = vld [vmem:[%s5217_s25 + $0xaf0] sm:$0xff]  ;;  %2517 = vmatpush.msra.mxu2 %v1027_v50  ;;  %2536 = vmatpush.msra.mxu3 %v1095_v51  ;;  %v1235_v35 = vld [vmem:[%s5217_s25 + $0x798] sm:$0xff] }
 0x1bc   : > { %v1274_v56 = vld [vmem:[%s5217_s25 + $0x8d0] sm:$0xff]  ;;  %2478 = vmatpush.msra.mxu0 %v1278_v52  ;;  %2498 = vmatpush.msra.mxu1 %v1342_v53  ;;  %v1299_v36 = vld [vmem:[%s5217_s25 + $0x998] sm:$0xff] }
 0x1bd   : > { %v1338_v57 = vld [vmem:[%s5217_s25 + $0xad0] sm:$0xff]  ;;  %2518 = vmatpush.msra.mxu2 %v1023_v54  ;;  %2537 = vmatpush.msra.mxu3 %v1091_v55  ;;  %v1167_v37 = vld [vmem:[%s5217_s25 + $0x578] sm:$0xff] }
 0x1be   : > { %v1270_v61 = vld [vmem:[%s5217_s25 + $0x8b0] sm:$0xff]  ;;  %2479 = vmatpush.msra.mxu0 %v1274_v56  ;;  %2499 = vmatpush.msra.mxu1 %v1338_v57  ;;  %v1231_v38 = vld [vmem:[%s5217_s25 + $0x778] sm:$0xff] }
 0x1bf   : > { %v1334_v62 = vld [vmem:[%s5217_s25 + $0xab0] sm:$0xff]  ;;  %2519 = vmatpush.msra.mxu2 %v1019_v59  ;;  %2538 = vmatpush.msra.mxu3 %v1087_v60  ;;  %v1295_v39 = vld [vmem:[%s5217_s25 + $0x978] sm:$0xff] }
 0x1c0   : > { %v1266_v3 = vld [vmem:[%s5217_s25 + $0x890] sm:$0xff]  ;;  %2480 = vmatpush.msra.mxu0 %v1270_v61  ;;  %2500 = vmatpush.msra.mxu1 %v1334_v62  ;;  %v1363_v40 = vld [vmem:[%s5217_s25 + $0xb98] sm:$0xff] }
 0x1c1   : > { %v1330_v4 = vld [vmem:[%s5217_s25 + $0xa90] sm:$0xff]  ;;  %2520 = vmatpush.msra.mxu2 %v1015_v1  ;;  %2539 = vmatpush.msra.mxu3 %v1083_v2  ;;  %v1163_v41 = vld [vmem:[%s5217_s25 + $0x558] sm:$0xff] }
 0x1c2   : > { %2446 = vmatmul.f32.vlgmr.msrb.gmra.mxu2 %v5392_v58  ;;  %2481 = vmatpush.msra.mxu0 %v1266_v3  ;;  %v1262_v8 = vld [vmem:[%s5217_s25 + $0x870] sm:$0xff]  ;;  %v1227_v42 = vld [vmem:[%s5217_s25 + $0x758] sm:$0xff] }
 0x1c3   : > { %2501 = vmatpush.msra.mxu1 %v1330_v4  ;;  %2521 = vmatpush.msra.mxu2 %v1011_v6  ;;  %v1326_v9 = vld [vmem:[%s5217_s25 + $0xa70] sm:$0xff]  ;;  %v1291_v43 = vld [vmem:[%s5217_s25 + $0x958] sm:$0xff] }
 0x1c4   : > { %2540 = vmatpush.msra.mxu3 %v1079_v7  ;;  %2406 = vmatmul.f32.vlgmr.msrb.gmra.mxu0 %v5401_v63  ;;  %v1258_v58 = vld [vmem:[%s5217_s25 + $0x850] sm:$0xff]  ;;  %v1359_v44 = vld [vmem:[%s5217_s25 + $0xb78] sm:$0xff] }
 0x1c5   : > { %2466 = vmatmul.f32.vlgmr.msrb.gmra.mxu3 %v5407_v0  ;;  %2482 = vmatpush.msra.mxu0 %v1262_v8  ;;  %v1322_v12 = vld [vmem:[%s5217_s25 + $0xa50] sm:$0xff]  ;;  %v999_v0 = vld [vmem:[%s5217_s25 + $0x38] sm:$0xff] }
 0x1c6   : > { %2502 = vmatpush.msra.mxu1 %v1326_v9  ;;  %2522 = vmatpush.msra.mxu2 %v1007_v10  ;;  %v1254_v63 = vld [vmem:[%s5217_s25 + $0x830] sm:$0xff]  ;;  %v1159_v45 = vld [vmem:[%s5217_s25 + $0x538] sm:$0xff] }
 0x1c7   : > { %2541 = vmatpush.msra.mxu3 %v1075_v11  ;;  %2426 = vmatmul.f32.vlgmr.msrb.gmra.mxu1 %v5417_v5  ;;  %v1318_v15 = vld [vmem:[%s5217_s25 + $0xa30] sm:$0xff]  ;;  %v1223_v46 = vld [vmem:[%s5217_s25 + $0x738] sm:$0xff] }
 0x1c8   : > { %2483 = vmatpush.msra.mxu0 %v1258_v58  ;;  %2503 = vmatpush.msra.mxu1 %v1322_v12  ;;  %v1250_v17 = vld [vmem:[%s5217_s25 + $0x810] sm:$0xff]  ;;  %v1287_v47 = vld [vmem:[%s5217_s25 + $0x938] sm:$0xff] }
 0x1c9   : > { %2523 = vmatpush.msra.mxu2 %v1003_v13  ;;  %2542 = vmatpush.msra.mxu3 %v1071_v14  ;;  %v1314_v19 = vld [vmem:[%s5217_s25 + $0xa10] sm:$0xff]  ;;  %v1355_v48 = vld [vmem:[%s5217_s25 + $0xb58] sm:$0xff] }
 0x1ca   : > { %2484 = vmatpush.msra.mxu0 %v1254_v63  ;;  %2504 = vmatpush.msra.mxu1 %v1318_v15  ;;  %v1155_v49 = vld [vmem:[%s5217_s25 + $0x518] sm:$0xff] }
 0x1cb   : > { %2524 = vmatpush.msra.mxu2 %v999_v0  ;;  %2543 = vmatpush.msra.mxu3 %v1067_v16  ;;  %v1219_v50 = vld [vmem:[%s5217_s25 + $0x718] sm:$0xff] }
 0x1cc   : > { %2485 = vmatpush.msra.mxu0 %v1250_v17  ;;  %2505 = vmatpush.msra.mxu1 %v1314_v19  ;;  %v1283_v51 = vld [vmem:[%s5217_s25 + $0x918] sm:$0xff] }
 0x1cd   : > { %2525 = vmatpush.msra.mxu2 %v995_v20  ;;  %2544 = vmatpush.msra.mxu3 %v1063_v21  ;;  %v1351_v52 = vld [vmem:[%s5217_s25 + $0xb38] sm:$0xff] }
 0x1ce   : > { %2486 = vmatmul.f32.vlgmr.msra.gmra.mxu0 %v5436_v18  ;;  %2570 = vmatpush.msrb.mxu1 %v1247_v22  ;;  %v1303_v18 = vld [vmem:[%s5217_s25 + $0x9b8] sm:$0xff] }
 0x1cf   : > { %2550 = vmatpush.msrb.mxu0 %v1183_v24  ;;  %2590 = vmatpush.msrb.mxu2 %v1311_v25  ;;  %v1151_v53 = vld [vmem:[%s5217_s25 + $0x4f8] sm:$0xff] }
 0x1d0   : > { %2545 = vmatpush.msra.mxu3 %v1059_v26  ;;  %2506 = vmatmul.f32.vlgmr.msra.gmra.mxu1 %v5445_v23  ;;  %v1367_v23 = vld [vmem:[%s5217_s25 + $0xbb8] sm:$0xff]  ;;  %v1436_v26 = vld [vmem:[%s5232_s19 + $0x1e0] sm:$0xff] }
 0x1d1   : > { %2551 = vmatpush.msrb.mxu0 %v1179_v27  ;;  %2571 = vmatpush.msrb.mxu1 %v1243_v28  ;;  %v1215_v54 = vld [vmem:[%s5217_s25 + $0x6f8] sm:$0xff]  ;;  %v1500_v27 = vld [vmem:[%s5232_s19 + $0x3e0] sm:$0xff] }
 0x1d2   : > { %2591 = vmatpush.msrb.mxu2 %v1307_v29  ;;  %2610 = vmatpush.msrb.mxu3 %v1375_v30  ;;  %v1279_v55 = vld [vmem:[%s5217_s25 + $0x8f8] sm:$0xff]  ;;  %v4327_v30 = vld [vmem:[%s6713_s29 + $0x10] sm:$0xff] }
 0x1d3   : > { %2552 = vmatpush.msrb.mxu0 %v1175_v31  ;;  %2572 = vmatpush.msrb.mxu1 %v1239_v32  ;;  %v1347_v56 = vld [vmem:[%s5217_s25 + $0xb18] sm:$0xff]  ;;  %v1432_v32 = vld [vmem:[%s5232_s19 + $0x1c0] sm:$0xff] }
 0x1d4   : > { %2592 = vmatpush.msrb.mxu2 %v1303_v18  ;;  %2611 = vmatpush.msrb.mxu3 %v1371_v33  ;;  %v1147_v57 = vld [vmem:[%s5217_s25 + $0x4d8] sm:$0xff]  ;;  %v2207_v18 = vpop.f32.mrf.mxu2  ;;  %v1496_v33 = vld [vmem:[%s5232_s19 + $0x3c0] sm:$0xff] }
 0x1d5   : > { %2553 = vmatpush.msrb.mxu0 %v1171_v34  ;;  %2573 = vmatpush.msrb.mxu1 %v1235_v35  ;;  %v1211_v59 = vld [vmem:[%s5217_s25 + $0x6d8] sm:$0xff]  ;;  %v1428_v35 = vld [vmem:[%s5232_s19 + $0x1a0] sm:$0xff] }
 0x1d6   : > { %2593 = vmatpush.msrb.mxu2 %v1299_v36  ;;  %2612 = vmatpush.msrb.mxu3 %v1367_v23  ;;  %v1275_v60 = vld [vmem:[%s5217_s25 + $0x8d8] sm:$0xff]  ;;  %v4330_v36 = vld [vmem:[%s6713_s29 + $0x28] sm:$0xff] }
 0x1d7   : > { %2554 = vmatpush.msrb.mxu0 %v1167_v37  ;;  %2574 = vmatpush.msrb.mxu1 %v1231_v38  ;;  %v1343_v61 = vld [vmem:[%s5217_s25 + $0xaf8] sm:$0xff]  ;;  %v1492_v37 = vld [vmem:[%s5232_s19 + $0x3a0] sm:$0xff]  ;;  %v2227_v38 = vpop.f32.mrf.mxu3 }
 0x1d8   : > { %2594 = vmatpush.msrb.mxu2 %v1295_v39  ;;  %2613 = vmatpush.msrb.mxu3 %v1363_v40  ;;  %v1143_v62 = vld [vmem:[%s5217_s25 + $0x4b8] sm:$0xff]  ;;  %v1424_v39 = vld [vmem:[%s5232_s19 + $0x180] sm:$0xff] }
 0x1d9   : > { %2555 = vmatpush.msrb.mxu0 %v1163_v41  ;;  %2575 = vmatpush.msrb.mxu1 %v1227_v42  ;;  %v1207_v1 = vld [vmem:[%s5217_s25 + $0x6b8] sm:$0xff]  ;;  %v1488_v40 = vld [vmem:[%s5232_s19 + $0x380] sm:$0xff] }
 0x1da   : > { %2595 = vmatpush.msrb.mxu2 %v1291_v43  ;;  %2614 = vmatpush.msrb.mxu3 %v1359_v44  ;;  %v1271_v2 = vld [vmem:[%s5217_s25 + $0x8b8] sm:$0xff]  ;;  %v1420_v41 = vld [vmem:[%s5232_s19 + $0x160] sm:$0xff] }
 0x1db   : > { %2556 = vmatpush.msrb.mxu0 %v1159_v45  ;;  %2576 = vmatpush.msrb.mxu1 %v1223_v46  ;;  %v1339_v3 = vld [vmem:[%s5217_s25 + $0xad8] sm:$0xff]  ;;  %v1484_v43 = vld [vmem:[%s5232_s19 + $0x360] sm:$0xff] }
 0x1dc   : > { %2596 = vmatpush.msrb.mxu2 %v1287_v47  ;;  %2615 = vmatpush.msrb.mxu3 %v1355_v48  ;;  %v1139_v4 = vld [vmem:[%s5217_s25 + $0x498] sm:$0xff]  ;;  %v1416_v45 = vld [vmem:[%s5232_s19 + $0x140] sm:$0xff] }
 0x1dd   : > { %2557 = vmatpush.msrb.mxu0 %v1155_v49  ;;  %2577 = vmatpush.msrb.mxu1 %v1219_v50  ;;  %v1203_v6 = vld [vmem:[%s5217_s25 + $0x698] sm:$0xff]  ;;  %v1480_v46 = vld [vmem:[%s5232_s19 + $0x340] sm:$0xff] }
 0x1de   : > { %2597 = vmatpush.msrb.mxu2 %v1283_v51  ;;  %2616 = vmatpush.msrb.mxu3 %v1351_v52  ;;  %v1267_v7 = vld [vmem:[%s5217_s25 + $0x898] sm:$0xff]  ;;  %v1412_v47 = vld [vmem:[%s5232_s19 + $0x120] sm:$0xff]  ;;  %v5734_v51 = vld [vmem:[%s808_s30] sm:$0xf] }
 0x1df   : > { %2558 = vmatpush.msrb.mxu0 %v1151_v53  ;;  %2578 = vmatpush.msrb.mxu1 %v1215_v54  ;;  %v1335_v8 = vld [vmem:[%s5217_s25 + $0xab8] sm:$0xff]  ;;  %v1476_v49 = vld [vmem:[%s5232_s19 + $0x320] sm:$0xff] }
 0x1e0   : > { %2598 = vmatpush.msrb.mxu2 %v1279_v55  ;;  %2617 = vmatpush.msrb.mxu3 %v1347_v56  ;;  %v1135_v9 = vld [vmem:[%s5217_s25 + $0x478] sm:$0xff]  ;;  %v1408_v52 = vld [vmem:[%s5232_s19 + $0x100] sm:$0xff] }
 0x1e1   : > { %2559 = vmatpush.msrb.mxu0 %v1147_v57  ;;  %2579 = vmatpush.msrb.mxu1 %v1211_v59  ;;  %v1199_v10 = vld [vmem:[%s5217_s25 + $0x678] sm:$0xff]  ;;  %v1472_v53 = vld [vmem:[%s5232_s19 + $0x300] sm:$0xff]  ;;  %v2632_v57 = vperm.slane %v5734_v51, 0 }
 0x1e2   : > { %2599 = vmatpush.msrb.mxu2 %v1275_v60  ;;  %2618 = vmatpush.msrb.mxu3 %v1343_v61  ;;  %v1263_v11 = vld [vmem:[%s5217_s25 + $0x878] sm:$0xff]  ;;  %v2167_v25 = vpop.f32.mrf.mxu0  ;;  %v1564_v54 = vld [vmem:[%s5232_s19 + $0x5e0] sm:$0xff]  ;;  %v5745_v61 = vld [vmem:[%s798_s0] sm:$0xf] }
 0x1e3   : > { %2560 = vmatpush.msrb.mxu0 %v1143_v62  ;;  %2580 = vmatpush.msrb.mxu1 %v1207_v1  ;;  %v1331_v58 = vld [vmem:[%s5217_s25 + $0xa98] sm:$0xff]  ;;  %v1404_v55 = vld [vmem:[%s5232_s19 + $0xe0] sm:$0xff] }
 0x1e4   : > { %2600 = vmatpush.msrb.mxu2 %v1271_v2  ;;  %2619 = vmatpush.msrb.mxu3 %v1339_v3  ;;  %v4326_v12 = vld [vmem:[%s6713_s29] sm:$0xff]  ;;  %v4329_v34 = vld [vmem:[%s6713_s29 + $0x18] sm:$0xff] }
 0x1e5   : > { %2561 = vmatpush.msrb.mxu0 %v1139_v4  ;;  %2581 = vmatpush.msrb.mxu1 %v1203_v6  ;;  %v1131_v13 = vld [vmem:[%s5217_s25 + $0x458] sm:$0xff]  ;;  %v2187_v24 = vpop.f32.mrf.mxu1  ;;  %v1468_v59 = vld [vmem:[%s5232_s19 + $0x2e0] sm:$0xff]  ;;  %v2646_v6 = vperm.slane %v5745_v61, 0 }
 0x1e6   : > { %2601 = vmatpush.msrb.mxu2 %v1267_v7  ;;  %2620 = vmatpush.msrb.mxu3 %v1335_v8  ;;  %v1195_v14 = vld [vmem:[%s5217_s25 + $0x658] sm:$0xff]  ;;  %v2188_v28 = vadd.f32 %v2187_v24, %v2167_v25  ;;  %v1560_v60 = vld [vmem:[%s5232_s19 + $0x5c0] sm:$0xff] }
 0x1e7   : > { %2526 = vmatmul.f32.vlgmr.msra.gmra.mxu2 %v4326_v12  ;;  %2546 = vmatmul.f32.vlgmr.msra.gmra.mxu3 %v5417_v5  ;;  %v1259_v63 = vld [vmem:[%s5217_s25 + $0x858] sm:$0xff]  ;;  %v1400_v62 = vld [vmem:[%s5232_s19 + $0xc0] sm:$0xff] }
 0x1e8   : > { %2562 = vmatpush.msrb.mxu0 %v1135_v9  ;;  %2582 = vmatpush.msrb.mxu1 %v1199_v10  ;;  %v1327_v15 = vld [vmem:[%s5217_s25 + $0xa78] sm:$0xff]  ;;  %v2208_v23 = vadd.f32 %v2207_v18, %v2188_v28  ;;  %v1464_v1 = vld [vmem:[%s5232_s19 + $0x2c0] sm:$0xff] }
 0x1e9   : > { %2602 = vmatpush.msrb.mxu2 %v1263_v11  ;;  %2621 = vmatpush.msrb.mxu3 %v1331_v58  ;;  %v1127_v0 = vld [vmem:[%s5217_s25 + $0x438] sm:$0xff]  ;;  %v1556_v2 = vld [vmem:[%s5232_s19 + $0x5a0] sm:$0xff] }
 0x1ea   : > { %v1191_v16 = vld [vmem:[%s5217_s25 + $0x638] sm:$0xff]  ;;  %2563 = vmatpush.msrb.mxu0 %v1131_v13  ;;  %2583 = vmatpush.msrb.mxu1 %v1195_v14  ;;  %v2228_v42 = vadd.f32 %v2227_v38, %v2208_v23  ;;  %v1396_v3 = vld [vmem:[%s5232_s19 + $0xa0] sm:$0xff] }
 0x1eb   : > { %v1255_v17 = vld [vmem:[%s5217_s25 + $0x838] sm:$0xff]  ;;  %2603 = vmatpush.msrb.mxu2 %v1259_v63  ;;  %2622 = vmatpush.msrb.mxu3 %v1327_v15  ;;  %v2247_v44 = vpop.f32.mrf.mxu0  ;;  %v1460_v7 = vld [vmem:[%s5232_s19 + $0x2a0] sm:$0xff] }
 0x1ec   : > { %v1323_v19 = vld [vmem:[%s5217_s25 + $0xa58] sm:$0xff]  ;;  %2564 = vmatpush.msrb.mxu0 %v1127_v0  ;;  %2584 = vmatpush.msrb.mxu1 %v1191_v16  ;;  %v2248_v48 = vadd.f32 %v2247_v44, %v2228_v42  ;;  %v1552_v8 = vld [vmem:[%s5232_s19 + $0x580] sm:$0xff] }
 0x1ed   : > { %v1123_v5 = vld [vmem:[%s5217_s25 + $0x418] sm:$0xff]  ;;  %2604 = vmatpush.msrb.mxu2 %v1255_v17  ;;  %2623 = vmatpush.msrb.mxu3 %v1323_v19  ;;  %v2267_v50 = vpop.f32.mrf.mxu1  ;;  %v1392_v9 = vld [vmem:[%s5232_s19 + $0x80] sm:$0xff] }
 0x1ee   : > { %v1187_v20 = vld [vmem:[%s5217_s25 + $0x618] sm:$0xff]  ;;  %2565 = vmatpush.msrb.mxu0 %v1123_v5  ;;  %v2268_v56 = vadd.f32 %v2267_v50, %v2248_v48  ;;  %v1456_v11 = vld [vmem:[%s5232_s19 + $0x280] sm:$0xff] }
 0x1ef   : > { %v1251_v21 = vld [vmem:[%s5217_s25 + $0x818] sm:$0xff]  ;;  %2585 = vmatpush.msrb.mxu1 %v1187_v20  ;;  %2566 = vmatmul.f32.vlgmr.msrb.gmra.mxu0 %v4327_v30  ;;  %v1548_v58 = vld [vmem:[%s5232_s19 + $0x560] sm:$0xff] }
 0x1f0   : > { %v1319_v22 = vld [vmem:[%s5217_s25 + $0xa38] sm:$0xff]  ;;  %2605 = vmatpush.msrb.mxu2 %v1251_v21  ;;  %2674 = vmatpush.msra.mxu0 %v1436_v26  ;;  %v2640_v4 = vmul.f32 %v2632_v57, %v2268_v56  ;;  %v1388_v12 = vld [vmem:[%s5232_s19 + $0x60] sm:$0xff] }
 0x1f1   : > { %2624 = vmatpush.msrb.mxu3 %v1319_v22  ;;  %v1315_v29 = vld [vmem:[%s5217_s25 + $0xa18] sm:$0xff]  ;;  %2694 = vmatpush.msra.mxu1 %v1500_v27  ;;  %v1452_v14 = vld [vmem:[%s5232_s19 + $0x260] sm:$0xff] }
 0x1f2   : > { %v4328_v31 = vld [vmem:[%s6713_s29 + $0x20] sm:$0xff]  ;;  %2586 = vmatmul.f32.vlgmr.msrb.gmra.mxu1 %v4329_v34  ;;  %2675 = vmatpush.msra.mxu0 %v1432_v32  ;;  %v2654_v13 = vadd.f32 %v2646_v6, %v2640_v4  ;;  %v1544_v15 = vld [vmem:[%s5232_s19 + $0x540] sm:$0xff] }
 0x1f3   : > { %2606 = vmatmul.f32.vlgmr.msrb.gmra.mxu2 %v4328_v31  ;;  %2625 = vmatpush.msrb.mxu3 %v1315_v29  ;;  %v1384_v0 = vld [vmem:[%s5232_s19 + $0x40] sm:$0xff]  ;;  %v1437_v32 = vld [vmem:[%s5232_s19 + $0x1e8] sm:$0xff] }
 0x1f4   : > { %2626 = vmatmul.f32.vlgmr.msrb.gmra.mxu3 %v4330_v36  ;;  %2695 = vmatpush.msra.mxu1 %v1496_v33  ;;  %v1448_v17 = vld [vmem:[%s5232_s19 + $0x240] sm:$0xff]  ;;  %v2662_v24 = vmul.f32 0.01, %v2654_v13  ;;  %vm2658_vm0 = vcmp.gt.f32.partialorder %v2654_v13, 0.0  ;;  %v1501_v18 = vld [vmem:[%s5232_s19 + $0x3e8] sm:$0xff] }
 0x1f5   : > { %2676 = vmatpush.msra.mxu0 %v1428_v35  ;;  %2714 = vmatpush.msra.mxu2 %v1564_v54  ;;  %v1540_v5 = vld [vmem:[%s5232_s19 + $0x520] sm:$0xff]  ;;  %v2633_v35 = vperm.slane %v5734_v51, 1  ;;  %v1433_v23 = vld [vmem:[%s5232_s19 + $0x1c8] sm:$0xff] }
 0x1f6   : > { %2696 = vmatpush.msra.mxu1 %v1492_v37  ;;  %v1380_v20 = vld [vmem:[%s5232_s19 + $0x20] sm:$0xff]  ;;  %v5771_v33 = vsel %vm2658_vm0, %v2654_v13, %v2662_v24  ;;  %v1497_v37 = vld [vmem:[%s5232_s19 + $0x3c8] sm:$0xff] }
 0x1f7   : > { %2677 = vmatpush.msra.mxu0 %v1424_v39  ;;  %2715 = vmatpush.msra.mxu2 %v1560_v60  ;;  %v1444_v22 = vld [vmem:[%s5232_s19 + $0x220] sm:$0xff]  ;;  %v1429_v42 = vld [vmem:[%s5232_s19 + $0x1a8] sm:$0xff] }
 0x1f8   : > { %2697 = vmatpush.msra.mxu1 %v1488_v40  ;;  %v1536_v25 = vld [vmem:[%s5232_s19 + $0x500] sm:$0xff]  ;;  %v2647_v40 = vperm.slane %v5745_v61, 1  ;;  %v1421_v50 = vld [vmem:[%s5232_s19 + $0x168] sm:$0xff] }
 0x1f9   : > { %2678 = vmatpush.msra.mxu0 %v1420_v41  ;;  %2716 = vmatpush.msra.mxu2 %v1556_v2  ;;  %v1376_v26 = vld [vmem:[%s5232_s19] sm:$0xff]  ;;  %v1481_v56 = vld [vmem:[%s5232_s19 + $0x348] sm:$0xff] }
 0x1fa   : > { %2698 = vmatpush.msra.mxu1 %v1484_v43  ;;  %v1440_v28 = vld [vmem:[%s5232_s19 + $0x200] sm:$0xff]  ;;  %v1493_v43 = vld [vmem:[%s5232_s19 + $0x3a8] sm:$0xff] }
 0x1fb   : > { %2679 = vmatpush.msra.mxu0 %v1416_v45  ;;  %2717 = vmatpush.msra.mxu2 %v1552_v8  ;;  %v1532_v31 = vld [vmem:[%s5232_s19 + $0x4e0] sm:$0xff]  ;;  %v1413_v60 = vld [vmem:[%s5232_s19 + $0x128] sm:$0xff] }
 0x1fc   : > { %2699 = vmatpush.msra.mxu1 %v1480_v46  ;;  %v1528_v36 = vld [vmem:[%s5232_s19 + $0x4c0] sm:$0xff]  ;;  %v1425_v46 = vld [vmem:[%s5232_s19 + $0x188] sm:$0xff] }
 0x1fd   : > { %2680 = vmatpush.msra.mxu0 %v1412_v47  ;;  %2718 = vmatpush.msra.mxu2 %v1548_v58  ;;  %v1524_v41 = vld [vmem:[%s5232_s19 + $0x4a0] sm:$0xff]  ;;  %v1489_v47 = vld [vmem:[%s5232_s19 + $0x388] sm:$0xff] }
 0x1fe   : > { %2700 = vmatpush.msra.mxu1 %v1476_v49  ;;  %v1520_v45 = vld [vmem:[%s5232_s19 + $0x480] sm:$0xff]  ;;  %v1409_v2 = vld [vmem:[%s5232_s19 + $0x108] sm:$0xff] }
 0x1ff   : > { %2681 = vmatpush.msra.mxu0 %v1408_v52  ;;  %2719 = vmatpush.msra.mxu2 %v1544_v15  ;;  %v1516_v49 = vld [vmem:[%s5232_s19 + $0x460] sm:$0xff]  ;;  %v1485_v52 = vld [vmem:[%s5232_s19 + $0x368] sm:$0xff] }
 0x200   : > { %2701 = vmatpush.msra.mxu1 %v1472_v53  ;;  %v1512_v54 = vld [vmem:[%s5232_s19 + $0x440] sm:$0xff]  ;;  %v1565_v4 = vld [vmem:[%s5232_s19 + $0x5e8] sm:$0xff] }
 0x201   : > { %2682 = vmatpush.msra.mxu0 %v1404_v55  ;;  %2720 = vmatpush.msra.mxu2 %v1540_v5  ;;  %v1417_v55 = vld [vmem:[%s5232_s19 + $0x148] sm:$0xff]  ;;  %v1628_v13 = vld [vmem:[%s5232_s19 + $0x7e0] sm:$0xff] }
 0x202   : > { %2702 = vmatpush.msra.mxu1 %v1468_v59  ;;  %v1508_v59 = vld [vmem:[%s5232_s19 + $0x420] sm:$0xff]  ;;  %v1405_v6 = vld [vmem:[%s5232_s19 + $0xe8] sm:$0xff]  ;;  %2734 = vmatpush.msra.mxu3 %v1628_v13  ;;  %v1398_v13 = vld [vmem:[%s5232_s19 + $0xb0] sm:$0xff] }
 0x203   : > { %2683 = vmatpush.msra.mxu0 %v1400_v62  ;;  %2721 = vmatpush.msra.mxu2 %v1536_v25  ;;  %v1477_v62 = vld [vmem:[%s5232_s19 + $0x328] sm:$0xff]  ;;  %v1620_v5 = vld [vmem:[%s5232_s19 + $0x7a0] sm:$0xff] }
 0x204   : > { %2703 = vmatpush.msra.mxu1 %v1464_v1  ;;  %v2287_v10 = vpop.f32.mrf.mxu2  ;;  %v1504_v1 = vld [vmem:[%s5232_s19 + $0x400] sm:$0xff]  ;;  %v1561_v8 = vld [vmem:[%s5232_s19 + $0x5c8] sm:$0xff] }
 0x205   : > { %2684 = vmatpush.msra.mxu0 %v1396_v3  ;;  %2722 = vmatpush.msra.mxu2 %v1532_v31  ;;  %v1473_v3 = vld [vmem:[%s5232_s19 + $0x308] sm:$0xff]  ;;  %v1616_v24 = vld [vmem:[%s5232_s19 + $0x780] sm:$0xff] }
 0x206   : > { %2704 = vmatpush.msra.mxu1 %v1460_v7  ;;  %v2327_v19 = vpop.f32.mrf.mxu0  ;;  %v1469_v7 = vld [vmem:[%s5232_s19 + $0x2e8] sm:$0xff] }
 0x207   : > { %2685 = vmatpush.msra.mxu0 %v1392_v9  ;;  %v2307_v63 = vpop.f32.mrf.mxu3  ;;  %2723 = vmatpush.msra.mxu2 %v1528_v36  ;;  %v1401_v9 = vld [vmem:[%s5232_s19 + $0xc8] sm:$0xff]  ;;  %v1604_v36 = vld [vmem:[%s5232_s19 + $0x720] sm:$0xff] }
 0x208   : > { %2705 = vmatpush.msra.mxu1 %v1456_v11  ;;  %v2308_v16 = vadd.f32 %v2307_v63, %v2287_v10  ;;  %v1465_v10 = vld [vmem:[%s5232_s19 + $0x2c8] sm:$0xff] }
 0x209   : > { %2686 = vmatpush.msra.mxu0 %v1388_v12  ;;  %2724 = vmatpush.msra.mxu2 %v1524_v41  ;;  %v1557_v11 = vld [vmem:[%s5232_s19 + $0x5a8] sm:$0xff]  ;;  %v1494_v41 = vld [vmem:[%s5232_s19 + $0x3b0] sm:$0xff] }
 0x20a   : > { %2706 = vmatpush.msra.mxu1 %v1452_v14  ;;  %v2328_v21 = vadd.f32 %v2327_v19, %v2308_v16  ;;  %v1397_v58 = vld [vmem:[%s5232_s19 + $0xa8] sm:$0xff] }
 0x20b   : > { %2687 = vmatpush.msra.mxu0 %v1384_v0  ;;  %2725 = vmatpush.msra.mxu2 %v1520_v45  ;;  %v1461_v12 = vld [vmem:[%s5232_s19 + $0x2a8] sm:$0xff]  ;;  %v1624_v0 = vld [vmem:[%s5232_s19 + $0x7c0] sm:$0xff]  ;;  %v1490_v45 = vld [vmem:[%s5232_s19 + $0x390] sm:$0xff] }
 0x20c   : > { %2707 = vmatpush.msra.mxu1 %v1448_v17  ;;  %v2347_v27 = vpop.f32.mrf.mxu1  ;;  %v1553_v14 = vld [vmem:[%s5232_s19 + $0x588] sm:$0xff]  ;;  %2735 = vmatpush.msra.mxu3 %v1624_v0  ;;  %v1458_v0 = vld [vmem:[%s5232_s19 + $0x290] sm:$0xff] }
 0x20d   : > { %2688 = vmatpush.msra.mxu0 %v1380_v20  ;;  %v2348_v29 = vadd.f32 %v2347_v27, %v2328_v21  ;;  %v2367_v30 = vpop.f32.mrf.mxu2  ;;  %2726 = vmatpush.msra.mxu2 %v1516_v49  ;;  %v1393_v63 = vld [vmem:[%s5232_s19 + $0x88] sm:$0xff]  ;;  %v1486_v49 = vld [vmem:[%s5232_s19 + $0x370] sm:$0xff] }
 0x20e   : > { %2708 = vmatpush.msra.mxu1 %v1444_v22  ;;  %v1457_v15 = vld [vmem:[%s5232_s19 + $0x288] sm:$0xff]  ;;  %2736 = vmatpush.msra.mxu3 %v1620_v5 }
 0x20f   : > { %2689 = vmatpush.msra.mxu0 %v1376_v26  ;;  %v2368_v34 = vadd.f32 %v2367_v30, %v2348_v29  ;;  %2727 = vmatpush.msra.mxu2 %v1512_v54  ;;  %v1549_v16 = vld [vmem:[%s5232_s19 + $0x568] sm:$0xff]  ;;  %v1482_v54 = vld [vmem:[%s5232_s19 + $0x350] sm:$0xff] }
 0x210   : > { %2709 = vmatpush.msra.mxu1 %v1440_v28  ;;  %2690 = vmatmul.f32.vlgmr.msra.gmra.mxu0 %v5771_v33  ;;  %v2387_v38 = vpop.f32.mrf.mxu3  ;;  %v1389_v17 = vld [vmem:[%s5232_s19 + $0x68] sm:$0xff]  ;;  %v1612_v28 = vld [vmem:[%s5232_s19 + $0x760] sm:$0xff] }
 0x211   : > { %2754 = vmatpush.msrb.mxu0 %v1437_v32  ;;  %v2388_v39 = vadd.f32 %v2387_v38, %v2368_v34  ;;  %2728 = vmatpush.msra.mxu2 %v1508_v59  ;;  %v1453_v19 = vld [vmem:[%s5232_s19 + $0x268] sm:$0xff]  ;;  %v1608_v32 = vld [vmem:[%s5232_s19 + $0x740] sm:$0xff]  ;;  %v1502_v34 = vld [vmem:[%s5232_s19 + $0x3f0] sm:$0xff] }
 0x212   : > { %2774 = vmatpush.msrb.mxu1 %v1501_v18  ;;  %v1545_v20 = vld [vmem:[%s5232_s19 + $0x548] sm:$0xff]  ;;  %2737 = vmatpush.msra.mxu3 %v1616_v24  ;;  %v1438_v18 = vld [vmem:[%s5232_s19 + $0x1f0] sm:$0xff] }
 0x213   : > { %2755 = vmatpush.msrb.mxu0 %v1433_v23  ;;  %v2641_v44 = vmul.f32 %v2633_v35, %v2388_v39  ;;  %2729 = vmatpush.msra.mxu2 %v1504_v1  ;;  %v1385_v21 = vld [vmem:[%s5232_s19 + $0x48] sm:$0xff]  ;;  %v1434_v23 = vld [vmem:[%s5232_s19 + $0x1d0] sm:$0xff]  ;;  %v1600_v39 = vld [vmem:[%s5232_s19 + $0x700] sm:$0xff] }
 0x214   : > { %2775 = vmatpush.msrb.mxu1 %v1497_v37  ;;  %v1449_v22 = vld [vmem:[%s5232_s19 + $0x248] sm:$0xff]  ;;  %2738 = vmatpush.msra.mxu3 %v1612_v28  ;;  %v1498_v37 = vld [vmem:[%s5232_s19 + $0x3d0] sm:$0xff]  ;;  %v1580_v1 = vld [vmem:[%s5232_s19 + $0x660] sm:$0xff] }
 0x215   : > { %2756 = vmatpush.msrb.mxu0 %v1429_v42  ;;  %v2655_v48 = vadd.f32 %v2647_v40, %v2641_v44  ;;  %2794 = vmatpush.msrb.mxu2 %v1565_v4  ;;  %v1541_v25 = vld [vmem:[%s5232_s19 + $0x528] sm:$0xff]  ;;  %v1430_v40 = vld [vmem:[%s5232_s19 + $0x1b0] sm:$0xff] }
 0x216   : > { %2776 = vmatpush.msrb.mxu1 %v1493_v43  ;;  %v1381_v26 = vld [vmem:[%s5232_s19 + $0x28] sm:$0xff]  ;;  %2739 = vmatpush.msra.mxu3 %v1608_v32  ;;  %v1596_v43 = vld [vmem:[%s5232_s19 + $0x6e0] sm:$0xff]  ;;  %v1426_v44 = vld [vmem:[%s5232_s19 + $0x190] sm:$0xff] }
 0x217   : > { %2757 = vmatpush.msrb.mxu0 %v1425_v46  ;;  %vm2659_vm1 = vcmp.gt.f32.partialorder %v2655_v48, 0.0  ;;  %v2663_v53 = vmul.f32 0.01, %v2655_v48  ;;  %2795 = vmatpush.msrb.mxu2 %v1561_v8  ;;  %v1445_v27 = vld [vmem:[%s5232_s19 + $0x228] sm:$0xff]  ;;  %v1414_v59 = vld [vmem:[%s5232_s19 + $0x130] sm:$0xff] }
 0x218   : > { %2777 = vmatpush.msrb.mxu1 %v1489_v47  ;;  %v1537_v29 = vld [vmem:[%s5232_s19 + $0x508] sm:$0xff]  ;;  %2740 = vmatpush.msra.mxu3 %v1604_v36  ;;  %v1592_v47 = vld [vmem:[%s5232_s19 + $0x6c0] sm:$0xff]  ;;  %v1470_v8 = vld [vmem:[%s5232_s19 + $0x2f0] sm:$0xff] }
 0x219   : > { %2758 = vmatpush.msrb.mxu0 %v1421_v50  ;;  %v5791_v57 = vsel %vm2659_vm1, %v2655_v48, %v2663_v53  ;;  %2796 = vmatpush.msrb.mxu2 %v1557_v11  ;;  %v1377_v30 = vld [vmem:[%s5232_s19 + $0x8] sm:$0xff]  ;;  %v1422_v48 = vld [vmem:[%s5232_s19 + $0x170] sm:$0xff] }
 0x21a   : > { %2778 = vmatpush.msrb.mxu1 %v1485_v52  ;;  %v1441_v31 = vld [vmem:[%s5232_s19 + $0x208] sm:$0xff]  ;;  %2741 = vmatpush.msra.mxu3 %v1600_v39  ;;  %v1588_v52 = vld [vmem:[%s5232_s19 + $0x6a0] sm:$0xff]  ;;  %v1418_v53 = vld [vmem:[%s5232_s19 + $0x150] sm:$0xff] }
 0x21b   : > { %2710 = vmatmul.f32.vlgmr.msra.gmra.mxu1 %v5791_v57  ;;  %2759 = vmatpush.msrb.mxu0 %v1417_v55  ;;  %v1533_v35 = vld [vmem:[%s5232_s19 + $0x4e8] sm:$0xff]  ;;  %v1466_v11 = vld [vmem:[%s5232_s19 + $0x2d0] sm:$0xff]  ;;  %v1503_v39 = vld [vmem:[%s5232_s19 + $0x3f8] sm:$0xff] }
 0x21c   : > { %2779 = vmatpush.msrb.mxu1 %v1481_v56  ;;  %2797 = vmatpush.msrb.mxu2 %v1553_v14  ;;  %v1529_v38 = vld [vmem:[%s5232_s19 + $0x4c8] sm:$0xff]  ;;  %v1584_v56 = vld [vmem:[%s5232_s19 + $0x680] sm:$0xff]  ;;  %v1462_v14 = vld [vmem:[%s5232_s19 + $0x2b0] sm:$0xff] }
 0x21d   : > { %2760 = vmatpush.msrb.mxu0 %v1413_v60  ;;  %v1525_v42 = vld [vmem:[%s5232_s19 + $0x4a8] sm:$0xff]  ;;  %2742 = vmatpush.msra.mxu3 %v1596_v43  ;;  %v1478_v60 = vld [vmem:[%s5232_s19 + $0x330] sm:$0xff]  ;;  %v1435_v43 = vld [vmem:[%s5232_s19 + $0x1d8] sm:$0xff] }
 0x21e   : > { %2780 = vmatpush.msrb.mxu1 %v1477_v62  ;;  %2798 = vmatpush.msrb.mxu2 %v1549_v16  ;;  %v1521_v46 = vld [vmem:[%s5232_s19 + $0x488] sm:$0xff] }
 0x21f   : > { %2761 = vmatpush.msrb.mxu0 %v1409_v2  ;;  %v1517_v50 = vld [vmem:[%s5232_s19 + $0x468] sm:$0xff]  ;;  %2743 = vmatpush.msra.mxu3 %v1592_v47  ;;  %v1410_v2 = vld [vmem:[%s5232_s19 + $0x110] sm:$0xff] }
 0x220   : > { %2781 = vmatpush.msrb.mxu1 %v1473_v3  ;;  %2799 = vmatpush.msrb.mxu2 %v1545_v20  ;;  %v1513_v55 = vld [vmem:[%s5232_s19 + $0x448] sm:$0xff]  ;;  %v1474_v3 = vld [vmem:[%s5232_s19 + $0x310] sm:$0xff] }
 0x221   : > { %2762 = vmatpush.msrb.mxu0 %v1405_v6  ;;  %2744 = vmatpush.msra.mxu3 %v1588_v52  ;;  %v1509_v62 = vld [vmem:[%s5232_s19 + $0x428] sm:$0xff]  ;;  %v1576_v6 = vld [vmem:[%s5232_s19 + $0x640] sm:$0xff]  ;;  %v1390_v20 = vld [vmem:[%s5232_s19 + $0x70] sm:$0xff] }
 0x222   : > { %2782 = vmatpush.msrb.mxu1 %v1469_v7  ;;  %2800 = vmatpush.msrb.mxu2 %v1541_v25  ;;  %v1505_v4 = vld [vmem:[%s5232_s19 + $0x408] sm:$0xff]  ;;  %v1406_v7 = vld [vmem:[%s5232_s19 + $0xf0] sm:$0xff]  ;;  %v1427_v52 = vld [vmem:[%s5232_s19 + $0x198] sm:$0xff] }
 0x223   : > { %2763 = vmatpush.msrb.mxu0 %v1401_v9  ;;  %2745 = vmatpush.msra.mxu3 %v1584_v56  ;;  %v1572_v9 = vld [vmem:[%s5232_s19 + $0x620] sm:$0xff]  ;;  %v1625_v5 = vld [vmem:[%s5232_s19 + $0x7c8] sm:$0xff]  ;;  %v1386_v25 = vld [vmem:[%s5232_s19 + $0x50] sm:$0xff] }
 0x224   : > { %2783 = vmatpush.msrb.mxu1 %v1465_v10  ;;  %2801 = vmatpush.msrb.mxu2 %v1537_v29  ;;  %v1402_v10 = vld [vmem:[%s5232_s19 + $0xd0] sm:$0xff]  ;;  %v1621_v24 = vld [vmem:[%s5232_s19 + $0x7a8] sm:$0xff]  ;;  %v1423_v56 = vld [vmem:[%s5232_s19 + $0x178] sm:$0xff] }
 0x225   : > { %2764 = vmatpush.msrb.mxu0 %v1397_v58  ;;  %2746 = vmatpush.msra.mxu3 %v1580_v1  ;;  %v1617_v29 = vld [vmem:[%s5232_s19 + $0x788] sm:$0xff] }
 0x226   : > { %2784 = vmatpush.msrb.mxu1 %v1461_v12  ;;  %2802 = vmatpush.msrb.mxu2 %v1533_v35  ;;  %v1568_v12 = vld [vmem:[%s5232_s19 + $0x600] sm:$0xff]  ;;  %v1442_v35 = vld [vmem:[%s5232_s19 + $0x210] sm:$0xff]  ;;  %v1593_v1 = vld [vmem:[%s5232_s19 + $0x6c8] sm:$0xff] }
 0x227   : > { %2765 = vmatpush.msrb.mxu0 %v1393_v63  ;;  %2747 = vmatpush.msra.mxu3 %v1576_v6  ;;  %v1629_v63 = vld [vmem:[%s5232_s19 + $0x7e8] sm:$0xff] }
 0x228   : > { %2785 = vmatpush.msrb.mxu1 %v1457_v15  ;;  %2803 = vmatpush.msrb.mxu2 %v1529_v38  ;;  %v1394_v15 = vld [vmem:[%s5232_s19 + $0x90] sm:$0xff]  ;;  %v1439_v38 = vld [vmem:[%s5232_s19 + $0x1f8] sm:$0xff]  ;;  %v1589_v6 = vld [vmem:[%s5232_s19 + $0x6a8] sm:$0xff] }
 0x229   : > { %2766 = vmatpush.msrb.mxu0 %v1389_v17  ;;  %2748 = vmatpush.msra.mxu3 %v1572_v9  ;;  %v1558_v9 = vld [vmem:[%s5232_s19 + $0x5b0] sm:$0xff] }
 0x22a   : > { %2786 = vmatpush.msrb.mxu1 %v1453_v19  ;;  %2804 = vmatpush.msrb.mxu2 %v1525_v42  ;;  %v1609_v42 = vld [vmem:[%s5232_s19 + $0x748] sm:$0xff] }
 0x22b   : > { %2767 = vmatpush.msrb.mxu0 %v1385_v21  ;;  %2749 = vmatpush.msra.mxu3 %v1568_v12  ;;  %v1454_v21 = vld [vmem:[%s5232_s19 + $0x270] sm:$0xff] }
 0x22c   : > { %2787 = vmatpush.msrb.mxu1 %v1449_v22  ;;  %2805 = vmatpush.msrb.mxu2 %v1521_v46  ;;  %v1605_v46 = vld [vmem:[%s5232_s19 + $0x728] sm:$0xff]  ;;  %v1554_v12 = vld [vmem:[%s5232_s19 + $0x590] sm:$0xff] }
 0x22d   : > { %2768 = vmatpush.msrb.mxu0 %v1381_v26  ;;  %2814 = vmatpush.msrb.mxu3 %v1629_v63  ;;  %v1450_v26 = vld [vmem:[%s5232_s19 + $0x250] sm:$0xff]  ;;  %v1471_v63 = vld [vmem:[%s5232_s19 + $0x2f8] sm:$0xff] }
 0x22e   : > { %2788 = vmatpush.msrb.mxu1 %v1445_v27  ;;  %2806 = vmatpush.msrb.mxu2 %v1517_v50  ;;  %v1601_v50 = vld [vmem:[%s5232_s19 + $0x708] sm:$0xff] }
 0x22f   : > { %2769 = vmatpush.msrb.mxu0 %v1377_v30  ;;  %2815 = vmatpush.msrb.mxu3 %v1625_v5  ;;  %v1382_v30 = vld [vmem:[%s5232_s19 + $0x30] sm:$0xff]  ;;  %v1399_v5 = vld [vmem:[%s5232_s19 + $0xb8] sm:$0xff] }
 0x230   : > { %2789 = vmatpush.msrb.mxu1 %v1441_v31  ;;  %2770 = vmatmul.f32.vlgmr.msrb.gmra.mxu0 %v5771_v33  ;;  %v1446_v31 = vld [vmem:[%s5232_s19 + $0x230] sm:$0xff] }
 0x231   : > { %2790 = vmatmul.f32.vlgmr.msrb.gmra.mxu1 %v5791_v57  ;;  %2834 = vmatpush.msra.mxu0 %v1438_v18  ;;  %v1613_v18 = vld [vmem:[%s5232_s19 + $0x768] sm:$0xff] }
 0x232   : > { %2854 = vmatpush.msra.mxu1 %v1502_v34  ;;  %2807 = vmatpush.msrb.mxu2 %v1513_v55  ;;  %v1378_v34 = vld [vmem:[%s5232_s19 + $0x10] sm:$0xff]  ;;  %v1597_v55 = vld [vmem:[%s5232_s19 + $0x6e8] sm:$0xff] }
 0x233   : > { %2835 = vmatpush.msra.mxu0 %v1434_v23  ;;  %2816 = vmatpush.msrb.mxu3 %v1621_v24  ;;  %v2634_v23 = vperm.slane %v5734_v51, 2  ;;  %v1395_v24 = vld [vmem:[%s5232_s19 + $0x98] sm:$0xff] }
 0x234   : > { %2855 = vmatpush.msra.mxu1 %v1498_v37  ;;  %2808 = vmatpush.msrb.mxu2 %v1509_v62  ;;  %v1566_v62 = vld [vmem:[%s5232_s19 + $0x5f0] sm:$0xff] }
 0x235   : > { %2836 = vmatpush.msra.mxu0 %v1430_v40  ;;  %2817 = vmatpush.msrb.mxu3 %v1617_v29  ;;  %v1538_v29 = vld [vmem:[%s5232_s19 + $0x510] sm:$0xff] }
 0x236   : > { %2856 = vmatpush.msra.mxu1 %v1494_v41  ;;  %2809 = vmatpush.msrb.mxu2 %v1505_v4  ;;  %v2648_v41 = vperm.slane %v5745_v61, 2  ;;  %v1562_v4 = vld [vmem:[%s5232_s19 + $0x5d0] sm:$0xff] }
 0x237   : > { %2837 = vmatpush.msra.mxu0 %v1426_v44  ;;  %2818 = vmatpush.msrb.mxu3 %v1613_v18  ;;  %v1499_v44 = vld [vmem:[%s5232_s19 + $0x3d8] sm:$0xff] }
 0x238   : > { %2857 = vmatpush.msra.mxu1 %v1490_v45  ;;  %v1383_v18 = vld [vmem:[%s5232_s19 + $0x38] sm:$0xff] }
 0x239   : > { %2838 = vmatpush.msra.mxu0 %v1422_v48  ;;  %v1431_v48 = vld [vmem:[%s5232_s19 + $0x1b8] sm:$0xff]  ;;  %2819 = vmatpush.msrb.mxu3 %v1609_v42  ;;  %v1526_v42 = vld [vmem:[%s5232_s19 + $0x4b0] sm:$0xff] }
 0x23a   : > { %2858 = vmatpush.msra.mxu1 %v1486_v49  ;;  %v1495_v49 = vld [vmem:[%s5232_s19 + $0x3b8] sm:$0xff] }
 0x23b   : > { %2839 = vmatpush.msra.mxu0 %v1418_v53  ;;  %v1491_v53 = vld [vmem:[%s5232_s19 + $0x398] sm:$0xff]  ;;  %2820 = vmatpush.msrb.mxu3 %v1605_v46  ;;  %v1518_v46 = vld [vmem:[%s5232_s19 + $0x470] sm:$0xff] }
 0x23c   : > { %2859 = vmatpush.msra.mxu1 %v1482_v54 }
 0x23d   : > { %2840 = vmatpush.msra.mxu0 %v1414_v59  ;;  %v1487_v59 = vld [vmem:[%s5232_s19 + $0x378] sm:$0xff]  ;;  %2821 = vmatpush.msrb.mxu3 %v1601_v50  ;;  %v2635_v50 = vperm.slane %v5734_v51, 3 }
 0x23e   : > { %2860 = vmatpush.msra.mxu1 %v1478_v60  ;;  %v1563_v51 = vld [vmem:[%s5232_s19 + $0x5d8] sm:$0xff] }
 0x23f   : > { %2841 = vmatpush.msra.mxu0 %v1410_v2  ;;  %v1419_v2 = vld [vmem:[%s5232_s19 + $0x158] sm:$0xff]  ;;  %2822 = vmatpush.msrb.mxu3 %v1597_v55 }
 0x240   : > { %2861 = vmatpush.msra.mxu1 %v1474_v3  ;;  %v1483_v3 = vld [vmem:[%s5232_s19 + $0x358] sm:$0xff] }
 0x241   : > { %2842 = vmatpush.msra.mxu0 %v1406_v7  ;;  %v2407_v58 = vpop.f32.mrf.mxu0  ;;  %v1415_v7 = vld [vmem:[%s5232_s19 + $0x138] sm:$0xff]  ;;  %2823 = vmatpush.msrb.mxu3 %v1593_v1 }
 0x242   : > { %2862 = vmatpush.msra.mxu1 %v1470_v8  ;;  %v1479_v8 = vld [vmem:[%s5232_s19 + $0x338] sm:$0xff] }
 0x243   : > { %2843 = vmatpush.msra.mxu0 %v1402_v10  ;;  %v1585_v10 = vld [vmem:[%s5232_s19 + $0x688] sm:$0xff]  ;;  %2824 = vmatpush.msrb.mxu3 %v1589_v6  ;;  %v1559_v1 = vld [vmem:[%s5232_s19 + $0x5b8] sm:$0xff] }
 0x244   : > { %2863 = vmatpush.msra.mxu1 %v1466_v11  ;;  %v2427_v16 = vpop.f32.mrf.mxu1  ;;  %v1411_v11 = vld [vmem:[%s5232_s19 + $0x118] sm:$0xff] }
 0x245   : > { %2844 = vmatpush.msra.mxu0 %v1398_v13  ;;  %v2428_v17 = vadd.f32 %v2427_v16, %v2407_v58  ;;  %v2447_v19 = vpop.f32.mrf.mxu2  ;;  %v1475_v58 = vld [vmem:[%s5232_s19 + $0x318] sm:$0xff]  ;;  %v1581_v13 = vld [vmem:[%s5232_s19 + $0x668] sm:$0xff]  ;;  %2825 = vmatpush.msrb.mxu3 %v1585_v10 }
 0x246   : > { %2864 = vmatpush.msra.mxu1 %v1462_v14  ;;  %v1407_v14 = vld [vmem:[%s5232_s19 + $0xf8] sm:$0xff] }
 0x247   : > { %2845 = vmatpush.msra.mxu0 %v1394_v15  ;;  %v2448_v22 = vadd.f32 %v2447_v19, %v2428_v17  ;;  %v1577_v15 = vld [vmem:[%s5232_s19 + $0x648] sm:$0xff]  ;;  %v1467_v16 = vld [vmem:[%s5232_s19 + $0x2d8] sm:$0xff]  ;;  %2826 = vmatpush.msrb.mxu3 %v1581_v13  ;;  %v1550_v17 = vld [vmem:[%s5232_s19 + $0x570] sm:$0xff] }
 0x248   : > { %2865 = vmatpush.msra.mxu1 %v1458_v0  ;;  %v2467_v27 = vpop.f32.mrf.mxu3  ;;  %v1403_v0 = vld [vmem:[%s5232_s19 + $0xd8] sm:$0xff]  ;;  %v1573_v19 = vld [vmem:[%s5232_s19 + $0x628] sm:$0xff] }
 0x249   : > { %2846 = vmatpush.msra.mxu0 %v1390_v20  ;;  %v2468_v28 = vadd.f32 %v2467_v27, %v2448_v22  ;;  %v1463_v20 = vld [vmem:[%s5232_s19 + $0x2b8] sm:$0xff]  ;;  %2827 = vmatpush.msrb.mxu3 %v1577_v15  ;;  %v1569_v22 = vld [vmem:[%s5232_s19 + $0x608] sm:$0xff]  ;;  %v1602_v15 = vld [vmem:[%s5232_s19 + $0x710] sm:$0xff] }
 0x24a   : > { %2866 = vmatpush.msra.mxu1 %v1454_v21  ;;  %v1546_v21 = vld [vmem:[%s5232_s19 + $0x550] sm:$0xff]  ;;  %v1391_v27 = vld [vmem:[%s5232_s19 + $0x78] sm:$0xff] }
 0x24b   : > { %2847 = vmatpush.msra.mxu0 %v1386_v25  ;;  %v2487_v32 = vpop.f32.mrf.mxu0  ;;  %v1459_v25 = vld [vmem:[%s5232_s19 + $0x298] sm:$0xff]  ;;  %2828 = vmatpush.msrb.mxu3 %v1573_v19  ;;  %v1594_v19 = vld [vmem:[%s5232_s19 + $0x6d0] sm:$0xff] }
 0x24c   : > { %2867 = vmatpush.msra.mxu1 %v1450_v26  ;;  %v2488_v36 = vadd.f32 %v2487_v32, %v2468_v28  ;;  %v1542_v26 = vld [vmem:[%s5232_s19 + $0x530] sm:$0xff]  ;;  %v1455_v28 = vld [vmem:[%s5232_s19 + $0x278] sm:$0xff] }
 0x24d   : > { %2848 = vmatpush.msra.mxu0 %v1382_v30  ;;  %v2507_v37 = vpop.f32.mrf.mxu1  ;;  %2829 = vmatpush.msrb.mxu3 %v1569_v22  ;;  %v1387_v30 = vld [vmem:[%s5232_s19 + $0x58] sm:$0xff]  ;;  %v1534_v32 = vld [vmem:[%s5232_s19 + $0x4f0] sm:$0xff]  ;;  %v1688_v22 = vld [vmem:[%s5238_s9 + $0x1c0] sm:$0xff] }
 0x24e   : > { %2868 = vmatpush.msra.mxu1 %v1446_v31  ;;  %v2508_v40 = vadd.f32 %v2507_v37, %v2488_v36  ;;  %v1451_v31 = vld [vmem:[%s5232_s19 + $0x258] sm:$0xff]  ;;  %v1530_v37 = vld [vmem:[%s5232_s19 + $0x4d0] sm:$0xff] }
 0x24f   : > { %2849 = vmatpush.msra.mxu0 %v1378_v34  ;;  %v1447_v34 = vld [vmem:[%s5232_s19 + $0x238] sm:$0xff] }
 0x250   : > { %2869 = vmatpush.msra.mxu1 %v1442_v35  ;;  %2850 = vmatmul.f32.vlgmr.msra.gmra.mxu0 %v5771_v33  ;;  %v2642_v45 = vmul.f32 %v2634_v23, %v2508_v40  ;;  %v1551_v6 = vld [vmem:[%s5232_s19 + $0x578] sm:$0xff] }
 0x251   : > { %2870 = vmatmul.f32.vlgmr.msra.gmra.mxu1 %v5791_v57  ;;  %2914 = vmatpush.msrb.mxu0 %v1439_v38  ;;  %v1379_v38 = vld [vmem:[%s5232_s19 + $0x18] sm:$0xff] }
 0x252   : > { %2934 = vmatpush.msrb.mxu1 %v1503_v39  ;;  %v2656_v47 = vadd.f32 %v2648_v41, %v2642_v45  ;;  %v1443_v39 = vld [vmem:[%s5232_s19 + $0x218] sm:$0xff] }
 0x253   : > { %2915 = vmatpush.msrb.mxu0 %v1435_v43  ;;  %v1543_v10 = vld [vmem:[%s5232_s19 + $0x538] sm:$0xff] }
 0x254   : > { %2935 = vmatpush.msrb.mxu1 %v1499_v44  ;;  %vm2660_vm2 = vcmp.gt.f32.partialorder %v2656_v47, 0.0  ;;  %v2664_v54 = vmul.f32 0.01, %v2656_v47  ;;  %v1522_v44 = vld [vmem:[%s5232_s19 + $0x490] sm:$0xff]  ;;  %v1535_v13 = vld [vmem:[%s5232_s19 + $0x4f8] sm:$0xff] }
 0x255   : > { %2916 = vmatpush.msrb.mxu0 %v1431_v48 }
 0x256   : > { %2936 = vmatpush.msrb.mxu1 %v1495_v49  ;;  %v5905_v60 = vsel %vm2660_vm2, %v2656_v47, %v2664_v54  ;;  %v1514_v49 = vld [vmem:[%s5232_s19 + $0x450] sm:$0xff] }
 0x257   : > { %2917 = vmatpush.msrb.mxu0 %v1427_v52  ;;  %2730 = vmatmul.f32.vlgmr.msra.gmra.mxu2 %v5905_v60  ;;  %v1506_v54 = vld [vmem:[%s5232_s19 + $0x410] sm:$0xff] }
 0x258   : > { %2937 = vmatpush.msrb.mxu1 %v1491_v53  ;;  %2874 = vmatpush.msra.mxu2 %v1566_v62  ;;  %v1510_v53 = vld [vmem:[%s5232_s19 + $0x430] sm:$0xff] }
 0x259   : > { %2918 = vmatpush.msrb.mxu0 %v1423_v56  ;;  %v1567_v56 = vld [vmem:[%s5232_s19 + $0x5f8] sm:$0xff] }
 0x25a   : > { %2938 = vmatpush.msrb.mxu1 %v1487_v59  ;;  %2875 = vmatpush.msra.mxu2 %v1562_v4  ;;  %v1626_v4 = vld [vmem:[%s5232_s19 + $0x7d0] sm:$0xff] }
 0x25b   : > { %2919 = vmatpush.msrb.mxu0 %v1419_v2 }
 0x25c   : > { %2939 = vmatpush.msrb.mxu1 %v1483_v3  ;;  %2876 = vmatpush.msra.mxu2 %v1558_v9  ;;  %v1555_v3 = vld [vmem:[%s5232_s19 + $0x598] sm:$0xff]  ;;  %v1618_v9 = vld [vmem:[%s5232_s19 + $0x790] sm:$0xff] }
 0x25d   : > { %2920 = vmatpush.msrb.mxu0 %v1415_v7  ;;  %v1622_v7 = vld [vmem:[%s5232_s19 + $0x7b0] sm:$0xff] }
 0x25e   : > { %2940 = vmatpush.msrb.mxu1 %v1479_v8  ;;  %2877 = vmatpush.msra.mxu2 %v1554_v12  ;;  %v1547_v8 = vld [vmem:[%s5232_s19 + $0x558] sm:$0xff]  ;;  %v1610_v12 = vld [vmem:[%s5232_s19 + $0x750] sm:$0xff] }
 0x25f   : > { %2921 = vmatpush.msrb.mxu0 %v1411_v11  ;;  %2810 = vmatmul.f32.vlgmr.msrb.gmra.mxu2 %v5905_v60  ;;  %v1614_v11 = vld [vmem:[%s5232_s19 + $0x770] sm:$0xff] }
 0x260   : > { %2941 = vmatpush.msrb.mxu1 %v1475_v58  ;;  %2878 = vmatpush.msra.mxu2 %v1550_v17  ;;  %v1539_v58 = vld [vmem:[%s5232_s19 + $0x518] sm:$0xff] }
 0x261   : > { %2922 = vmatpush.msrb.mxu0 %v1407_v14  ;;  %v1606_v14 = vld [vmem:[%s5232_s19 + $0x730] sm:$0xff]  ;;  %v1523_v17 = vld [vmem:[%s5232_s19 + $0x498] sm:$0xff] }
 0x262   : > { %2942 = vmatpush.msrb.mxu1 %v1471_v63  ;;  %2879 = vmatpush.msra.mxu2 %v1546_v21  ;;  %v1531_v63 = vld [vmem:[%s5232_s19 + $0x4d8] sm:$0xff]  ;;  %v1590_v21 = vld [vmem:[%s5232_s19 + $0x6b0] sm:$0xff] }
 0x263   : > { %2923 = vmatpush.msrb.mxu0 %v1403_v0  ;;  %v1527_v0 = vld [vmem:[%s5232_s19 + $0x4b8] sm:$0xff] }
 0x264   : > { %2943 = vmatpush.msrb.mxu1 %v1467_v16  ;;  %2880 = vmatpush.msra.mxu2 %v1542_v26  ;;  %v1598_v16 = vld [vmem:[%s5232_s19 + $0x6f0] sm:$0xff]  ;;  %v1684_v26 = vld [vmem:[%s5238_s9 + $0x1a0] sm:$0xff] }
 0x265   : > { %2924 = vmatpush.msrb.mxu0 %v1399_v5  ;;  %v1692_v5 = vld [vmem:[%s5238_s9 + $0x1e0] sm:$0xff] }
 0x266   : > { %2944 = vmatpush.msrb.mxu1 %v1463_v20  ;;  %2881 = vmatpush.msra.mxu2 %v1538_v29  ;;  %v1519_v20 = vld [vmem:[%s5232_s19 + $0x478] sm:$0xff]  ;;  %v1680_v29 = vld [vmem:[%s5238_s9 + $0x180] sm:$0xff] }
 0x267   : > { %2925 = vmatpush.msrb.mxu0 %v1395_v24  ;;  %v1515_v24 = vld [vmem:[%s5232_s19 + $0x458] sm:$0xff] }
 0x268   : > { %2945 = vmatpush.msrb.mxu1 %v1459_v25  ;;  %2882 = vmatpush.msra.mxu2 %v1534_v32  ;;  %v1586_v25 = vld [vmem:[%s5232_s19 + $0x690] sm:$0xff]  ;;  %v1676_v32 = vld [vmem:[%s5238_s9 + $0x160] sm:$0xff] }
 0x269   : > { %2926 = vmatpush.msrb.mxu0 %v1391_v27  ;;  %v1511_v27 = vld [vmem:[%s5232_s19 + $0x438] sm:$0xff] }
 0x26a   : > { %2946 = vmatpush.msrb.mxu1 %v1455_v28  ;;  %v2527_v35 = vpop.f32.mrf.mxu2  ;;  %v2547_v36 = vpop.f32.mrf.mxu3  ;;  %2883 = vmatpush.msra.mxu2 %v1530_v37  ;;  %v1582_v28 = vld [vmem:[%s5232_s19 + $0x670] sm:$0xff]  ;;  %v1631_v37 = vld [vmem:[%s5232_s19 + $0x7f8] sm:$0xff] }
 0x26b   : > { %2927 = vmatpush.msrb.mxu0 %v1387_v30  ;;  %v2548_v23 = vadd.f32 %v2547_v36, %v2527_v35  ;;  %v1507_v30 = vld [vmem:[%s5232_s19 + $0x418] sm:$0xff]  ;;  %v1570_v35 = vld [vmem:[%s5232_s19 + $0x610] sm:$0xff]  ;;  %v1668_v36 = vld [vmem:[%s5238_s9 + $0x120] sm:$0xff] }
 0x26c   : > { %2947 = vmatpush.msrb.mxu1 %v1451_v31  ;;  %v2567_v40 = vpop.f32.mrf.mxu0  ;;  %2884 = vmatpush.msra.mxu2 %v1526_v42  ;;  %v1578_v31 = vld [vmem:[%s5232_s19 + $0x650] sm:$0xff]  ;;  %v1812_v42 = vld [vmem:[%s5238_s9 + $0x5a0] sm:$0xff] }
 0x26d   : > { %2928 = vmatpush.msrb.mxu0 %v1383_v18  ;;  %v2568_v41 = vadd.f32 %v2567_v40, %v2548_v23  ;;  %v1574_v18 = vld [vmem:[%s5232_s19 + $0x630] sm:$0xff]  ;;  %v1820_v23 = vld [vmem:[%s5238_s9 + $0x5e0] sm:$0xff] }
 0x26e   : > { %2948 = vmatpush.msrb.mxu1 %v1447_v34  ;;  %2885 = vmatpush.msra.mxu2 %v1522_v44  ;;  %v1672_v34 = vld [vmem:[%s5238_s9 + $0x140] sm:$0xff] }
 0x26f   : > { %2929 = vmatpush.msrb.mxu0 %v1379_v38  ;;  %v2587_v43 = vpop.f32.mrf.mxu1  ;;  %v1627_v38 = vld [vmem:[%s5232_s19 + $0x7d8] sm:$0xff]  ;;  %v1660_v40 = vld [vmem:[%s5238_s9 + $0xe0] sm:$0xff] }
 0x270   : > { %2949 = vmatpush.msrb.mxu1 %v1443_v39  ;;  %2930 = vmatmul.f32.vlgmr.msrb.gmra.mxu0 %v5771_v33  ;;  %v2588_v45 = vadd.f32 %v2587_v43, %v2568_v41  ;;  %v1816_v39 = vld [vmem:[%s5238_s9 + $0x5c0] sm:$0xff]  ;;  %v1623_v43 = vld [vmem:[%s5232_s19 + $0x7b8] sm:$0xff] }
 0x271   : > { %2950 = vmatmul.f32.vlgmr.msrb.gmra.mxu1 %v5791_v57  ;;  %2886 = vmatpush.msra.mxu2 %v1518_v46  ;;  %v2649_v57 = vperm.slane %v5745_v61, 3  ;;  %v1630_v61 = vld [vmem:[%s5232_s19 + $0x7f0] sm:$0xff]  ;;  %v1756_v41 = vld [vmem:[%s5238_s9 + $0x3e0] sm:$0xff] }
 0x272   : > { %3006 = vmatpush.msra.mxu0 %v1692_v5  ;;  %3026 = vmatpush.msra.mxu1 %v1756_v41  ;;  %v1656_v44 = vld [vmem:[%s5238_s9 + $0xc0] sm:$0xff] }
 0x273   : > { %2887 = vmatpush.msra.mxu2 %v1514_v49  ;;  %v1808_v46 = vld [vmem:[%s5238_s9 + $0x580] sm:$0xff] }
 0x274   : > { %3007 = vmatpush.msra.mxu0 %v1688_v22  ;;  %v1748_v49 = vld [vmem:[%s5238_s9 + $0x3a0] sm:$0xff]  ;;  %v1681_v22 = vld [vmem:[%s5238_s9 + $0x188] sm:$0xff] }
 0x275   : > { %2888 = vmatpush.msra.mxu2 %v1510_v53  ;;  %v1648_v53 = vld [vmem:[%s5238_s9 + $0x80] sm:$0xff] }
 0x276   : > { %v2607_v47 = vpop.f32.mrf.mxu2  ;;  %3008 = vmatpush.msra.mxu0 %v1684_v26  ;;  %v1716_v5 = vld [vmem:[%s5238_s9 + $0x2a0] sm:$0xff]  ;;  %v1579_v26 = vld [vmem:[%s5232_s19 + $0x658] sm:$0xff] }
 0x277   : > { %v2608_v48 = vadd.f32 %v2607_v47, %v2588_v45  ;;  %v2627_v52 = vpop.f32.mrf.mxu3  ;;  %2889 = vmatpush.msra.mxu2 %v1506_v54  ;;  %v1752_v45 = vld [vmem:[%s5238_s9 + $0x3c0] sm:$0xff]  ;;  %v1619_v47 = vld [vmem:[%s5232_s19 + $0x798] sm:$0xff] }
 0x278   : > { %2890 = vmatmul.f32.vlgmr.msra.gmra.mxu2 %v5905_v60  ;;  %3009 = vmatpush.msra.mxu0 %v1680_v29  ;;  %v1611_v54 = vld [vmem:[%s5232_s19 + $0x758] sm:$0xff]  ;;  %v1764_v29 = vld [vmem:[%s5238_s9 + $0x420] sm:$0xff] }
 0x279   : > { %v2628_v33 = vadd.f32 %v2627_v52, %v2608_v48  ;;  %2954 = vmatpush.msrb.mxu2 %v1567_v56  ;;  %3027 = vmatpush.msra.mxu1 %v1752_v45  ;;  %v1652_v48 = vld [vmem:[%s5238_s9 + $0xa0] sm:$0xff]  ;;  %v1615_v52 = vld [vmem:[%s5232_s19 + $0x778] sm:$0xff]  ;;  %v1757_v45 = vld [vmem:[%s5238_s9 + $0x3e8] sm:$0xff] }
 0x27a   : > { %3010 = vmatpush.msra.mxu0 %v1676_v32  ;;  %v1740_v56 = vld [vmem:[%s5238_s9 + $0x360] sm:$0xff] }
 0x27b   : > { %v2643_v55 = vmul.f32 %v2635_v50, %v2628_v33  ;;  %2955 = vmatpush.msrb.mxu2 %v1563_v51  ;;  %v1804_v50 = vld [vmem:[%s5238_s9 + $0x560] sm:$0xff]  ;;  %3028 = vmatpush.msra.mxu1 %v1748_v49  ;;  %v1607_v51 = vld [vmem:[%s5232_s19 + $0x738] sm:$0xff]  ;;  %v1753_v49 = vld [vmem:[%s5238_s9 + $0x3c8] sm:$0xff] }
 0x27c   : > { %3011 = vmatpush.msra.mxu0 %v1672_v34  ;;  %v1744_v33 = vld [vmem:[%s5238_s9 + $0x380] sm:$0xff]  ;;  %v1571_v34 = vld [vmem:[%s5232_s19 + $0x618] sm:$0xff] }
 0x27d   : > { %v2657_v59 = vadd.f32 %v2649_v57, %v2643_v55  ;;  %2956 = vmatpush.msrb.mxu2 %v1559_v1  ;;  %v1800_v57 = vld [vmem:[%s5238_s9 + $0x540] sm:$0xff]  ;;  %3029 = vmatpush.msra.mxu1 %v1744_v33  ;;  %v1749_v33 = vld [vmem:[%s5238_s9 + $0x3a8] sm:$0xff] }
 0x27e   : > { %3012 = vmatpush.msra.mxu0 %v1668_v36  ;;  %v1644_v55 = vld [vmem:[%s5238_s9 + $0x60] sm:$0xff]  ;;  %v1669_v36 = vld [vmem:[%s5238_s9 + $0x128] sm:$0xff] }
 0x27f   : > { %vm2661_vm3 = vcmp.gt.f32.partialorder %v2657_v59, 0.0  ;;  %v2665_v62 = vmul.f32 0.01, %v2657_v59  ;;  %2957 = vmatpush.msrb.mxu2 %v1555_v3  ;;  %3030 = vmatpush.msra.mxu1 %v1740_v56  ;;  %v1736_v1 = vld [vmem:[%s5238_s9 + $0x340] sm:$0xff]  ;;  %v1603_v3 = vld [vmem:[%s5232_s19 + $0x718] sm:$0xff]  ;;  %v1745_v56 = vld [vmem:[%s5238_s9 + $0x388] sm:$0xff] }
 0x280   : > { %v1704_v32 = vld [vmem:[%s5238_s9 + $0x240] sm:$0xff] }
 0x281   : > { %v5963_v2 = vsel %vm2661_vm3, %v2657_v59, %v2665_v62  ;;  %2958 = vmatpush.msrb.mxu2 %v1551_v6  ;;  %v1796_v59 = vld [vmem:[%s5238_s9 + $0x520] sm:$0xff]  ;;  %3031 = vmatpush.msra.mxu1 %v1736_v1  ;;  %v1741_v1 = vld [vmem:[%s5238_s9 + $0x368] sm:$0xff] }
 0x282   : > { %2750 = vmatmul.f32.vlgmr.msra.gmra.mxu3 %v5963_v2  ;;  %v1640_v62 = vld [vmem:[%s5238_s9 + $0x40] sm:$0xff] }
 0x283   : > { %2894 = vmatpush.msra.mxu3 %v1630_v61  ;;  %2959 = vmatpush.msrb.mxu2 %v1547_v8  ;;  %v1792_v61 = vld [vmem:[%s5238_s9 + $0x500] sm:$0xff] }
 0x284   : > { %v1636_v6 = vld [vmem:[%s5238_s9 + $0x20] sm:$0xff] }
 0x285   : > { %2895 = vmatpush.msra.mxu3 %v1626_v4  ;;  %2960 = vmatpush.msrb.mxu2 %v1543_v10  ;;  %v1599_v4 = vld [vmem:[%s5232_s19 + $0x6f8] sm:$0xff]  ;;  %v1788_v8 = vld [vmem:[%s5238_s9 + $0x4e0] sm:$0xff] }
 0x286   : > { %v1728_v10 = vld [vmem:[%s5238_s9 + $0x300] sm:$0xff] }
 0x287   : > { %2896 = vmatpush.msra.mxu3 %v1622_v7  ;;  %2961 = vmatpush.msrb.mxu2 %v1539_v58  ;;  %v1732_v7 = vld [vmem:[%s5238_s9 + $0x320] sm:$0xff] }
 0x288   : > { %3032 = vmatpush.msra.mxu1 %v1732_v7  ;;  %v1784_v58 = vld [vmem:[%s5238_s9 + $0x4c0] sm:$0xff] }
 0x289   : > { %2897 = vmatpush.msra.mxu3 %v1618_v9  ;;  %2962 = vmatpush.msrb.mxu2 %v1535_v13  ;;  %v1632_v9 = vld [vmem:[%s5238_s9] sm:$0xff] }
 0x28a   : > { %2830 = vmatmul.f32.vlgmr.msrb.gmra.mxu3 %v5963_v2  ;;  %v1724_v13 = vld [vmem:[%s5238_s9 + $0x2e0] sm:$0xff]  ;;  %3033 = vmatpush.msra.mxu1 %v1728_v10  ;;  %v1733_v10 = vld [vmem:[%s5238_s9 + $0x328] sm:$0xff] }
 0x28b   : > { %2898 = vmatpush.msra.mxu3 %v1614_v11  ;;  %2963 = vmatpush.msrb.mxu2 %v1531_v63  ;;  %v1595_v11 = vld [vmem:[%s5232_s19 + $0x6d8] sm:$0xff]  ;;  %v1696_v41 = vld [vmem:[%s5238_s9 + $0x200] sm:$0xff] }
 0x28c   : > { %v1591_v63 = vld [vmem:[%s5232_s19 + $0x6b8] sm:$0xff]  ;;  %3034 = vmatpush.msra.mxu1 %v1724_v13  ;;  %v1852_v7 = vld [vmem:[%s5238_s9 + $0x6e0] sm:$0xff]  ;;  %v1729_v13 = vld [vmem:[%s5238_s9 + $0x308] sm:$0xff] }
 0x28d   : > { %2899 = vmatpush.msra.mxu3 %v1610_v12  ;;  %2964 = vmatpush.msrb.mxu2 %v1527_v0  ;;  %v1693_v12 = vld [vmem:[%s5238_s9 + $0x1e8] sm:$0xff]  ;;  %v1720_v0 = vld [vmem:[%s5238_s9 + $0x2c0] sm:$0xff] }
 0x28e   : > { %3035 = vmatpush.msra.mxu1 %v1720_v0  ;;  %v1725_v0 = vld [vmem:[%s5238_s9 + $0x2e8] sm:$0xff] }
 0x28f   : > { %2900 = vmatpush.msra.mxu3 %v1606_v14  ;;  %2965 = vmatpush.msrb.mxu2 %v1523_v17  ;;  %v1780_v14 = vld [vmem:[%s5238_s9 + $0x4a0] sm:$0xff]  ;;  %v1587_v17 = vld [vmem:[%s5232_s19 + $0x698] sm:$0xff] }
 0x290   : > { %3036 = vmatpush.msra.mxu1 %v1716_v5  ;;  %v1721_v5 = vld [vmem:[%s5238_s9 + $0x2c8] sm:$0xff] }
 0x291   : > { %2901 = vmatpush.msra.mxu3 %v1602_v15  ;;  %2966 = vmatpush.msrb.mxu2 %v1519_v20  ;;  %v1689_v15 = vld [vmem:[%s5238_s9 + $0x1c8] sm:$0xff]  ;;  %v1772_v20 = vld [vmem:[%s5238_s9 + $0x460] sm:$0xff] }
 0x293   : > { %2902 = vmatpush.msra.mxu3 %v1598_v16  ;;  %2967 = vmatpush.msrb.mxu2 %v1515_v24  ;;  %v1776_v16 = vld [vmem:[%s5238_s9 + $0x480] sm:$0xff] }
 0x294   : > { %v1712_v24 = vld [vmem:[%s5238_s9 + $0x280] sm:$0xff] }
 0x295   : > { %2903 = vmatpush.msra.mxu3 %v1594_v19  ;;  %2968 = vmatpush.msrb.mxu2 %v1511_v27  ;;  %v1685_v19 = vld [vmem:[%s5238_s9 + $0x1a8] sm:$0xff] }
 0x296   : > { %v1677_v27 = vld [vmem:[%s5238_s9 + $0x168] sm:$0xff]  ;;  %3037 = vmatpush.msra.mxu1 %v1712_v24 }
 0x297   : > { %2904 = vmatpush.msra.mxu3 %v1590_v21  ;;  %2969 = vmatpush.msrb.mxu2 %v1507_v30  ;;  %v1583_v21 = vld [vmem:[%s5232_s19 + $0x678] sm:$0xff]  ;;  %v1717_v24 = vld [vmem:[%s5238_s9 + $0x2a8] sm:$0xff] }
 0x298   : > { %2970 = vmatmul.f32.vlgmr.msrb.gmra.mxu2 %v5905_v60  ;;  %v1664_v60 = vld [vmem:[%s5238_s9 + $0x100] sm:$0xff]  ;;  %v1575_v30 = vld [vmem:[%s5232_s19 + $0x638] sm:$0xff] }
 0x299   : > { %2905 = vmatpush.msra.mxu3 %v1586_v25  ;;  %3046 = vmatpush.msra.mxu2 %v1820_v23  ;;  %v1768_v25 = vld [vmem:[%s5238_s9 + $0x440] sm:$0xff] }
 0x29a   : > { %3013 = vmatpush.msra.mxu0 %v1664_v60  ;;  %v1884_v23 = vld [vmem:[%s5238_s9 + $0x7e0] sm:$0xff]  ;;  %v1665_v60 = vld [vmem:[%s5238_s9 + $0x108] sm:$0xff] }
 0x29b   : > { %2906 = vmatpush.msra.mxu3 %v1582_v28  ;;  %3047 = vmatpush.msra.mxu2 %v1816_v39  ;;  %v1708_v28 = vld [vmem:[%s5238_s9 + $0x260] sm:$0xff] }
 0x29c   : > { %3014 = vmatpush.msra.mxu0 %v1660_v40  ;;  %3038 = vmatpush.msra.mxu1 %v1708_v28  ;;  %v1880_v39 = vld [vmem:[%s5238_s9 + $0x7c0] sm:$0xff]  ;;  %v1817_v40 = vld [vmem:[%s5238_s9 + $0x5c8] sm:$0xff] }
 0x29d   : > { %2907 = vmatpush.msra.mxu3 %v1578_v31  ;;  %3048 = vmatpush.msra.mxu2 %v1812_v42  ;;  %v1673_v31 = vld [vmem:[%s5238_s9 + $0x148] sm:$0xff] }
 0x29e   : > { %3015 = vmatpush.msra.mxu0 %v1656_v44  ;;  %3039 = vmatpush.msra.mxu1 %v1704_v32  ;;  %v6083_v42 = vld [vmem:[%s6714_s14] sm:$0xff] }
 0x29f   : > { %2908 = vmatpush.msra.mxu3 %v1574_v18  ;;  %3049 = vmatpush.msra.mxu2 %v1808_v46  ;;  %v1760_v18 = vld [vmem:[%s5238_s9 + $0x400] sm:$0xff]  ;;  %v1661_v44 = vld [vmem:[%s5238_s9 + $0xe8] sm:$0xff] }
 0x2a0   : > { %3016 = vmatpush.msra.mxu0 %v1652_v48  ;;  %v1872_v46 = vld [vmem:[%s5238_s9 + $0x780] sm:$0xff]  ;;  %v1657_v48 = vld [vmem:[%s5238_s9 + $0xc8] sm:$0xff] }
 0x2a1   : > { %2909 = vmatpush.msra.mxu3 %v1570_v35  ;;  %3050 = vmatpush.msra.mxu2 %v1804_v50  ;;  %v6068_v35 = vld [vmem:[%s6714_s14 + $0x10] sm:$0xff]  ;;  %v1713_v28 = vld [vmem:[%s5238_s9 + $0x288] sm:$0xff] }
 0x2a2   : > { %2910 = vmatmul.f32.vlgmr.msra.gmra.mxu3 %v5963_v2  ;;  %3017 = vmatpush.msra.mxu0 %v1648_v53  ;;  %v1868_v50 = vld [vmem:[%s5238_s9 + $0x760] sm:$0xff]  ;;  %v1653_v53 = vld [vmem:[%s5238_s9 + $0xa8] sm:$0xff] }
 0x2a3   : > { %2974 = vmatpush.msrb.mxu3 %v1631_v37  ;;  %3051 = vmatpush.msra.mxu2 %v1800_v57  ;;  %v1821_v37 = vld [vmem:[%s5238_s9 + $0x5e8] sm:$0xff]  ;;  %v1864_v57 = vld [vmem:[%s5238_s9 + $0x740] sm:$0xff] }
 0x2a4   : > { %3018 = vmatpush.msra.mxu0 %v1644_v55  ;;  %v1649_v55 = vld [vmem:[%s5238_s9 + $0x88] sm:$0xff] }
 0x2a5   : > { %2975 = vmatpush.msrb.mxu3 %v1627_v38  ;;  %3052 = vmatpush.msra.mxu2 %v1796_v59  ;;  %v1700_v38 = vld [vmem:[%s5238_s9 + $0x220] sm:$0xff]  ;;  %v1709_v32 = vld [vmem:[%s5238_s9 + $0x268] sm:$0xff] }
 0x2a6   : > { %3019 = vmatpush.msra.mxu0 %v1640_v62  ;;  %3040 = vmatpush.msra.mxu1 %v1700_v38  ;;  %v1860_v59 = vld [vmem:[%s5238_s9 + $0x720] sm:$0xff]  ;;  %v1645_v62 = vld [vmem:[%s5238_s9 + $0x68] sm:$0xff] }
 0x2a7   : > { %2976 = vmatpush.msrb.mxu3 %v1623_v43  ;;  %3053 = vmatpush.msra.mxu2 %v1792_v61  ;;  %v1876_v43 = vld [vmem:[%s5238_s9 + $0x7a0] sm:$0xff]  ;;  %v1705_v38 = vld [vmem:[%s5238_s9 + $0x248] sm:$0xff] }
 0x2a8   : > { %3020 = vmatpush.msra.mxu0 %v1636_v6  ;;  %3041 = vmatpush.msra.mxu1 %v1696_v41  ;;  %v1856_v61 = vld [vmem:[%s5238_s9 + $0x700] sm:$0xff]  ;;  %v1737_v6 = vld [vmem:[%s5238_s9 + $0x348] sm:$0xff]  ;;  %v1822_v41 = vld [vmem:[%s5238_s9 + $0x5f0] sm:$0xff] }
 0x2a9   : > { %2977 = vmatpush.msrb.mxu3 %v1619_v47  ;;  %3054 = vmatpush.msra.mxu2 %v1788_v8  ;;  %v1813_v47 = vld [vmem:[%s5238_s9 + $0x5a8] sm:$0xff] }
 0x2aa   : > { %3021 = vmatpush.msra.mxu0 %v1632_v9  ;;  %3106 = vmatpush.msrb.mxu1 %v1757_v45  ;;  %v1793_v8 = vld [vmem:[%s5238_s9 + $0x508] sm:$0xff]  ;;  %v1666_v45 = vld [vmem:[%s5238_s9 + $0x110] sm:$0xff] }
 0x2ab   : > { %2978 = vmatpush.msrb.mxu3 %v1615_v52  ;;  %3055 = vmatpush.msra.mxu2 %v1784_v58  ;;  %v1809_v52 = vld [vmem:[%s5238_s9 + $0x588] sm:$0xff] }
 0x2ac   : > { %3086 = vmatpush.msrb.mxu0 %v1693_v12  ;;  %3107 = vmatpush.msrb.mxu1 %v1753_v49  ;;  %v1637_v9 = vld [vmem:[%s5238_s9 + $0x28] sm:$0xff]  ;;  %v1662_v49 = vld [vmem:[%s5238_s9 + $0xf0] sm:$0xff] }
 0x2ad   : > { %2979 = vmatpush.msrb.mxu3 %v1611_v54  ;;  %3056 = vmatpush.msra.mxu2 %v1780_v14  ;;  %v1805_v54 = vld [vmem:[%s5238_s9 + $0x568] sm:$0xff]  ;;  %v1844_v14 = vld [vmem:[%s5238_s9 + $0x6a0] sm:$0xff] }
 0x2ae   : > { %3087 = vmatpush.msrb.mxu0 %v1689_v15  ;;  %3108 = vmatpush.msrb.mxu1 %v1749_v33  ;;  %v1789_v58 = vld [vmem:[%s5238_s9 + $0x4e8] sm:$0xff]  ;;  %v1694_v15 = vld [vmem:[%s5238_s9 + $0x1f0] sm:$0xff] }
 0x2af   : > { %2980 = vmatpush.msrb.mxu3 %v1607_v51  ;;  %3057 = vmatpush.msra.mxu2 %v1776_v16  ;;  %v1801_v51 = vld [vmem:[%s5238_s9 + $0x548] sm:$0xff]  ;;  %v1840_v16 = vld [vmem:[%s5238_s9 + $0x680] sm:$0xff]  ;;  %v1658_v33 = vld [vmem:[%s5238_s9 + $0xd0] sm:$0xff] }
 0x2b0   : > { %3088 = vmatpush.msrb.mxu0 %v1685_v19  ;;  %3109 = vmatpush.msrb.mxu1 %v1745_v56  ;;  %v1633_v12 = vld [vmem:[%s5238_s9 + $0x8] sm:$0xff]  ;;  %v1690_v19 = vld [vmem:[%s5238_s9 + $0x1d0] sm:$0xff] }
 0x2b1   : > { %2981 = vmatpush.msrb.mxu3 %v1603_v3  ;;  %3058 = vmatpush.msra.mxu2 %v1772_v20  ;;  %v1797_v3 = vld [vmem:[%s5238_s9 + $0x528] sm:$0xff]  ;;  %v1836_v20 = vld [vmem:[%s5238_s9 + $0x660] sm:$0xff]  ;;  %v1654_v56 = vld [vmem:[%s5238_s9 + $0xb0] sm:$0xff] }
 0x2b2   : > { %3089 = vmatpush.msrb.mxu0 %v1681_v22  ;;  %3110 = vmatpush.msrb.mxu1 %v1741_v1  ;;  %v1686_v22 = vld [vmem:[%s5238_s9 + $0x1b0] sm:$0xff] }
 0x2b3   : > { %2982 = vmatpush.msrb.mxu3 %v1599_v4  ;;  %3059 = vmatpush.msra.mxu2 %v1768_v25  ;;  %v1641_v4 = vld [vmem:[%s5238_s9 + $0x48] sm:$0xff]  ;;  %v1832_v25 = vld [vmem:[%s5238_s9 + $0x640] sm:$0xff]  ;;  %v1650_v1 = vld [vmem:[%s5238_s9 + $0x90] sm:$0xff] }
 0x2b4   : > { %3090 = vmatpush.msrb.mxu0 %v1677_v27  ;;  %3111 = vmatpush.msrb.mxu1 %v1737_v6  ;;  %v1682_v27 = vld [vmem:[%s5238_s9 + $0x190] sm:$0xff] }
 0x2b5   : > { %2983 = vmatpush.msrb.mxu3 %v1595_v11  ;;  %3060 = vmatpush.msra.mxu2 %v1764_v29  ;;  %v1848_v11 = vld [vmem:[%s5238_s9 + $0x6c0] sm:$0xff]  ;;  %v1646_v6 = vld [vmem:[%s5238_s9 + $0x70] sm:$0xff] }
 0x2b6   : > { %3091 = vmatpush.msrb.mxu0 %v1673_v31  ;;  %3112 = vmatpush.msrb.mxu1 %v1733_v10  ;;  %v1828_v29 = vld [vmem:[%s5238_s9 + $0x620] sm:$0xff]  ;;  %v1678_v31 = vld [vmem:[%s5238_s9 + $0x170] sm:$0xff] }
 0x2b7   : > { %2984 = vmatpush.msrb.mxu3 %v1591_v63  ;;  %3061 = vmatpush.msra.mxu2 %v1760_v18  ;;  %v1785_v63 = vld [vmem:[%s5238_s9 + $0x4c8] sm:$0xff]  ;;  %v1824_v18 = vld [vmem:[%s5238_s9 + $0x600] sm:$0xff]  ;;  %v1642_v10 = vld [vmem:[%s5238_s9 + $0x50] sm:$0xff] }
 0x2b8   : > { %3062 = vmatmul.f32.vlgmr.msra.gmra.mxu2 %v6068_v35  ;;  %3092 = vmatpush.msrb.mxu0 %v1669_v36  ;;  %v6148_v36 = vld [vmem:[%s6714_s14 + $0x18] sm:$0xff] }
 0x2b9   : > { %2985 = vmatpush.msrb.mxu3 %v1587_v17  ;;  %3126 = vmatpush.msrb.mxu2 %v1821_v37  ;;  %v1781_v17 = vld [vmem:[%s5238_s9 + $0x4a8] sm:$0xff] }
 0x2ba   : > { %3093 = vmatpush.msrb.mxu0 %v1665_v60  ;;  %3113 = vmatpush.msrb.mxu1 %v1729_v13  ;;  %v1885_v37 = vld [vmem:[%s5238_s9 + $0x7e8] sm:$0xff]  ;;  %v1638_v13 = vld [vmem:[%s5238_s9 + $0x30] sm:$0xff] }
 0x2bb   : > { %2986 = vmatpush.msrb.mxu3 %v1583_v21  ;;  %3127 = vmatpush.msrb.mxu2 %v1817_v40  ;;  %v1777_v21 = vld [vmem:[%s5238_s9 + $0x488] sm:$0xff] }
 0x2bc   : > { %3022 = vmatmul.f32.vlgmr.msra.gmra.mxu0 %v6083_v42  ;;  %3114 = vmatpush.msrb.mxu1 %v1725_v0  ;;  %v1761_v60 = vld [vmem:[%s5238_s9 + $0x408] sm:$0xff]  ;;  %v1634_v0 = vld [vmem:[%s5238_s9 + $0x10] sm:$0xff] }
 0x2bd   : > { %2987 = vmatpush.msrb.mxu3 %v1579_v26  ;;  %3094 = vmatpush.msrb.mxu0 %v1661_v44  ;;  %v1773_v26 = vld [vmem:[%s5238_s9 + $0x468] sm:$0xff] }
 0x2be   : > { %3128 = vmatpush.msrb.mxu2 %v1813_v47  ;;  %3115 = vmatpush.msrb.mxu1 %v1721_v5  ;;  %v1881_v40 = vld [vmem:[%s5238_s9 + $0x7c8] sm:$0xff]  ;;  %v1695_v5 = vld [vmem:[%s5238_s9 + $0x1f8] sm:$0xff] }
 0x2bf   : > { %2988 = vmatpush.msrb.mxu3 %v1575_v30  ;;  %3095 = vmatpush.msrb.mxu0 %v1657_v48  ;;  %v1769_v30 = vld [vmem:[%s5238_s9 + $0x448] sm:$0xff] }
 0x2c0   : > { %3129 = vmatpush.msrb.mxu2 %v1809_v52  ;;  %3116 = vmatpush.msrb.mxu1 %v1717_v24  ;;  %v1877_v44 = vld [vmem:[%s5238_s9 + $0x7a8] sm:$0xff]  ;;  %v1758_v52 = vld [vmem:[%s5238_s9 + $0x3f0] sm:$0xff]  ;;  %v1691_v24 = vld [vmem:[%s5238_s9 + $0x1d8] sm:$0xff] }
 0x2c1   : > { %2989 = vmatpush.msrb.mxu3 %v1571_v34  ;;  %3096 = vmatpush.msrb.mxu0 %v1653_v53  ;;  %v1765_v34 = vld [vmem:[%s5238_s9 + $0x428] sm:$0xff]  ;;  %v1814_v53 = vld [vmem:[%s5238_s9 + $0x5b0] sm:$0xff] }
 0x2c2   : > { %2990 = vmatmul.f32.vlgmr.msrb.gmra.mxu3 %v5963_v2  ;;  %v6089_v2 = vld [vmem:[%s6714_s14 + $0x8] sm:$0xff]  ;;  %3130 = vmatpush.msrb.mxu2 %v1805_v54  ;;  %v1697_v47 = vld [vmem:[%s5238_s9 + $0x208] sm:$0xff] }
 0x2c3   : > { %3066 = vmatpush.msra.mxu3 %v1884_v23  ;;  %3042 = vmatmul.f32.vlgmr.msra.gmra.mxu1 %v6089_v2  ;;  %v1674_v23 = vld [vmem:[%s5238_s9 + $0x150] sm:$0xff]  ;;  %v1873_v48 = vld [vmem:[%s5238_s9 + $0x788] sm:$0xff] }
 0x2c4   : > { %3097 = vmatpush.msrb.mxu0 %v1649_v55  ;;  %3131 = vmatpush.msrb.mxu2 %v1801_v51  ;;  %v1754_v54 = vld [vmem:[%s5238_s9 + $0x3d0] sm:$0xff] }
 0x2c5   : > { %3067 = vmatpush.msra.mxu3 %v1880_v39  ;;  %3117 = vmatpush.msrb.mxu1 %v1713_v28  ;;  %v1670_v39 = vld [vmem:[%s5238_s9 + $0x130] sm:$0xff]  ;;  %v1687_v28 = vld [vmem:[%s5238_s9 + $0x1b8] sm:$0xff] }
 0x2c6   : > { %3098 = vmatpush.msrb.mxu0 %v1645_v62  ;;  %3132 = vmatpush.msrb.mxu2 %v1797_v3  ;;  %v1810_v55 = vld [vmem:[%s5238_s9 + $0x590] sm:$0xff] }
 0x2c7   : > { %3068 = vmatpush.msra.mxu3 %v1876_v43  ;;  %3118 = vmatpush.msrb.mxu1 %v1709_v32  ;;  %v1701_v43 = vld [vmem:[%s5238_s9 + $0x228] sm:$0xff]  ;;  %v1750_v51 = vld [vmem:[%s5238_s9 + $0x3b0] sm:$0xff]  ;;  %v1683_v32 = vld [vmem:[%s5238_s9 + $0x198] sm:$0xff] }
 0x2c8   : > { %3099 = vmatpush.msrb.mxu0 %v1641_v4  ;;  %3133 = vmatpush.msrb.mxu2 %v1793_v8  ;;  %v1806_v62 = vld [vmem:[%s5238_s9 + $0x570] sm:$0xff] }
 0x2c9   : > { %3069 = vmatpush.msra.mxu3 %v1872_v46  ;;  %3119 = vmatpush.msrb.mxu1 %v1705_v38  ;;  %v1818_v46 = vld [vmem:[%s5238_s9 + $0x5d0] sm:$0xff] }
 0x2ca   : > { %3100 = vmatpush.msrb.mxu0 %v1637_v9  ;;  %3134 = vmatpush.msrb.mxu2 %v1789_v58  ;;  %v1746_v3 = vld [vmem:[%s5238_s9 + $0x390] sm:$0xff] }
 0x2cb   : > { %3070 = vmatpush.msra.mxu3 %v1868_v50  ;;  %3120 = vmatpush.msrb.mxu1 %v1701_v43  ;;  %v1869_v50 = vld [vmem:[%s5238_s9 + $0x768] sm:$0xff]  ;;  %v1802_v4 = vld [vmem:[%s5238_s9 + $0x550] sm:$0xff] }
 0x2cc   : > { %3101 = vmatpush.msrb.mxu0 %v1633_v12  ;;  %3135 = vmatpush.msrb.mxu2 %v1785_v63  ;;  %v1742_v8 = vld [vmem:[%s5238_s9 + $0x370] sm:$0xff] }
 0x2cd   : > { %3071 = vmatpush.msra.mxu3 %v1864_v57  ;;  %3121 = vmatpush.msrb.mxu1 %v1697_v47  ;;  %v1865_v57 = vld [vmem:[%s5238_s9 + $0x748] sm:$0xff]  ;;  %v1798_v9 = vld [vmem:[%s5238_s9 + $0x530] sm:$0xff] }
 0x2ce   : > { %3166 = vmatpush.msra.mxu0 %v1694_v15  ;;  %3136 = vmatpush.msrb.mxu2 %v1781_v17  ;;  %v1738_v58 = vld [vmem:[%s5238_s9 + $0x350] sm:$0xff] }
 0x2cf   : > { %3072 = vmatpush.msra.mxu3 %v1860_v59  ;;  %3102 = vmatmul.f32.vlgmr.msrb.gmra.mxu0 %v6083_v42  ;;  %v1861_v59 = vld [vmem:[%s5238_s9 + $0x728] sm:$0xff]  ;;  %v1794_v12 = vld [vmem:[%s5238_s9 + $0x510] sm:$0xff] }
 0x2d0   : > { %3167 = vmatpush.msra.mxu0 %v1690_v19  ;;  %3137 = vmatpush.msrb.mxu2 %v1777_v21  ;;  %v1734_v63 = vld [vmem:[%s5238_s9 + $0x330] sm:$0xff] }
 0x2d1   : > { %3073 = vmatpush.msra.mxu3 %v1856_v61  ;;  %3122 = vmatmul.f32.vlgmr.msrb.gmra.mxu1 %v6089_v2  ;;  %v1857_v61 = vld [vmem:[%s5238_s9 + $0x708] sm:$0xff]  ;;  %v1790_v15 = vld [vmem:[%s5238_s9 + $0x4f0] sm:$0xff] }
 0x2d2   : > { %3168 = vmatpush.msra.mxu0 %v1686_v22  ;;  %3138 = vmatpush.msrb.mxu2 %v1773_v26  ;;  %v1730_v17 = vld [vmem:[%s5238_s9 + $0x310] sm:$0xff] }
 0x2d3   : > { %3074 = vmatpush.msra.mxu3 %v1852_v7  ;;  %3186 = vmatpush.msra.mxu1 %v1758_v52  ;;  %v1853_v7 = vld [vmem:[%s5238_s9 + $0x6e8] sm:$0xff]  ;;  %v1786_v19 = vld [vmem:[%s5238_s9 + $0x4d0] sm:$0xff]  ;;  %v2670_v52 = vld [vmem:[#allocation2 + $0x10] sm:$0xff] }
 0x2d4   : > { %3169 = vmatpush.msra.mxu0 %v1682_v27  ;;  %3139 = vmatpush.msrb.mxu2 %v1769_v30  ;;  %v1726_v21 = vld [vmem:[%s5238_s9 + $0x2f0] sm:$0xff] }
 0x2d5   : > { %3075 = vmatpush.msra.mxu3 %v1848_v11  ;;  %3187 = vmatpush.msra.mxu1 %v1754_v54  ;;  %v1849_v11 = vld [vmem:[%s5238_s9 + $0x6c8] sm:$0xff]  ;;  %v1782_v22 = vld [vmem:[%s5238_s9 + $0x4b0] sm:$0xff] }
 0x2d6   : > { %3170 = vmatpush.msra.mxu0 %v1678_v31  ;;  %3140 = vmatpush.msrb.mxu2 %v1765_v34  ;;  %v1722_v26 = vld [vmem:[%s5238_s9 + $0x2d0] sm:$0xff]  ;;  %v1825_v34 = vld [vmem:[%s5238_s9 + $0x608] sm:$0xff] }
 0x2d7   : > { %3076 = vmatpush.msra.mxu3 %v1844_v14  ;;  %3188 = vmatpush.msra.mxu1 %v1750_v51  ;;  %v1845_v14 = vld [vmem:[%s5238_s9 + $0x6a8] sm:$0xff]  ;;  %v1778_v27 = vld [vmem:[%s5238_s9 + $0x490] sm:$0xff] }
 0x2d8   : > { %3171 = vmatpush.msra.mxu0 %v1674_v23  ;;  %3141 = vmatpush.msrb.mxu2 %v1761_v60  ;;  %v1718_v30 = vld [vmem:[%s5238_s9 + $0x2b0] sm:$0xff] }
 0x2d9   : > { %3077 = vmatpush.msra.mxu3 %v1840_v16  ;;  %3142 = vmatmul.f32.vlgmr.msrb.gmra.mxu2 %v6068_v35  ;;  %v1841_v16 = vld [vmem:[%s5238_s9 + $0x688] sm:$0xff]  ;;  %v1774_v31 = vld [vmem:[%s5238_s9 + $0x470] sm:$0xff] }
 0x2da   : > { %3172 = vmatpush.msra.mxu0 %v1670_v39  ;;  %3206 = vmatpush.msra.mxu2 %v1822_v41  ;;  %v1714_v23 = vld [vmem:[%s5238_s9 + $0x290] sm:$0xff]  ;;  %v2731_v38 = vpop.f32.mrf.mxu2 }
 0x2db   : > { %3078 = vmatpush.msra.mxu3 %v1836_v20  ;;  %3189 = vmatpush.msra.mxu1 %v1746_v3  ;;  %v1837_v20 = vld [vmem:[%s5238_s9 + $0x668] sm:$0xff]  ;;  %v1770_v60 = vld [vmem:[%s5238_s9 + $0x450] sm:$0xff] }
 0x2dc   : > { %3173 = vmatpush.msra.mxu0 %v1666_v45  ;;  %3207 = vmatpush.msra.mxu2 %v1818_v46  ;;  %v1886_v39 = vld [vmem:[%s5238_s9 + $0x7f0] sm:$0xff]  ;;  %v1675_v46 = vld [vmem:[%s5238_s9 + $0x158] sm:$0xff] }
 0x2dd   : > { %3079 = vmatpush.msra.mxu3 %v1832_v25  ;;  %3190 = vmatpush.msra.mxu1 %v1742_v8  ;;  %v1833_v25 = vld [vmem:[%s5238_s9 + $0x648] sm:$0xff]  ;;  %v1710_v41 = vld [vmem:[%s5238_s9 + $0x270] sm:$0xff] }
 0x2de   : > { %3174 = vmatpush.msra.mxu0 %v1662_v49  ;;  %3208 = vmatpush.msra.mxu2 %v1814_v53  ;;  %v1766_v43 = vld [vmem:[%s5238_s9 + $0x430] sm:$0xff] }
 0x2df   : > { %3080 = vmatpush.msra.mxu3 %v1828_v29  ;;  %3191 = vmatpush.msra.mxu1 %v1738_v58  ;;  %v1829_v29 = vld [vmem:[%s5238_s9 + $0x628] sm:$0xff]  ;;  %v1882_v45 = vld [vmem:[%s5238_s9 + $0x7d0] sm:$0xff] }
 0x2e0   : > { %3175 = vmatpush.msra.mxu0 %v1658_v33  ;;  %3209 = vmatpush.msra.mxu2 %v1810_v55  ;;  %v1706_v47 = vld [vmem:[%s5238_s9 + $0x250] sm:$0xff]  ;;  %v1671_v33 = vld [vmem:[%s5238_s9 + $0x138] sm:$0xff] }
 0x2e1   : > { %3081 = vmatpush.msra.mxu3 %v1824_v18  ;;  %3192 = vmatpush.msra.mxu1 %v1734_v63  ;;  %v2691_v18 = vpop.f32.mrf.mxu0  ;;  %v1874_v54 = vld [vmem:[%s5238_s9 + $0x790] sm:$0xff] }
 0x2e2   : > { %3082 = vmatmul.f32.vlgmr.msra.gmra.mxu3 %v6148_v36  ;;  %3176 = vmatpush.msra.mxu0 %v1654_v56  ;;  %v1702_v56 = vld [vmem:[%s5238_s9 + $0x230] sm:$0xff] }
 0x2e3   : > { %3146 = vmatpush.msrb.mxu3 %v1885_v37  ;;  %3210 = vmatpush.msra.mxu2 %v1806_v62  ;;  %v2711_v37 = vpop.f32.mrf.mxu1  ;;  %v1667_v62 = vld [vmem:[%s5238_s9 + $0x118] sm:$0xff]  ;;  %v1870_v3 = vld [vmem:[%s5238_s9 + $0x770] sm:$0xff] }
 0x2e4   : > { %3177 = vmatpush.msra.mxu0 %v1650_v1  ;;  %3193 = vmatpush.msra.mxu1 %v1730_v17  ;;  %v1819_v1 = vld [vmem:[%s5238_s9 + $0x5d8] sm:$0xff]  ;;  %v1866_v8 = vld [vmem:[%s5238_s9 + $0x750] sm:$0xff] }
 0x2e5   : > { %3147 = vmatpush.msrb.mxu3 %v1881_v40  ;;  %3211 = vmatpush.msra.mxu2 %v1802_v4  ;;  %v1679_v40 = vld [vmem:[%s5238_s9 + $0x178] sm:$0xff]  ;;  %v1698_v4 = vld [vmem:[%s5238_s9 + $0x210] sm:$0xff] }
 0x2e6   : > { %3178 = vmatpush.msra.mxu0 %v1646_v6  ;;  %3194 = vmatpush.msra.mxu1 %v1726_v21  ;;  %v2811_v6 = vpop.f32.mrf.mxu2 }
 0x2e7   : > { %3148 = vmatpush.msrb.mxu3 %v1877_v44  ;;  %3212 = vmatpush.msra.mxu2 %v1798_v9  ;;  %v2712_v44 = vadd.f32 %v2711_v37, %v2691_v18  ;;  %v1663_v9 = vld [vmem:[%s5238_s9 + $0xf8] sm:$0xff] }
 0x2e8   : > { %3179 = vmatpush.msra.mxu0 %v1642_v10  ;;  %3195 = vmatpush.msra.mxu1 %v1722_v26  ;;  %v1759_v10 = vld [vmem:[%s5238_s9 + $0x3f8] sm:$0xff] }
 0x2e9   : > { %3149 = vmatpush.msrb.mxu3 %v1873_v48  ;;  %3213 = vmatpush.msra.mxu2 %v1794_v12  ;;  %v1762_v48 = vld [vmem:[%s5238_s9 + $0x410] sm:$0xff]  ;;  %v2732_v49 = vadd.f32 %v2731_v38, %v2712_v44  ;;  %v1803_v26 = vld [vmem:[%s5238_s9 + $0x558] sm:$0xff] }
 0x2ea   : > { %3180 = vmatpush.msra.mxu0 %v1638_v13  ;;  %3196 = vmatpush.msra.mxu1 %v1718_v30  ;;  %v1862_v12 = vld [vmem:[%s5238_s9 + $0x730] sm:$0xff]  ;;  %v1659_v13 = vld [vmem:[%s5238_s9 + $0xd8] sm:$0xff] }
 0x2eb   : > { %3150 = vmatpush.msrb.mxu3 %v1869_v50  ;;  %3214 = vmatpush.msra.mxu2 %v1790_v15  ;;  %v1878_v50 = vld [vmem:[%s5238_s9 + $0x7b0] sm:$0xff]  ;;  %v2791_v51 = vpop.f32.mrf.mxu1  ;;  %v1755_v15 = vld [vmem:[%s5238_s9 + $0x3d8] sm:$0xff] }
 0x2ec   : > { %3181 = vmatpush.msra.mxu0 %v1634_v0  ;;  %3197 = vmatpush.msra.mxu1 %v1714_v23  ;;  %v1811_v0 = vld [vmem:[%s5238_s9 + $0x598] sm:$0xff]  ;;  %v1842_v23 = vld [vmem:[%s5238_s9 + $0x690] sm:$0xff] }
 0x2ed   : > { %3151 = vmatpush.msrb.mxu3 %v1865_v57  ;;  %3215 = vmatpush.msra.mxu2 %v1786_v19  ;;  %v1823_v57 = vld [vmem:[%s5238_s9 + $0x5f8] sm:$0xff]  ;;  %v1834_v44 = vld [vmem:[%s5238_s9 + $0x650] sm:$0xff] }
 0x2ee   : > { %3246 = vmatpush.msrb.mxu0 %v1695_v5  ;;  %3198 = vmatpush.msra.mxu1 %v1710_v41  ;;  %v1655_v19 = vld [vmem:[%s5238_s9 + $0xb8] sm:$0xff] }
 0x2ef   : > { %3152 = vmatpush.msrb.mxu3 %v1861_v59  ;;  %3216 = vmatpush.msra.mxu2 %v1782_v22  ;;  %v2771_v59 = vpop.f32.mrf.mxu0  ;;  %v1751_v5 = vld [vmem:[%s5238_s9 + $0x3b8] sm:$0xff]  ;;  %v1854_v22 = vld [vmem:[%s5238_s9 + $0x6f0] sm:$0xff] }
 0x2f0   : > { %3247 = vmatpush.msrb.mxu0 %v1691_v24  ;;  %3199 = vmatpush.msra.mxu1 %v1706_v47  ;;  %v1651_v24 = vld [vmem:[%s5238_s9 + $0x98] sm:$0xff] }
 0x2f1   : > { %3153 = vmatpush.msrb.mxu3 %v1857_v61  ;;  %3217 = vmatpush.msra.mxu2 %v1778_v27  ;;  %v1850_v27 = vld [vmem:[%s5238_s9 + $0x6d0] sm:$0xff]  ;;  %v1799_v30 = vld [vmem:[%s5238_s9 + $0x538] sm:$0xff] }
 0x2f2   : > { %3248 = vmatpush.msrb.mxu0 %v1687_v28  ;;  %3200 = vmatpush.msra.mxu1 %v1702_v56  ;;  %v1647_v28 = vld [vmem:[%s5238_s9 + $0x78] sm:$0xff] }
 0x2f3   : > { %3154 = vmatpush.msrb.mxu3 %v1853_v7  ;;  %3218 = vmatpush.msra.mxu2 %v1774_v31  ;;  %v2792_v7 = vadd.f32 %v2791_v51, %v2771_v59  ;;  %v1846_v31 = vld [vmem:[%s5238_s9 + $0x6b0] sm:$0xff]  ;;  %v1739_v18 = vld [vmem:[%s5238_s9 + $0x358] sm:$0xff] }
 0x2f4   : > { %3249 = vmatpush.msrb.mxu0 %v1683_v32  ;;  %3201 = vmatpush.msra.mxu1 %v1698_v4  ;;  %v1643_v32 = vld [vmem:[%s5238_s9 + $0x58] sm:$0xff] }
 0x2f5   : > { %3155 = vmatpush.msrb.mxu3 %v1849_v11  ;;  %3219 = vmatpush.msra.mxu2 %v1770_v60  ;;  %v1815_v11 = vld [vmem:[%s5238_s9 + $0x5b8] sm:$0xff]  ;;  %v2812_v58 = vadd.f32 %v2811_v6, %v2792_v7  ;;  %v1932_v6 = vld [vmem:[%s5246_s22 + $0x160] sm:$0xff] }
 0x2f6   : > { %3250 = vmatpush.msrb.mxu0 %v1679_v40  ;;  %3202 = vmatmul.f32.vlgmr.msra.gmra.mxu1 %v6089_v2  ;;  %v1639_v37 = vld [vmem:[%s5238_s9 + $0x38] sm:$0xff] }
 0x2f7   : > { %3156 = vmatpush.msrb.mxu3 %v1845_v14  ;;  %3220 = vmatpush.msra.mxu2 %v1766_v43  ;;  %v2671_v14 = vld [vmem:[#allocation2] sm:$0xff]  ;;  %v1735_v38 = vld [vmem:[%s5238_s9 + $0x338] sm:$0xff] }
 0x2f8   : > { %3251 = vmatpush.msrb.mxu0 %v1675_v46  ;;  %3266 = vmatpush.msrb.mxu1 %v1759_v10  ;;  %v1791_v60 = vld [vmem:[%s5238_s9 + $0x4f8] sm:$0xff] }
 0x2f9   : > { %3157 = vmatpush.msrb.mxu3 %v1841_v16  ;;  %3221 = vmatpush.msra.mxu2 %v1762_v48  ;;  %v1858_v16 = vld [vmem:[%s5238_s9 + $0x710] sm:$0xff]  ;;  %v1635_v40 = vld [vmem:[%s5238_s9 + $0x18] sm:$0xff] }
 0x2fa   : > { %3222 = vmatmul.f32.vlgmr.msra.gmra.mxu2 %v6068_v35  ;;  %3252 = vmatpush.msrb.mxu0 %v1671_v33  ;;  %v1731_v41 = vld [vmem:[%s5238_s9 + $0x318] sm:$0xff]  ;;  %v1830_v48 = vld [vmem:[%s5238_s9 + $0x630] sm:$0xff] }
 0x2fb   : > { %3158 = vmatpush.msrb.mxu3 %v1837_v20  ;;  %3286 = vmatpush.msrb.mxu2 %v1823_v57  ;;  %v1807_v20 = vld [vmem:[%s5238_s9 + $0x578] sm:$0xff]  ;;  %v1940_v33 = vld [vmem:[%s5246_s22 + $0x1a0] sm:$0xff]  ;;  %v2851_v57 = vpop.f32.mrf.mxu0  ;;  %v2891_v51 = vpop.f32.mrf.mxu2 }
 0x2fc   : > { %3253 = vmatpush.msrb.mxu0 %v1667_v62  ;;  %3267 = vmatpush.msrb.mxu1 %v1755_v15  ;;  %v1787_v43 = vld [vmem:[%s5238_s9 + $0x4d8] sm:$0xff]  ;;  %v1936_v62 = vld [vmem:[%s5246_s22 + $0x180] sm:$0xff] }
 0x2fd   : > { %3159 = vmatpush.msrb.mxu3 %v1833_v25  ;;  %3287 = vmatpush.msrb.mxu2 %v1819_v1  ;;  %v1747_v25 = vld [vmem:[%s5238_s9 + $0x398] sm:$0xff] }
 0x2fe   : > { %3182 = vmatmul.f32.vlgmr.msra.gmra.mxu0 %v6083_v42  ;;  %3268 = vmatpush.msrb.mxu1 %v1751_v5  ;;  %v1727_v46 = vld [vmem:[%s5238_s9 + $0x2f8] sm:$0xff]  ;;  %v1920_v5 = vld [vmem:[%s5246_s22 + $0x100] sm:$0xff] }
 0x2ff   : > { %3160 = vmatpush.msrb.mxu3 %v1829_v29  ;;  %3254 = vmatpush.msrb.mxu0 %v1663_v9  ;;  %v1743_v29 = vld [vmem:[%s5238_s9 + $0x378] sm:$0xff] }
 0x300   : > { %3288 = vmatpush.msrb.mxu2 %v1815_v11  ;;  %3269 = vmatpush.msrb.mxu1 %v1747_v25  ;;  %v1783_v47 = vld [vmem:[%s5238_s9 + $0x4b8] sm:$0xff]  ;;  %v2672_v11 = vld [vmem:[#allocation2 + $0x18] sm:$0xff]  ;;  %v2012_v25 = vld [vmem:[%s5246_s22 + $0x3e0] sm:$0xff] }
 0x301   : > { %3161 = vmatpush.msrb.mxu3 %v1825_v34  ;;  %3255 = vmatpush.msrb.mxu0 %v1659_v13  ;;  %v1795_v34 = vld [vmem:[%s5238_s9 + $0x518] sm:$0xff] }
 0x302   : > { %3162 = vmatmul.f32.vlgmr.msrb.gmra.mxu3 %v6148_v36  ;;  %3289 = vmatpush.msrb.mxu2 %v1811_v0  ;;  %v1887_v56 = vld [vmem:[%s5238_s9 + $0x7f8] sm:$0xff]  ;;  %v1924_v0 = vld [vmem:[%s5246_s22 + $0x120] sm:$0xff] }
 0x303   : > { %3226 = vmatpush.msra.mxu3 %v1886_v39  ;;  %3256 = vmatpush.msrb.mxu0 %v1655_v19  ;;  %v1838_v39 = vld [vmem:[%s5238_s9 + $0x670] sm:$0xff]  ;;  %v1775_v59 = vld [vmem:[%s5238_s9 + $0x478] sm:$0xff] }
 0x304   : > { %3290 = vmatpush.msrb.mxu2 %v1807_v20  ;;  %3270 = vmatpush.msrb.mxu1 %v1743_v29  ;;  %v1715_v1 = vld [vmem:[%s5238_s9 + $0x298] sm:$0xff]  ;;  %v1908_v29 = vld [vmem:[%s5246_s22 + $0xa0] sm:$0xff] }
 0x305   : > { %3227 = vmatpush.msra.mxu3 %v1882_v45  ;;  %v2751_v53 = vpop.f32.mrf.mxu3  ;;  %3257 = vmatpush.msrb.mxu0 %v1651_v24  ;;  %v1948_v45 = vld [vmem:[%s5246_s22 + $0x1e0] sm:$0xff]  ;;  %v1771_v4 = vld [vmem:[%s5238_s9 + $0x458] sm:$0xff] }
 0x306   : > { %v2752_v55 = vadd.f32 %v2751_v53, %v2732_v49  ;;  %3291 = vmatpush.msrb.mxu2 %v1803_v26  ;;  %3271 = vmatpush.msrb.mxu1 %v1739_v18  ;;  %v1944_v49 = vld [vmem:[%s5246_s22 + $0x1c0] sm:$0xff]  ;;  %v1711_v7 = vld [vmem:[%s5238_s9 + $0x278] sm:$0xff] }
 0x307   : > { %3228 = vmatpush.msra.mxu3 %v1878_v50  ;;  %3258 = vmatpush.msrb.mxu0 %v1647_v28  ;;  %v1723_v50 = vld [vmem:[%s5238_s9 + $0x2d8] sm:$0xff]  ;;  %v1826_v53 = vld [vmem:[%s5238_s9 + $0x610] sm:$0xff] }
 0x308   : > { %v2994_v61 = vadd.f32 %v2752_v55, %v2670_v52  ;;  %3292 = vmatpush.msrb.mxu2 %v1799_v30  ;;  %3272 = vmatpush.msrb.mxu1 %v1735_v38  ;;  %v1779_v52 = vld [vmem:[%s5238_s9 + $0x498] sm:$0xff]  ;;  %v1916_v24 = vld [vmem:[%s5246_s22 + $0xe0] sm:$0xff] }
 0x309   : > { %3229 = vmatpush.msra.mxu3 %v1874_v54  ;;  %3259 = vmatpush.msrb.mxu0 %v1643_v32  ;;  %v2871_v54 = vpop.f32.mrf.mxu1  ;;  %v1719_v55 = vld [vmem:[%s5238_s9 + $0x2b8] sm:$0xff]  ;;  %v2004_v30 = vld [vmem:[%s5246_s22 + $0x3a0] sm:$0xff] }
 0x30a   : > { %2998 = vst [vmem:[#allocation2 + $0x10] sm:$0xff] %v2994_v61  ;;  %3293 = vmatpush.msrb.mxu2 %v1795_v34  ;;  %3273 = vmatpush.msrb.mxu1 %v1731_v41  ;;  %v2872_v61 = vadd.f32 %v2871_v54, %v2851_v57  ;;  %v1879_v9 = vld [vmem:[%s5238_s9 + $0x7b8] sm:$0xff]  ;;  %v1900_v18 = vld [vmem:[%s5246_s22 + $0x60] sm:$0xff] }
 0x30b   : > { %3230 = vmatpush.msra.mxu3 %v1870_v3  ;;  %3260 = vmatpush.msrb.mxu0 %v1639_v37  ;;  %v1883_v3 = vld [vmem:[%s5238_s9 + $0x7d8] sm:$0xff]  ;;  %v1996_v34 = vld [vmem:[%s5246_s22 + $0x360] sm:$0xff] }
 0x30c   : > { %3294 = vmatpush.msrb.mxu2 %v1791_v60  ;;  %3274 = vmatpush.msrb.mxu1 %v1727_v46  ;;  %v1767_v10 = vld [vmem:[%s5238_s9 + $0x438] sm:$0xff]  ;;  %v1896_v37 = vld [vmem:[%s5246_s22 + $0x40] sm:$0xff] }
 0x30d   : > { %3231 = vmatpush.msra.mxu3 %v1866_v8  ;;  %v2831_v63 = vpop.f32.mrf.mxu3  ;;  %3261 = vmatpush.msrb.mxu0 %v1635_v40  ;;  %v2892_v8 = vadd.f32 %v2891_v51, %v2872_v61  ;;  %v1707_v13 = vld [vmem:[%s5238_s9 + $0x258] sm:$0xff]  ;;  %v1992_v38 = vld [vmem:[%s5246_s22 + $0x340] sm:$0xff] }
 0x30e   : > { %v2832_v17 = vadd.f32 %v2831_v63, %v2812_v58  ;;  %3295 = vmatpush.msrb.mxu2 %v1787_v43  ;;  %3275 = vmatpush.msrb.mxu1 %v1723_v50  ;;  %v1763_v15 = vld [vmem:[%s5238_s9 + $0x418] sm:$0xff]  ;;  %v1988_v40 = vld [vmem:[%s5246_s22 + $0x320] sm:$0xff]  ;;  %v2931_v50 = vpop.f32.mrf.mxu0 }
 0x30f   : > { %3232 = vmatpush.msra.mxu3 %v1862_v12  ;;  %3370 = vmatpush.msra.mxu0 %v1948_v45  ;;  %v1928_v12 = vld [vmem:[%s5246_s22 + $0x140] sm:$0xff]  ;;  %v1703_v19 = vld [vmem:[%s5238_s9 + $0x238] sm:$0xff] }
 0x310   : > { %v2995_v21 = vadd.f32 %v2832_v17, %v2671_v14  ;;  %3296 = vmatpush.msrb.mxu2 %v1783_v47  ;;  %3276 = vmatpush.msrb.mxu1 %v1719_v55  ;;  %v1875_v14 = vld [vmem:[%s5238_s9 + $0x798] sm:$0xff]  ;;  %v1888_v43 = vld [vmem:[%s5246_s22] sm:$0xff] }
 0x311   : > { %3233 = vmatpush.msra.mxu3 %v1858_v16  ;;  %3371 = vmatpush.msra.mxu0 %v1944_v49  ;;  %v1871_v17 = vld [vmem:[%s5238_s9 + $0x778] sm:$0xff]  ;;  %v1984_v45 = vld [vmem:[%s5246_s22 + $0x300] sm:$0xff] }
 0x312   : > { %2999 = vst [vmem:[#allocation2] sm:$0xff] %v2995_v21  ;;  %3297 = vmatpush.msrb.mxu2 %v1779_v52  ;;  %3277 = vmatpush.msrb.mxu1 %v1715_v1  ;;  %v1867_v20 = vld [vmem:[%s5238_s9 + $0x758] sm:$0xff]  ;;  %v2951_v52 = vpop.f32.mrf.mxu1 }
 0x313   : > { %3234 = vmatpush.msra.mxu3 %v1854_v22  ;;  %3372 = vmatpush.msra.mxu0 %v1940_v33  ;;  %v1699_v21 = vld [vmem:[%s5238_s9 + $0x218] sm:$0xff]  ;;  %v1976_v33 = vld [vmem:[%s5246_s22 + $0x2c0] sm:$0xff]  ;;  %v2952_v55 = vadd.f32 %v2951_v52, %v2931_v50 }
 0x314   : > { %3298 = vmatpush.msrb.mxu2 %v1775_v59  ;;  %3278 = vmatpush.msrb.mxu1 %v1711_v7  ;;  %v1863_v22 = vld [vmem:[%s5238_s9 + $0x738] sm:$0xff] }
 0x315   : > { %3235 = vmatpush.msra.mxu3 %v1850_v27  ;;  %3373 = vmatpush.msra.mxu0 %v1936_v62  ;;  %v1859_v26 = vld [vmem:[%s5238_s9 + $0x718] sm:$0xff]  ;;  %v2008_v27 = vld [vmem:[%s5246_s22 + $0x3c0] sm:$0xff] }
 0x316   : > { %3299 = vmatpush.msrb.mxu2 %v1771_v4  ;;  %3279 = vmatpush.msrb.mxu1 %v1707_v13  ;;  %v1855_v28 = vld [vmem:[%s5238_s9 + $0x6f8] sm:$0xff] }
 0x317   : > { %3236 = vmatpush.msra.mxu3 %v1846_v31  ;;  %3374 = vmatpush.msra.mxu0 %v1932_v6  ;;  %v1851_v31 = vld [vmem:[%s5238_s9 + $0x6d8] sm:$0xff]  ;;  %v1968_v6 = vld [vmem:[%s5246_s22 + $0x280] sm:$0xff] }
 0x318   : > { %3300 = vmatpush.msrb.mxu2 %v1767_v10  ;;  %3280 = vmatpush.msrb.mxu1 %v1703_v19  ;;  %v1847_v32 = vld [vmem:[%s5238_s9 + $0x6b8] sm:$0xff] }
 0x319   : > { %3237 = vmatpush.msra.mxu3 %v1842_v23  ;;  %3375 = vmatpush.msra.mxu0 %v1928_v12  ;;  %v1843_v23 = vld [vmem:[%s5238_s9 + $0x698] sm:$0xff]  ;;  %v1952_v12 = vld [vmem:[%s5246_s22 + $0x200] sm:$0xff] }
 0x31a   : > { %3301 = vmatpush.msrb.mxu2 %v1763_v15  ;;  %3281 = vmatpush.msrb.mxu1 %v1699_v21  ;;  %v1839_v60 = vld [vmem:[%s5238_s9 + $0x678] sm:$0xff]  ;;  %v2072_v15 = vld [vmem:[%s5246_s22 + $0x5c0] sm:$0xff] }
 0x31b   : > { %3238 = vmatpush.msra.mxu3 %v1838_v39  ;;  %3302 = vmatmul.f32.vlgmr.msrb.gmra.mxu2 %v6068_v35  ;;  %v1912_v35 = vld [vmem:[%s5246_s22 + $0xc0] sm:$0xff]  ;;  %v1835_v41 = vld [vmem:[%s5238_s9 + $0x658] sm:$0xff]  ;;  %v2971_v57 = vpop.f32.mrf.mxu2 }
 0x31c   : > { %3376 = vmatpush.msra.mxu0 %v1924_v0  ;;  %3282 = vmatmul.f32.vlgmr.msrb.gmra.mxu1 %v6089_v2  ;;  %v2000_v2 = vld [vmem:[%s5246_s22 + $0x380] sm:$0xff]  ;;  %v1831_v46 = vld [vmem:[%s5238_s9 + $0x638] sm:$0xff]  ;;  %v2972_v51 = vadd.f32 %v2971_v57, %v2952_v55 }
 0x31d   : > { %3239 = vmatpush.msra.mxu3 %v1834_v44  ;;  %3262 = vmatmul.f32.vlgmr.msrb.gmra.mxu0 %v6083_v42  ;;  %v1904_v42 = vld [vmem:[%s5246_s22 + $0x80] sm:$0xff]  ;;  %v1949_v44 = vld [vmem:[%s5246_s22 + $0x1e8] sm:$0xff] }
 0x31e   : > { %3377 = vmatpush.msra.mxu0 %v1920_v5  ;;  %3390 = vmatpush.msra.mxu1 %v2012_v25  ;;  %v1892_v39 = vld [vmem:[%s5246_s22 + $0x20] sm:$0xff]  ;;  %v1945_v47 = vld [vmem:[%s5246_s22 + $0x1c8] sm:$0xff] }
 0x31f   : > { %3240 = vmatpush.msra.mxu3 %v1830_v48  ;;  %v1980_v48 = vld [vmem:[%s5246_s22 + $0x2e0] sm:$0xff]  ;;  %v1827_v49 = vld [vmem:[%s5238_s9 + $0x618] sm:$0xff] }
 0x320   : > { %3378 = vmatpush.msra.mxu0 %v1916_v24  ;;  %3391 = vmatpush.msra.mxu1 %v2008_v27  ;;  %v1937_v54 = vld [vmem:[%s5246_s22 + $0x188] sm:$0xff]  ;;  %v2060_v24 = vld [vmem:[%s5246_s22 + $0x560] sm:$0xff] }
 0x321   : > { %3241 = vmatpush.msra.mxu3 %v1826_v53  ;;  %v1941_v53 = vld [vmem:[%s5246_s22 + $0x1a8] sm:$0xff] }
 0x322   : > { %3242 = vmatmul.f32.vlgmr.msra.gmra.mxu3 %v6148_v36  ;;  %3379 = vmatpush.msra.mxu0 %v1912_v35  ;;  %v1933_v59 = vld [vmem:[%s5246_s22 + $0x168] sm:$0xff]  ;;  %v2056_v35 = vld [vmem:[%s5246_s22 + $0x540] sm:$0xff] }
 0x323   : > { %3306 = vmatpush.msrb.mxu3 %v1887_v56  ;;  %3392 = vmatpush.msra.mxu1 %v2004_v30  ;;  %v1972_v56 = vld [vmem:[%s5246_s22 + $0x2a0] sm:$0xff]  ;;  %v1929_v61 = vld [vmem:[%s5246_s22 + $0x148] sm:$0xff] }
 0x324   : > { %3380 = vmatpush.msra.mxu0 %v1908_v29  ;;  %v2673_v62 = vld [vmem:[#allocation2 + $0x8] sm:$0xff] }
 0x325   : > { %3307 = vmatpush.msrb.mxu3 %v1883_v3  ;;  %v2911_v58 = vpop.f32.mrf.mxu3  ;;  %3393 = vmatpush.msra.mxu1 %v2000_v2  ;;  %v1921_v7 = vld [vmem:[%s5246_s22 + $0x108] sm:$0xff]  ;;  %v2052_v29 = vld [vmem:[%s5246_s22 + $0x520] sm:$0xff] }
 0x326   : > { %v2912_v63 = vadd.f32 %v2911_v58, %v2892_v8  ;;  %3381 = vmatpush.msra.mxu0 %v1904_v42  ;;  %v1964_v8 = vld [vmem:[%s5246_s22 + $0x260] sm:$0xff]  ;;  %v1917_v10 = vld [vmem:[%s5246_s22 + $0xe8] sm:$0xff] }
 0x327   : > { %3308 = vmatpush.msrb.mxu3 %v1879_v9  ;;  %3394 = vmatpush.msra.mxu1 %v1996_v34  ;;  %v1960_v9 = vld [vmem:[%s5246_s22 + $0x240] sm:$0xff]  ;;  %v1913_v58 = vld [vmem:[%s5246_s22 + $0xc8] sm:$0xff] }
 0x328   : > { %v2996_v16 = vadd.f32 %v2912_v63, %v2672_v11  ;;  %3382 = vmatpush.msra.mxu0 %v1900_v18  ;;  %v1956_v11 = vld [vmem:[%s5246_s22 + $0x220] sm:$0xff]  ;;  %v1909_v13 = vld [vmem:[%s5246_s22 + $0xa8] sm:$0xff] }
 0x329   : > { %3309 = vmatpush.msrb.mxu3 %v1875_v14  ;;  %3395 = vmatpush.msra.mxu1 %v1992_v38  ;;  %v2076_v14 = vld [vmem:[%s5246_s22 + $0x5e0] sm:$0xff]  ;;  %v2013_v63 = vld [vmem:[%s5246_s22 + $0x3e8] sm:$0xff] }
 0x32a   : > { %3000 = vst [vmem:[#allocation2 + $0x18] sm:$0xff] %v2996_v16  ;;  %3383 = vmatpush.msra.mxu0 %v1896_v37  ;;  %3410 = vmatpush.msra.mxu2 %v2076_v14  ;;  %v1905_v0 = vld [vmem:[%s5246_s22 + $0x88] sm:$0xff]  ;;  %v2048_v2 = vld [vmem:[%s5246_s22 + $0x500] sm:$0xff] }
 0x32b   : > { %3310 = vmatpush.msrb.mxu3 %v1871_v17  ;;  %3396 = vmatpush.msra.mxu1 %v1988_v40  ;;  %v2009_v16 = vld [vmem:[%s5246_s22 + $0x3c8] sm:$0xff]  ;;  %v2068_v17 = vld [vmem:[%s5246_s22 + $0x5a0] sm:$0xff] }
 0x32c   : > { %3384 = vmatpush.msra.mxu0 %v1892_v39  ;;  %v1901_v19 = vld [vmem:[%s5246_s22 + $0x68] sm:$0xff]  ;;  %3411 = vmatpush.msra.mxu2 %v2072_v15  ;;  %v2044_v34 = vld [vmem:[%s5246_s22 + $0x4e0] sm:$0xff]  ;;  %v1930_v15 = vld [vmem:[%s5246_s22 + $0x150] sm:$0xff] }
 0x32d   : > { %3311 = vmatpush.msrb.mxu3 %v1867_v20  ;;  %3397 = vmatpush.msra.mxu1 %v1984_v45  ;;  %v2005_v5 = vld [vmem:[%s5246_s22 + $0x3a8] sm:$0xff]  ;;  %v2064_v20 = vld [vmem:[%s5246_s22 + $0x580] sm:$0xff] }
 0x32e   : > { %3385 = vmatpush.msra.mxu0 %v1888_v43  ;;  %v1897_v21 = vld [vmem:[%s5246_s22 + $0x48] sm:$0xff]  ;;  %3412 = vmatpush.msra.mxu2 %v2068_v17  ;;  %v2040_v38 = vld [vmem:[%s5246_s22 + $0x4c0] sm:$0xff]  ;;  %v6381_v43 = vld [vmem:[%s838_s27] sm:$0xf] }
 0x32f   : > { %3312 = vmatpush.msrb.mxu3 %v1863_v22  ;;  %3398 = vmatpush.msra.mxu1 %v1980_v48  ;;  %v2001_v22 = vld [vmem:[%s5246_s22 + $0x388] sm:$0xff]  ;;  %v3342_v48 = vperm.slane %v6381_v43, 0  ;;  %v1926_v17 = vld [vmem:[%s5246_s22 + $0x130] sm:$0xff] }
 0x330   : > { %3450 = vmatpush.msrb.mxu0 %v1949_v44  ;;  %v1893_v25 = vld [vmem:[%s5246_s22 + $0x28] sm:$0xff]  ;;  %3413 = vmatpush.msra.mxu2 %v2064_v20  ;;  %v1922_v20 = vld [vmem:[%s5246_s22 + $0x110] sm:$0xff] }
 0x331   : > { %3313 = vmatpush.msrb.mxu3 %v1859_v26  ;;  %3399 = vmatpush.msra.mxu1 %v1976_v33  ;;  %v1997_v26 = vld [vmem:[%s5246_s22 + $0x368] sm:$0xff] }
 0x332   : > { %3451 = vmatpush.msrb.mxu0 %v1945_v47  ;;  %v1889_v27 = vld [vmem:[%s5246_s22 + $0x8] sm:$0xff]  ;;  %3414 = vmatpush.msra.mxu2 %v2060_v24 }
 0x333   : > { %3314 = vmatpush.msrb.mxu3 %v1855_v28  ;;  %3400 = vmatpush.msra.mxu1 %v1972_v56  ;;  %v1993_v28 = vld [vmem:[%s5246_s22 + $0x348] sm:$0xff]  ;;  %v2020_v56 = vld [vmem:[%s5246_s22 + $0x420] sm:$0xff] }
 0x334   : > { %3452 = vmatpush.msrb.mxu0 %v1941_v53  ;;  %3415 = vmatpush.msra.mxu2 %v2056_v35  ;;  %v1989_v42 = vld [vmem:[%s5246_s22 + $0x328] sm:$0xff]  ;;  %v2028_v53 = vld [vmem:[%s5246_s22 + $0x460] sm:$0xff] }
 0x335   : > { %3315 = vmatpush.msrb.mxu3 %v1851_v31  ;;  %3401 = vmatpush.msra.mxu1 %v1968_v6  ;;  %v1981_v37 = vld [vmem:[%s5246_s22 + $0x2e8] sm:$0xff] }
 0x336   : > { %3453 = vmatpush.msrb.mxu0 %v1937_v54  ;;  %3416 = vmatpush.msra.mxu2 %v2052_v29  ;;  %v1977_v39 = vld [vmem:[%s5246_s22 + $0x2c8] sm:$0xff]  ;;  %v2024_v54 = vld [vmem:[%s5246_s22 + $0x440] sm:$0xff]  ;;  %v1914_v29 = vld [vmem:[%s5246_s22 + $0xd0] sm:$0xff] }
 0x337   : > { %3316 = vmatpush.msrb.mxu3 %v1847_v32  ;;  %3402 = vmatpush.msra.mxu1 %v1964_v8  ;;  %v1985_v32 = vld [vmem:[%s5246_s22 + $0x308] sm:$0xff]  ;;  %v1942_v8 = vld [vmem:[%s5246_s22 + $0x1b0] sm:$0xff] }
 0x338   : > { %3454 = vmatpush.msrb.mxu0 %v1933_v59  ;;  %3417 = vmatpush.msra.mxu2 %v2048_v2  ;;  %v1973_v44 = vld [vmem:[%s5246_s22 + $0x2a8] sm:$0xff]  ;;  %v1910_v2 = vld [vmem:[%s5246_s22 + $0xb0] sm:$0xff] }
 0x339   : > { %3317 = vmatpush.msrb.mxu3 %v1843_v23  ;;  %3403 = vmatpush.msra.mxu1 %v1960_v9  ;;  %v3023_v30 = vpop.f32.mrf.mxu0  ;;  %v1969_v50 = vld [vmem:[%s5246_s22 + $0x288] sm:$0xff] }
 0x33a   : > { %3455 = vmatpush.msrb.mxu0 %v1929_v61  ;;  %3418 = vmatpush.msra.mxu2 %v2044_v34  ;;  %v1965_v33 = vld [vmem:[%s5246_s22 + $0x268] sm:$0xff]  ;;  %v2100_v34 = vld [vmem:[%s5246_s22 + $0x6a0] sm:$0xff] }
 0x33b   : > { %3318 = vmatpush.msrb.mxu3 %v1839_v60  ;;  %3404 = vmatpush.msra.mxu1 %v1956_v11  ;;  %v3063_v23 = vpop.f32.mrf.mxu2  ;;  %v6375_v60 = vld [vmem:[%s848_s10] sm:$0xf]  ;;  %v1961_v55 = vld [vmem:[%s5246_s22 + $0x248] sm:$0xff]  ;;  %v1938_v11 = vld [vmem:[%s5246_s22 + $0x190] sm:$0xff]  ;;  %s6716_s10 = sld [smem:[#allocation56_spill]] (!%p4177_p1) }
 0x33c   : > { %3419 = vmatpush.msra.mxu2 %v2040_v38  ;;  %v3328_v45 = vperm.slane %v6375_v60, 0  ;;  %v1957_v59 = vld [vmem:[%s5246_s22 + $0x228] sm:$0xff]  ;;  %v3329_v38 = vperm.slane %v6375_v60, 1 }
 0x33d   : > { %3319 = vmatpush.msrb.mxu3 %v1835_v41  ;;  %3405 = vmatpush.msra.mxu1 %v1952_v12  ;;  %v2036_v41 = vld [vmem:[%s5246_s22 + $0x4a0] sm:$0xff]  ;;  %v2077_v6 = vld [vmem:[%s5246_s22 + $0x5e8] sm:$0xff] }
 0x33e   : > { %3420 = vmatpush.msra.mxu2 %v2036_v41  ;;  %v2073_v9 = vld [vmem:[%s5246_s22 + $0x5c8] sm:$0xff]  ;;  %v2128_v12 = vld [vmem:[%s5246_s22 + $0x780] sm:$0xff] }
 0x33f   : > { %3320 = vmatpush.msrb.mxu3 %v1831_v46  ;;  %3470 = vmatpush.msrb.mxu1 %v2013_v63  ;;  %v2065_v14 = vld [vmem:[%s5246_s22 + $0x588] sm:$0xff]  ;;  %v2124_v63 = vld [vmem:[%s5246_s22 + $0x760] sm:$0xff] }
 0x340   : > { %v3043_v31 = vpop.f32.mrf.mxu1  ;;  %v2053_v24 = vld [vmem:[%s5246_s22 + $0x528] sm:$0xff] }
 0x341   : > { %3321 = vmatpush.msrb.mxu3 %v1827_v49  ;;  %3471 = vmatpush.msrb.mxu1 %v2009_v16  ;;  %v3044_v18 = vadd.f32 %v3043_v31, %v3023_v30  ;;  %v2032_v49 = vld [vmem:[%s5246_s22 + $0x480] sm:$0xff]  ;;  %v2049_v35 = vld [vmem:[%s5246_s22 + $0x508] sm:$0xff] }
 0x342   : > { %3322 = vmatmul.f32.vlgmr.msrb.gmra.mxu3 %v6148_v36  ;;  %v1925_v36 = vld [vmem:[%s5246_s22 + $0x128] sm:$0xff]  ;;  %3421 = vmatpush.msra.mxu2 %v2032_v49  ;;  %v2120_v16 = vld [vmem:[%s5246_s22 + $0x740] sm:$0xff] }
 0x343   : > { %3456 = vmatpush.msrb.mxu0 %v1925_v36  ;;  %3472 = vmatpush.msrb.mxu1 %v2005_v5  ;;  %v3064_v40 = vadd.f32 %v3063_v23, %v3044_v18  ;;  %v1946_v36 = vld [vmem:[%s5246_s22 + $0x1d0] sm:$0xff]  ;;  %v2116_v5 = vld [vmem:[%s5246_s22 + $0x720] sm:$0xff]  ;;  %v2045_v31 = vld [vmem:[%s5246_s22 + $0x4e8] sm:$0xff] }
 0x344   : > { %3422 = vmatpush.msra.mxu2 %v2028_v53  ;;  %v1906_v23 = vld [vmem:[%s5246_s22 + $0x90] sm:$0xff]  ;;  %v2092_v49 = vld [vmem:[%s5246_s22 + $0x660] sm:$0xff] }
 0x345   : > { %v2991_v1 = vpop.f32.mrf.mxu3  ;;  %3457 = vmatpush.msrb.mxu0 %v1921_v7  ;;  %3473 = vmatpush.msrb.mxu1 %v2001_v22  ;;  %v2136_v7 = vld [vmem:[%s5246_s22 + $0x7c0] sm:$0xff] }
 0x346   : > { %v2992_v3 = vadd.f32 %v2991_v1, %v2972_v51  ;;  %3423 = vmatpush.msra.mxu2 %v2024_v54  ;;  %v2016_v1 = vld [vmem:[%s5246_s22 + $0x400] sm:$0xff]  ;;  %v1890_v54 = vld [vmem:[%s5246_s22 + $0x10] sm:$0xff] }
 0x347   : > { %3458 = vmatpush.msrb.mxu0 %v1917_v10  ;;  %3474 = vmatpush.msrb.mxu1 %v1997_v26  ;;  %v2132_v10 = vld [vmem:[%s5246_s22 + $0x7a0] sm:$0xff]  ;;  %v1918_v26 = vld [vmem:[%s5246_s22 + $0xf0] sm:$0xff] }
 0x348   : > { %v2997_v4 = vadd.f32 %v2992_v3, %v2673_v62  ;;  %v1950_v62 = vld [vmem:[%s5246_s22 + $0x1f0] sm:$0xff]  ;;  %3424 = vmatpush.msra.mxu2 %v2020_v56  ;;  %v1953_v3 = vld [vmem:[%s5246_s22 + $0x208] sm:$0xff] }
 0x349   : > { %3459 = vmatpush.msrb.mxu0 %v1913_v58  ;;  %3475 = vmatpush.msrb.mxu1 %v1993_v28  ;;  %v2069_v58 = vld [vmem:[%s5246_s22 + $0x5a8] sm:$0xff]  ;;  %v2108_v28 = vld [vmem:[%s5246_s22 + $0x6e0] sm:$0xff] }
 0x34a   : > { %3001 = vst [vmem:[#allocation2 + $0x8] sm:$0xff] %v2997_v4  ;;  %v2140_v4 = vld [vmem:[%s5246_s22 + $0x7e0] sm:$0xff]  ;;  %3425 = vmatpush.msra.mxu2 %v2016_v1  ;;  %v2021_v56 = vld [vmem:[%s5246_s22 + $0x428] sm:$0xff] }
 0x34b   : > { %3460 = vmatpush.msrb.mxu0 %v1909_v13  ;;  %3476 = vmatpush.msrb.mxu1 %v1989_v42  ;;  %v1934_v13 = vld [vmem:[%s5246_s22 + $0x170] sm:$0xff]  ;;  %v2104_v42 = vld [vmem:[%s5246_s22 + $0x6c0] sm:$0xff] }
 0x34c   : > { %3430 = vmatpush.msra.mxu3 %v2140_v4  ;;  %3490 = vmatpush.msrb.mxu2 %v2077_v6  ;;  %v2010_v4 = vld [vmem:[%s5246_s22 + $0x3d0] sm:$0xff]  ;;  %v1947_v6 = vld [vmem:[%s5246_s22 + $0x1d8] sm:$0xff] }
 0x34d   : > { %3461 = vmatpush.msrb.mxu0 %v1905_v0  ;;  %3477 = vmatpush.msrb.mxu1 %v1985_v32  ;;  %v2061_v0 = vld [vmem:[%s5246_s22 + $0x568] sm:$0xff] }
 0x34e   : > { %3431 = vmatpush.msra.mxu3 %v2136_v7  ;;  %3491 = vmatpush.msrb.mxu2 %v2073_v9  ;;  %v3123_v22 = vpop.f32.mrf.mxu1  ;;  %v2041_v32 = vld [vmem:[%s5246_s22 + $0x4c8] sm:$0xff]  ;;  %v1943_v9 = vld [vmem:[%s5246_s22 + $0x1b8] sm:$0xff] }
 0x34f   : > { %3462 = vmatpush.msrb.mxu0 %v1901_v19  ;;  %3478 = vmatpush.msrb.mxu1 %v1981_v37  ;;  %v2057_v19 = vld [vmem:[%s5246_s22 + $0x548] sm:$0xff] }
 0x350   : > { %3432 = vmatpush.msra.mxu3 %v2132_v10  ;;  %3492 = vmatpush.msrb.mxu2 %v2069_v58  ;;  %v2037_v37 = vld [vmem:[%s5246_s22 + $0x4a8] sm:$0xff]  ;;  %v1939_v58 = vld [vmem:[%s5246_s22 + $0x198] sm:$0xff] }
 0x351   : > { %3463 = vmatpush.msrb.mxu0 %v1897_v21  ;;  %3479 = vmatpush.msrb.mxu1 %v1977_v39  ;;  %v3103_v21 = vpop.f32.mrf.mxu0  ;;  %v2141_v7 = vld [vmem:[%s5246_s22 + $0x7e8] sm:$0xff] }
 0x352   : > { %3433 = vmatpush.msra.mxu3 %v2128_v12  ;;  %3493 = vmatpush.msrb.mxu2 %v2065_v14  ;;  %v2137_v10 = vld [vmem:[%s5246_s22 + $0x7c8] sm:$0xff]  ;;  %v1935_v14 = vld [vmem:[%s5246_s22 + $0x178] sm:$0xff] }
 0x353   : > { %3464 = vmatpush.msrb.mxu0 %v1893_v25  ;;  %3480 = vmatpush.msrb.mxu1 %v1973_v44  ;;  %v2112_v25 = vld [vmem:[%s5246_s22 + $0x700] sm:$0xff]  ;;  %v3343_v44 = vperm.slane %v6381_v43, 1  ;;  %v2133_v12 = vld [vmem:[%s5246_s22 + $0x7a8] sm:$0xff] }
 0x354   : > { %3434 = vmatpush.msra.mxu3 %v2124_v63  ;;  %3494 = vmatpush.msrb.mxu2 %v2061_v0  ;;  %v2129_v63 = vld [vmem:[%s5246_s22 + $0x788] sm:$0xff]  ;;  %v1931_v0 = vld [vmem:[%s5246_s22 + $0x158] sm:$0xff] }
 0x355   : > { %3465 = vmatpush.msrb.mxu0 %v1889_v27  ;;  %3481 = vmatpush.msrb.mxu1 %v1969_v50  ;;  %v3124_v27 = vadd.f32 %v3123_v22, %v3103_v21  ;;  %v2029_v50 = vld [vmem:[%s5246_s22 + $0x468] sm:$0xff]  ;;  %v1923_v21 = vld [vmem:[%s5246_s22 + $0x118] sm:$0xff] }
 0x356   : > { %3435 = vmatpush.msra.mxu3 %v2120_v16  ;;  %3495 = vmatpush.msrb.mxu2 %v2057_v19  ;;  %v2125_v16 = vld [vmem:[%s5246_s22 + $0x768] sm:$0xff]  ;;  %v1927_v19 = vld [vmem:[%s5246_s22 + $0x138] sm:$0xff] }
 0x357   : > { %3482 = vmatpush.msrb.mxu1 %v1965_v33  ;;  %v2088_v33 = vld [vmem:[%s5246_s22 + $0x640] sm:$0xff] }
 0x358   : > { %3436 = vmatpush.msra.mxu3 %v2116_v5  ;;  %3496 = vmatpush.msrb.mxu2 %v2053_v24  ;;  %v2121_v5 = vld [vmem:[%s5246_s22 + $0x748] sm:$0xff] }
 0x359   : > { %3483 = vmatpush.msrb.mxu1 %v1961_v55  ;;  %v2084_v55 = vld [vmem:[%s5246_s22 + $0x620] sm:$0xff] }
 0x35a   : > { %3437 = vmatpush.msra.mxu3 %v2112_v25  ;;  %3497 = vmatpush.msrb.mxu2 %v2049_v35  ;;  %v2117_v25 = vld [vmem:[%s5246_s22 + $0x728] sm:$0xff]  ;;  %v1919_v35 = vld [vmem:[%s5246_s22 + $0xf8] sm:$0xff] }
 0x35b   : > { %3484 = vmatpush.msrb.mxu1 %v1957_v59 }
 0x35c   : > { %v3143_v30 = vpop.f32.mrf.mxu2  ;;  %3438 = vmatpush.msra.mxu3 %v2108_v28  ;;  %3498 = vmatpush.msrb.mxu2 %v2045_v31  ;;  %v2113_v28 = vld [vmem:[%s5246_s22 + $0x708] sm:$0xff] }
 0x35d   : > { %3485 = vmatpush.msrb.mxu1 %v1953_v3  ;;  %v3144_v18 = vadd.f32 %v3143_v30, %v3124_v27  ;;  %v2080_v3 = vld [vmem:[%s5246_s22 + $0x600] sm:$0xff]  ;;  %v1915_v30 = vld [vmem:[%s5246_s22 + $0xd8] sm:$0xff] }
 0x35e   : > { %3439 = vmatpush.msra.mxu3 %v2104_v42  ;;  %3499 = vmatpush.msrb.mxu2 %v2041_v32  ;;  %v2109_v42 = vld [vmem:[%s5246_s22 + $0x6e8] sm:$0xff]  ;;  %v1911_v32 = vld [vmem:[%s5246_s22 + $0xb8] sm:$0xff] }
 0x360   : > { %3440 = vmatpush.msra.mxu3 %v2100_v34  ;;  %3500 = vmatpush.msrb.mxu2 %v2037_v37  ;;  %v2105_v34 = vld [vmem:[%s5246_s22 + $0x6c8] sm:$0xff]  ;;  %v1907_v37 = vld [vmem:[%s5246_s22 + $0x98] sm:$0xff] }
 0x365   : > { %v3083_v46 = vpop.f32.mrf.mxu3 }
 0x366   : > { %v3084_v47 = vadd.f32 %v3083_v46, %v3064_v40  ;;  %v1902_v40 = vld [vmem:[%s5246_s22 + $0x70] sm:$0xff]  ;;  %v2033_v46 = vld [vmem:[%s5246_s22 + $0x488] sm:$0xff] }
 0x367   : > { %3501 = vmatpush.msrb.mxu2 %v2033_v46  ;;  %v3344_v46 = vperm.slane %v6381_v43, 2 }
 0x368   : > { %v3336_v52 = vmul.f32 %v3328_v45, %v3084_v47  ;;  %v2096_v45 = vld [vmem:[%s5246_s22 + $0x680] sm:$0xff]  ;;  %v1898_v47 = vld [vmem:[%s5246_s22 + $0x50] sm:$0xff] }
 0x369   : > { %3441 = vmatpush.msra.mxu3 %v2096_v45  ;;  %3502 = vmatpush.msrb.mxu2 %v2029_v50 }
 0x36a   : > { %v3350_v57 = vadd.f32 %v3342_v48, %v3336_v52  ;;  %v1894_v52 = vld [vmem:[%s5246_s22 + $0x30] sm:$0xff] }
 0x36b   : > { %3442 = vmatpush.msra.mxu3 %v2092_v49  ;;  %v1899_v49 = vld [vmem:[%s5246_s22 + $0x58] sm:$0xff] }
 0x36c   : > { %vm3354_vm4 = vcmp.gt.f32.partialorder %v3350_v57, 0.0  ;;  %v3358_v51 = vmul.f32 0.01, %v3350_v57 }
 0x36d   : > { %3443 = vmatpush.msra.mxu3 %v2088_v33  ;;  %v1895_v33 = vld [vmem:[%s5246_s22 + $0x38] sm:$0xff] }
 0x36e   : > { %v6396_v61 = vsel %vm3354_vm4, %v3350_v57, %v3358_v51  ;;  %v2025_v57 = vld [vmem:[%s5246_s22 + $0x448] sm:$0xff]  ;;  %v2014_v51 = vld [vmem:[%s5246_s22 + $0x3f0] sm:$0xff] }
 0x36f   : > { %3386 = vmatmul.f32.vlgmr.msra.gmra.mxu0 %v6396_v61  ;;  %3503 = vmatpush.msrb.mxu2 %v2025_v57 }
 0x370   : > { %3530 = vmatpush.msra.mxu0 %v1950_v62  ;;  %v1951_v62 = vld [vmem:[%s5246_s22 + $0x1f8] sm:$0xff]  ;;  %3444 = vmatpush.msra.mxu3 %v2084_v55  ;;  %v1954_v55 = vld [vmem:[%s5246_s22 + $0x210] sm:$0xff] }
 0x371   : > { %3504 = vmatpush.msrb.mxu2 %v2021_v56  ;;  %v1891_v56 = vld [vmem:[%s5246_s22 + $0x18] sm:$0xff] }
 0x372   : > { %3531 = vmatpush.msra.mxu0 %v1946_v36  ;;  %v2017_v36 = vld [vmem:[%s5246_s22 + $0x408] sm:$0xff]  ;;  %3445 = vmatpush.msra.mxu3 %v2080_v3  ;;  %v2015_v3 = vld [vmem:[%s5246_s22 + $0x3f8] sm:$0xff] }
 0x373   : > { %3505 = vmatpush.msrb.mxu2 %v2017_v36  ;;  %v3203_v24 = vpop.f32.mrf.mxu1  ;;  %v2085_v36 = vld [vmem:[%s5246_s22 + $0x628] sm:$0xff] }
 0x374   : > { %3532 = vmatpush.msra.mxu0 %v1942_v8  ;;  %v2006_v8 = vld [vmem:[%s5246_s22 + $0x3b0] sm:$0xff]  ;;  %3510 = vmatpush.msrb.mxu3 %v2141_v7  ;;  %v2081_v7 = vld [vmem:[%s5246_s22 + $0x608] sm:$0xff] }
 0x376   : > { %3533 = vmatpush.msra.mxu0 %v1938_v11  ;;  %v2002_v11 = vld [vmem:[%s5246_s22 + $0x390] sm:$0xff]  ;;  %3511 = vmatpush.msrb.mxu3 %v2137_v10 }
 0x377   : > { %3466 = vmatmul.f32.vlgmr.msrb.gmra.mxu0 %v6396_v61  ;;  %v2066_v10 = vld [vmem:[%s5246_s22 + $0x590] sm:$0xff] }
 0x378   : > { %3534 = vmatpush.msra.mxu0 %v1934_v13  ;;  %v1998_v13 = vld [vmem:[%s5246_s22 + $0x370] sm:$0xff]  ;;  %3512 = vmatpush.msrb.mxu3 %v2133_v12 }
 0x379   : > { %v2058_v12 = vld [vmem:[%s5246_s22 + $0x550] sm:$0xff] }
 0x37a   : > { %3535 = vmatpush.msra.mxu0 %v1930_v15  ;;  %v1994_v15 = vld [vmem:[%s5246_s22 + $0x350] sm:$0xff]  ;;  %3513 = vmatpush.msrb.mxu3 %v2129_v63  ;;  %v1991_v63 = vld [vmem:[%s5246_s22 + $0x338] sm:$0xff] }
 0x37b   : > { %v3183_v22 = vpop.f32.mrf.mxu0 }
 0x37c   : > { %3536 = vmatpush.msra.mxu0 %v1926_v17  ;;  %v1990_v17 = vld [vmem:[%s5246_s22 + $0x330] sm:$0xff]  ;;  %3514 = vmatpush.msrb.mxu3 %v2125_v16  ;;  %v3204_v27 = vadd.f32 %v3203_v24, %v3183_v22  ;;  %v1979_v24 = vld [vmem:[%s5246_s22 + $0x2d8] sm:$0xff] }
 0x37d   : > { %v3223_v31 = vpop.f32.mrf.mxu2 }
 0x37e   : > { %3537 = vmatpush.msra.mxu0 %v1922_v20  ;;  %v1986_v20 = vld [vmem:[%s5246_s22 + $0x310] sm:$0xff]  ;;  %3515 = vmatpush.msrb.mxu3 %v2121_v5  ;;  %v1983_v5 = vld [vmem:[%s5246_s22 + $0x2f8] sm:$0xff] }
 0x380   : > { %3538 = vmatpush.msra.mxu0 %v1918_v26  ;;  %v1982_v26 = vld [vmem:[%s5246_s22 + $0x2f0] sm:$0xff]  ;;  %3516 = vmatpush.msrb.mxu3 %v2117_v25 }
 0x381   : > { %v2038_v25 = vld [vmem:[%s5246_s22 + $0x4b0] sm:$0xff] }
 0x382   : > { %3539 = vmatpush.msra.mxu0 %v1914_v29  ;;  %v1978_v29 = vld [vmem:[%s5246_s22 + $0x2d0] sm:$0xff]  ;;  %3517 = vmatpush.msrb.mxu3 %v2113_v28  ;;  %v3331_v28 = vperm.slane %v6375_v60, 3 }
 0x384   : > { %3540 = vmatpush.msra.mxu0 %v1910_v2  ;;  %v1974_v2 = vld [vmem:[%s5246_s22 + $0x2b0] sm:$0xff]  ;;  %3518 = vmatpush.msrb.mxu3 %v2109_v42 }
 0x385   : > { %v3163_v39 = vpop.f32.mrf.mxu3 }
 0x386   : > { %v3164_v41 = vadd.f32 %v3163_v39, %v3144_v18  ;;  %3541 = vmatpush.msra.mxu0 %v1906_v23  ;;  %v3224_v18 = vadd.f32 %v3223_v31, %v3204_v27  ;;  %v1970_v23 = vld [vmem:[%s5246_s22 + $0x290] sm:$0xff]  ;;  %v2101_v39 = vld [vmem:[%s5246_s22 + $0x6a8] sm:$0xff]  ;;  %3519 = vmatpush.msrb.mxu3 %v2105_v34 }
 0x387   : > { %v2034_v27 = vld [vmem:[%s5246_s22 + $0x490] sm:$0xff] }
 0x388   : > { %v3337_v48 = vmul.f32 %v3329_v38, %v3164_v41  ;;  %3542 = vmatpush.msra.mxu0 %v1902_v40  ;;  %v3330_v38 = vperm.slane %v6375_v60, 2  ;;  %v1966_v41 = vld [vmem:[%s5246_s22 + $0x270] sm:$0xff]  ;;  %3520 = vmatpush.msrb.mxu3 %v2101_v39 }
 0x389   : > { %v2030_v31 = vld [vmem:[%s5246_s22 + $0x470] sm:$0xff] }
 0x38a   : > { %v3351_v53 = vadd.f32 %v3343_v44, %v3337_v48  ;;  %3543 = vmatpush.msra.mxu0 %v1898_v47  ;;  %v1903_v44 = vld [vmem:[%s5246_s22 + $0x78] sm:$0xff]  ;;  %v2097_v47 = vld [vmem:[%s5246_s22 + $0x688] sm:$0xff]  ;;  %v1962_v48 = vld [vmem:[%s5246_s22 + $0x250] sm:$0xff] }
 0x38b   : > { %3521 = vmatpush.msrb.mxu3 %v2097_v47  ;;  %v2022_v60 = vld [vmem:[%s5246_s22 + $0x430] sm:$0xff]  ;;  %v2075_v47 = vld [vmem:[%s5246_s22 + $0x5d8] sm:$0xff] }
 0x38c   : > { %3544 = vmatpush.msra.mxu0 %v1894_v52  ;;  %vm3355_vm5 = vcmp.gt.f32.partialorder %v3351_v53, 0.0  ;;  %v3359_v59 = vmul.f32 0.01, %v3351_v53  ;;  %v2093_v52 = vld [vmem:[%s5246_s22 + $0x668] sm:$0xff]  ;;  %v2018_v39 = vld [vmem:[%s5246_s22 + $0x410] sm:$0xff] }
 0x38d   : > { %3522 = vmatpush.msrb.mxu3 %v2093_v52  ;;  %v2067_v52 = vld [vmem:[%s5246_s22 + $0x598] sm:$0xff] }
 0x38e   : > { %3545 = vmatpush.msra.mxu0 %v1890_v54  ;;  %v6450_v1 = vsel %vm3355_vm5, %v3351_v53, %v3359_v59  ;;  %v1958_v53 = vld [vmem:[%s5246_s22 + $0x230] sm:$0xff]  ;;  %v2089_v54 = vld [vmem:[%s5246_s22 + $0x648] sm:$0xff] }
 0x38f   : > { %3406 = vmatmul.f32.vlgmr.msra.gmra.mxu1 %v6450_v1  ;;  %3546 = vmatmul.f32.vlgmr.msra.gmra.mxu0 %v6396_v61 }
 0x390   : > { %3550 = vmatpush.msra.mxu1 %v2014_v51  ;;  %3610 = vmatpush.msrb.mxu0 %v1951_v62  ;;  %v2078_v51 = vld [vmem:[%s5246_s22 + $0x5f0] sm:$0xff] }
 0x391   : > { %3523 = vmatpush.msrb.mxu3 %v2089_v54  ;;  %v2118_v54 = vld [vmem:[%s5246_s22 + $0x730] sm:$0xff] }
 0x392   : > { %3551 = vmatpush.msra.mxu1 %v2010_v4  ;;  %3611 = vmatpush.msrb.mxu0 %v1947_v6  ;;  %v2074_v4 = vld [vmem:[%s5246_s22 + $0x5d0] sm:$0xff]  ;;  %v2011_v6 = vld [vmem:[%s5246_s22 + $0x3d8] sm:$0xff] }
 0x393   : > { %3524 = vmatpush.msrb.mxu3 %v2085_v36  ;;  %v2106_v36 = vld [vmem:[%s5246_s22 + $0x6d0] sm:$0xff] }
 0x394   : > { %3552 = vmatpush.msra.mxu1 %v2006_v8  ;;  %3612 = vmatpush.msrb.mxu0 %v1943_v9  ;;  %v2070_v8 = vld [vmem:[%s5246_s22 + $0x5b0] sm:$0xff]  ;;  %v2007_v9 = vld [vmem:[%s5246_s22 + $0x3b8] sm:$0xff] }
 0x395   : > { %3525 = vmatpush.msrb.mxu3 %v2081_v7  ;;  %v2039_v7 = vld [vmem:[%s5246_s22 + $0x4b8] sm:$0xff] }
 0x396   : > { %3553 = vmatpush.msra.mxu1 %v2002_v11  ;;  %3613 = vmatpush.msrb.mxu0 %v1939_v58  ;;  %v2003_v11 = vld [vmem:[%s5246_s22 + $0x398] sm:$0xff] }
 0x397   : > { %3486 = vmatmul.f32.vlgmr.msrb.gmra.mxu1 %v6450_v1  ;;  %v1999_v58 = vld [vmem:[%s5246_s22 + $0x378] sm:$0xff] }
 0x398   : > { %3554 = vmatpush.msra.mxu1 %v1998_v13  ;;  %3614 = vmatpush.msrb.mxu0 %v1935_v14  ;;  %v1995_v13 = vld [vmem:[%s5246_s22 + $0x358] sm:$0xff]  ;;  %v2054_v14 = vld [vmem:[%s5246_s22 + $0x530] sm:$0xff] }
 0x399   : > { %v3283_v16 = vpop.f32.mrf.mxu1 }
 0x39a   : > { %3555 = vmatpush.msra.mxu1 %v1994_v15  ;;  %3615 = vmatpush.msrb.mxu0 %v1931_v0  ;;  %v2050_v15 = vld [vmem:[%s5246_s22 + $0x510] sm:$0xff]  ;;  %v3263_v0 = vpop.f32.mrf.mxu0 }
 0x39c   : > { %3556 = vmatpush.msra.mxu1 %v1990_v17  ;;  %3616 = vmatpush.msrb.mxu0 %v1927_v19  ;;  %v1987_v17 = vld [vmem:[%s5246_s22 + $0x318] sm:$0xff]  ;;  %v2046_v19 = vld [vmem:[%s5246_s22 + $0x4f0] sm:$0xff] }
 0x39e   : > { %3557 = vmatpush.msra.mxu1 %v1986_v20  ;;  %3617 = vmatpush.msrb.mxu0 %v1923_v21  ;;  %v3284_v20 = vadd.f32 %v3283_v16, %v3263_v0  ;;  %v2042_v21 = vld [vmem:[%s5246_s22 + $0x4d0] sm:$0xff]  ;;  %v3303_v22 = vpop.f32.mrf.mxu2  ;;  %v2139_v0 = vld [vmem:[%s5246_s22 + $0x7d8] sm:$0xff] }
 0x39f   : > { %v2135_v16 = vld [vmem:[%s5246_s22 + $0x7b8] sm:$0xff] }
 0x3a0   : > { %3558 = vmatpush.msra.mxu1 %v1982_v26  ;;  %3618 = vmatpush.msrb.mxu0 %v1919_v35  ;;  %v3304_v26 = vadd.f32 %v3303_v22, %v3284_v20  ;;  %v1975_v35 = vld [vmem:[%s5246_s22 + $0x2b8] sm:$0xff] }
 0x3a1   : > { %v2119_v20 = vld [vmem:[%s5246_s22 + $0x738] sm:$0xff] }
 0x3a2   : > { %3559 = vmatpush.msra.mxu1 %v1978_v29  ;;  %3619 = vmatpush.msrb.mxu0 %v1915_v30  ;;  %v1971_v29 = vld [vmem:[%s5246_s22 + $0x298] sm:$0xff] }
 0x3a3   : > { %v2107_v22 = vld [vmem:[%s5246_s22 + $0x6d8] sm:$0xff] }
 0x3a4   : > { %3560 = vmatpush.msra.mxu1 %v1974_v2  ;;  %3620 = vmatpush.msrb.mxu0 %v1911_v32  ;;  %v3345_v2 = vperm.slane %v6381_v43, 3  ;;  %v1967_v32 = vld [vmem:[%s5246_s22 + $0x278] sm:$0xff] }
 0x3a5   : > { %v3243_v40 = vpop.f32.mrf.mxu3  ;;  %v1955_v43 = vld [vmem:[%s5246_s22 + $0x218] sm:$0xff] }
 0x3a6   : > { %v3244_v45 = vadd.f32 %v3243_v40, %v3224_v18  ;;  %3561 = vmatpush.msra.mxu1 %v1970_v23  ;;  %3621 = vmatpush.msrb.mxu0 %v1907_v37  ;;  %v2026_v18 = vld [vmem:[%s5246_s22 + $0x450] sm:$0xff]  ;;  %v1963_v23 = vld [vmem:[%s5246_s22 + $0x258] sm:$0xff] }
 0x3a8   : > { %v3338_v50 = vmul.f32 %v3330_v38, %v3244_v45  ;;  %3562 = vmatpush.msra.mxu1 %v1966_v41  ;;  %3622 = vmatpush.msrb.mxu0 %v1903_v44  ;;  %v1959_v38 = vld [vmem:[%s5246_s22 + $0x238] sm:$0xff]  ;;  %v2142_v41 = vld [vmem:[%s5246_s22 + $0x7f0] sm:$0xff] }
 0x3a9   : > { %v2079_v45 = vld [vmem:[%s5246_s22 + $0x5f8] sm:$0xff] }
 0x3aa   : > { %v3352_v57 = vadd.f32 %v3344_v46, %v3338_v50  ;;  %3563 = vmatpush.msra.mxu1 %v1962_v48  ;;  %3623 = vmatpush.msrb.mxu0 %v1899_v49  ;;  %v2138_v46 = vld [vmem:[%s5246_s22 + $0x7d0] sm:$0xff]  ;;  %v2071_v49 = vld [vmem:[%s5246_s22 + $0x5b8] sm:$0xff] }
 0x3ab   : > { %v2134_v48 = vld [vmem:[%s5246_s22 + $0x7b0] sm:$0xff] }
 0x3ac   : > { %3564 = vmatpush.msra.mxu1 %v1958_v53  ;;  %3624 = vmatpush.msrb.mxu0 %v1895_v33  ;;  %vm3356_vm6 = vcmp.gt.f32.partialorder %v3352_v57, 0.0  ;;  %v3360_v59 = vmul.f32 0.01, %v3352_v57  ;;  %v2130_v50 = vld [vmem:[%s5246_s22 + $0x790] sm:$0xff]  ;;  %v2063_v33 = vld [vmem:[%s5246_s22 + $0x578] sm:$0xff] }
 0x3ad   : > { %v2126_v53 = vld [vmem:[%s5246_s22 + $0x770] sm:$0xff] }
 0x3ae   : > { %3565 = vmatpush.msra.mxu1 %v1954_v55  ;;  %3625 = vmatpush.msrb.mxu0 %v1891_v56  ;;  %v6504_v62 = vsel %vm3356_vm6, %v3352_v57, %v3360_v59  ;;  %v2059_v57 = vld [vmem:[%s5246_s22 + $0x558] sm:$0xff]  ;;  %v2114_v56 = vld [vmem:[%s5246_s22 + $0x710] sm:$0xff] }
 0x3af   : > { %3426 = vmatmul.f32.vlgmr.msra.gmra.mxu2 %v6504_v62  ;;  %3566 = vmatmul.f32.vlgmr.msra.gmra.mxu1 %v6450_v1  ;;  %v2055_v55 = vld [vmem:[%s5246_s22 + $0x538] sm:$0xff] }
 0x3b0   : > { %3570 = vmatpush.msra.mxu2 %v2078_v51  ;;  %3626 = vmatmul.f32.vlgmr.msrb.gmra.mxu0 %v6396_v61  ;;  %v2062_v61 = vld [vmem:[%s5246_s22 + $0x570] sm:$0xff]  ;;  %v2051_v59 = vld [vmem:[%s5246_s22 + $0x518] sm:$0xff] }
 0x3b1   : > { %3630 = vmatpush.msrb.mxu1 %v2015_v3  ;;  %v2110_v51 = vld [vmem:[%s5246_s22 + $0x6f0] sm:$0xff]  ;;  %v2047_v3 = vld [vmem:[%s5246_s22 + $0x4f8] sm:$0xff] }
 0x3b2   : > { %3571 = vmatpush.msra.mxu2 %v2074_v4  ;;  %v2043_v4 = vld [vmem:[%s5246_s22 + $0x4d8] sm:$0xff] }
 0x3b3   : > { %3631 = vmatpush.msrb.mxu1 %v2011_v6  ;;  %v2102_v6 = vld [vmem:[%s5246_s22 + $0x6b0] sm:$0xff] }
 0x3b4   : > { %3572 = vmatpush.msra.mxu2 %v2070_v8  ;;  %v2098_v8 = vld [vmem:[%s5246_s22 + $0x690] sm:$0xff] }
 0x3b5   : > { %3632 = vmatpush.msrb.mxu1 %v2007_v9  ;;  %v2035_v9 = vld [vmem:[%s5246_s22 + $0x498] sm:$0xff] }
 0x3b6   : > { %3573 = vmatpush.msra.mxu2 %v2066_v10  ;;  %v2094_v10 = vld [vmem:[%s5246_s22 + $0x670] sm:$0xff] }
 0x3b7   : > { %3633 = vmatpush.msrb.mxu1 %v2003_v11  ;;  %3506 = vmatmul.f32.vlgmr.msrb.gmra.mxu2 %v6504_v62  ;;  %v2031_v11 = vld [vmem:[%s5246_s22 + $0x478] sm:$0xff] }
 0x3b8   : > { %3574 = vmatpush.msra.mxu2 %v2062_v61  ;;  %v2090_v61 = vld [vmem:[%s5246_s22 + $0x650] sm:$0xff] }
 0x3b9   : > { %3634 = vmatpush.msrb.mxu1 %v1999_v58  ;;  %v2027_v58 = vld [vmem:[%s5246_s22 + $0x458] sm:$0xff] }
 0x3ba   : > { %3575 = vmatpush.msra.mxu2 %v2058_v12  ;;  %v2086_v12 = vld [vmem:[%s5246_s22 + $0x630] sm:$0xff] }
 0x3bb   : > { %3635 = vmatpush.msrb.mxu1 %v1995_v13  ;;  %v2023_v13 = vld [vmem:[%s5246_s22 + $0x438] sm:$0xff] }
 0x3bc   : > { %3576 = vmatpush.msra.mxu2 %v2054_v14  ;;  %v2082_v14 = vld [vmem:[%s5246_s22 + $0x610] sm:$0xff] }
 0x3bd   : > { %3636 = vmatpush.msrb.mxu1 %v1991_v63  ;;  %v2019_v63 = vld [vmem:[%s5246_s22 + $0x418] sm:$0xff] }
 0x3be   : > { %3577 = vmatpush.msra.mxu2 %v2050_v15  ;;  %v2143_v15 = vld [vmem:[%s5246_s22 + $0x7f8] sm:$0xff] }
 0x3bf   : > { %3637 = vmatpush.msrb.mxu1 %v1987_v17  ;;  %v2131_v17 = vld [vmem:[%s5246_s22 + $0x798] sm:$0xff] }
 0x3c0   : > { %3578 = vmatpush.msra.mxu2 %v2046_v19  ;;  %v2127_v19 = vld [vmem:[%s5246_s22 + $0x778] sm:$0xff] }
 0x3c1   : > { %3638 = vmatpush.msrb.mxu1 %v1983_v5  ;;  %v2123_v5 = vld [vmem:[%s5246_s22 + $0x758] sm:$0xff] }
 0x3c2   : > { %3579 = vmatpush.msra.mxu2 %v2042_v21  ;;  %v2115_v21 = vld [vmem:[%s5246_s22 + $0x718] sm:$0xff] }
 0x3c3   : > { %3639 = vmatpush.msrb.mxu1 %v1979_v24  ;;  %v2103_v24 = vld [vmem:[%s5246_s22 + $0x6b8] sm:$0xff] }
 0x3c4   : > { %3580 = vmatpush.msra.mxu2 %v2038_v25  ;;  %v2099_v25 = vld [vmem:[%s5246_s22 + $0x698] sm:$0xff] }
 0x3c5   : > { %3640 = vmatpush.msrb.mxu1 %v1975_v35  ;;  %v3323_v30 = vpop.f32.mrf.mxu3  ;;  %v2091_v35 = vld [vmem:[%s5246_s22 + $0x658] sm:$0xff] }
 0x3c6   : > { %v3324_v42 = vadd.f32 %v3323_v30, %v3304_v26  ;;  %3581 = vmatpush.msra.mxu2 %v2034_v27  ;;  %v2095_v26 = vld [vmem:[%s5246_s22 + $0x678] sm:$0xff] }
 0x3c7   : > { %3641 = vmatpush.msrb.mxu1 %v1971_v29  ;;  %v2087_v27 = vld [vmem:[%s5246_s22 + $0x638] sm:$0xff] }
 0x3c8   : > { %v3339_v34 = vmul.f32 %v3331_v28, %v3324_v42  ;;  %3582 = vmatpush.msra.mxu2 %v2030_v31  ;;  %v2083_v28 = vld [vmem:[%s5246_s22 + $0x618] sm:$0xff] }
 0x3c9   : > { %3642 = vmatpush.msrb.mxu1 %v1967_v32  ;;  %v3366_v32 = vld [vmem:[#allocation3] sm:$0xff] }
 0x3ca   : > { %v3353_v37 = vadd.f32 %v3345_v2, %v3339_v34  ;;  %3583 = vmatpush.msra.mxu2 %v2026_v18 }
 0x3cb   : > { %3643 = vmatpush.msrb.mxu1 %v1963_v23 }
 0x3cc   : > { %3584 = vmatpush.msra.mxu2 %v2022_v60  ;;  %vm3357_vm7 = vcmp.gt.f32.partialorder %v3353_v37, 0.0  ;;  %v3361_v40 = vmul.f32 0.01, %v3353_v37 }
 0x3cd   : > { %3644 = vmatpush.msrb.mxu1 %v1959_v38 }
 0x3ce   : > { %3585 = vmatpush.msra.mxu2 %v2018_v39  ;;  %v6546_v44 = vsel %vm3357_vm7, %v3353_v37, %v3361_v40  ;;  %v3367_v40 = vld [vmem:[#allocation3 + $0x18] sm:$0xff] }
 0x3cf   : > { %3645 = vmatpush.msrb.mxu1 %v1955_v43  ;;  %3446 = vmatmul.f32.vlgmr.msra.gmra.mxu3 %v6546_v44 }
 0x3d0   : > { %3586 = vmatmul.f32.vlgmr.msra.gmra.mxu2 %v6504_v62  ;;  %3590 = vmatpush.msra.mxu3 %v2142_v41 }
 0x3d1   : > { %3646 = vmatmul.f32.vlgmr.msrb.gmra.mxu1 %v6450_v1  ;;  %3650 = vmatpush.msrb.mxu2 %v2079_v45  ;;  %v2122_v1 = vld [vmem:[%s5246_s22 + $0x750] sm:$0xff] }
 0x3d2   : > { %3591 = vmatpush.msra.mxu3 %v2138_v46 }
 0x3d3   : > { %3651 = vmatpush.msrb.mxu2 %v2075_v47 }
 0x3d4   : > { %3592 = vmatpush.msra.mxu3 %v2134_v48 }
 0x3d5   : > { %3652 = vmatpush.msrb.mxu2 %v2071_v49 }
 0x3d6   : > { %3593 = vmatpush.msra.mxu3 %v2130_v50 }
 0x3d7   : > { %3653 = vmatpush.msrb.mxu2 %v2067_v52  ;;  %3526 = vmatmul.f32.vlgmr.msrb.gmra.mxu3 %v6546_v44  ;;  %v3368_v52 = vld [vmem:[#allocation3 + $0x8] sm:$0xff] }
 0x3d8   : > { %3594 = vmatpush.msra.mxu3 %v2126_v53 }
 0x3d9   : > { %3654 = vmatpush.msrb.mxu2 %v2063_v33 }
 0x3da   : > { %3595 = vmatpush.msra.mxu3 %v2122_v1 }
 0x3db   : > { %3655 = vmatpush.msrb.mxu2 %v2059_v57 }
 0x3dc   : > { %3596 = vmatpush.msra.mxu3 %v2118_v54 }
 0x3dd   : > { %3656 = vmatpush.msrb.mxu2 %v2055_v55 }
 0x3de   : > { %3597 = vmatpush.msra.mxu3 %v2114_v56 }
 0x3df   : > { %3657 = vmatpush.msrb.mxu2 %v2051_v59 }
 0x3e0   : > { %3598 = vmatpush.msra.mxu3 %v2110_v51  ;;  %v3369_v51 = vld [vmem:[#allocation3 + $0x10] sm:$0xff] }
 0x3e1   : > { %3658 = vmatpush.msrb.mxu2 %v2047_v3 }
 0x3e2   : > { %3599 = vmatpush.msra.mxu3 %v2106_v36 }
 0x3e3   : > { %3659 = vmatpush.msrb.mxu2 %v2043_v4 }
 0x3e4   : > { %3600 = vmatpush.msra.mxu3 %v2102_v6 }
 0x3e5   : > { %3660 = vmatpush.msrb.mxu2 %v2039_v7 }
 0x3e6   : > { %3601 = vmatpush.msra.mxu3 %v2098_v8 }
 0x3e7   : > { %3661 = vmatpush.msrb.mxu2 %v2035_v9 }
 0x3e8   : > { %3602 = vmatpush.msra.mxu3 %v2094_v10 }
 0x3e9   : > { %3662 = vmatpush.msrb.mxu2 %v2031_v11 }
 0x3ea   : > { %3603 = vmatpush.msra.mxu3 %v2090_v61 }
 0x3eb   : > { %3663 = vmatpush.msrb.mxu2 %v2027_v58 }
 0x3ec   : > { %3604 = vmatpush.msra.mxu3 %v2086_v12  ;;  %v3387_v30 = vpop.f32.mrf.mxu0 }
 0x3ed   : > { %3664 = vmatpush.msrb.mxu2 %v2023_v13 }
 0x3ee   : > { %3605 = vmatpush.msra.mxu3 %v2082_v14 }
 0x3ef   : > { %3665 = vmatpush.msrb.mxu2 %v2019_v63  ;;  %3606 = vmatmul.f32.vlgmr.msra.gmra.mxu3 %v6546_v44 }
 0x3f0   : > { %3666 = vmatmul.f32.vlgmr.msrb.gmra.mxu2 %v6504_v62  ;;  %3670 = vmatpush.msrb.mxu3 %v2143_v15  ;;  %v2111_v62 = vld [vmem:[%s5246_s22 + $0x6f8] sm:$0xff] }
 0x3f2   : > { %3671 = vmatpush.msrb.mxu3 %v2139_v0 }
 0x3f4   : > { %3672 = vmatpush.msrb.mxu3 %v2135_v16  ;;  %v3467_v37 = vpop.f32.mrf.mxu0 }
 0x3f6   : > { %3673 = vmatpush.msrb.mxu3 %v2131_v17 }
 0x3f8   : > { %3674 = vmatpush.msrb.mxu3 %v2127_v19 }
 0x3fa   : > { %3675 = vmatpush.msrb.mxu3 %v2123_v5 }
 0x3fc   : > { %3676 = vmatpush.msrb.mxu3 %v2119_v20 }
 0x3fe   : > { %3677 = vmatpush.msrb.mxu3 %v2115_v21 }
 0x400   : > { %3678 = vmatpush.msrb.mxu3 %v2111_v62 }
 0x402   : > { %3679 = vmatpush.msrb.mxu3 %v2107_v22 }
 0x404   : > { %3680 = vmatpush.msrb.mxu3 %v2103_v24 }
 0x406   : > { %3681 = vmatpush.msrb.mxu3 %v2099_v25 }
 0x408   : > { %3682 = vmatpush.msrb.mxu3 %v2095_v26 }
 0x40a   : > { %3683 = vmatpush.msrb.mxu3 %v2091_v35 }
 0x40c   : > { %3684 = vmatpush.msrb.mxu3 %v2087_v27  ;;  %v3407_v29 = vpop.f32.mrf.mxu1  ;;  %v3547_v47 = vpop.f32.mrf.mxu0 }
 0x40d   : > { %v3408_v42 = vadd.f32 %v3407_v29, %v3387_v30 }
 0x40e   : > { %3685 = vmatpush.msrb.mxu3 %v2083_v28 }
 0x40f   : > { %3686 = vmatmul.f32.vlgmr.msrb.gmra.mxu3 %v6546_v44 }
 0x414   : > { %v3487_v23 = vpop.f32.mrf.mxu1 }
 0x415   : > { %v3488_v39 = vadd.f32 %v3487_v23, %v3467_v37 }
 0x42c   : > { %v3567_v44 = vpop.f32.mrf.mxu1 }
 0x42d   : > { %v3568_v49 = vadd.f32 %v3567_v44, %v3547_v47  ;;  %v3627_v54 = vpop.f32.mrf.mxu0 }
 0x432   : > { %v3427_v31 = vpop.f32.mrf.mxu2 }
 0x433   : > { %v3428_v2 = vadd.f32 %v3427_v31, %v3408_v42 }
 0x43a   : > { %v3507_v38 = vpop.f32.mrf.mxu2 }
 0x43b   : > { %v3508_v43 = vadd.f32 %v3507_v38, %v3488_v39 }
 0x44e   : > { %v3647_v57 = vpop.f32.mrf.mxu1 }
 0x44f   : > { %v3648_v56 = vadd.f32 %v3647_v57, %v3627_v54 }
 0x452   : > { %v3447_v18 = vpop.f32.mrf.mxu3 }
 0x453   : > { %v3448_v34 = vadd.f32 %v3447_v18, %v3428_v2  ;;  %v3587_v48 = vpop.f32.mrf.mxu2 }
 0x454   : > { %v3588_v50 = vadd.f32 %v3587_v48, %v3568_v49 }
 0x455   : > { %v3690_v60 = vadd.f32 %v3448_v34, %v3366_v32 }
 0x457   : > { %3694 = vst [vmem:[#allocation3] sm:$0xff] %v3690_v60 }
 0x45a   : > { %v3527_v41 = vpop.f32.mrf.mxu3 }
 0x45b   : > { %v3528_v45 = vadd.f32 %v3527_v41, %v3508_v43 }
 0x45d   : > { %v3691_v46 = vadd.f32 %v3528_v45, %v3367_v40 }
 0x45f   : > { %3695 = vst [vmem:[#allocation3 + $0x18] sm:$0xff] %v3691_v46 }
 0x472   : > { %v3607_v53 = vpop.f32.mrf.mxu3 }
 0x473   : > { %v3608_v33 = vadd.f32 %v3607_v53, %v3588_v50  ;;  %v3667_v55 = vpop.f32.mrf.mxu2 }
 0x474   : > { %v3668_v59 = vadd.f32 %v3667_v55, %v3648_v56 }
 0x475   : > { %v3692_v1 = vadd.f32 %v3608_v33, %v3368_v52 }
 0x477   : > { %3696 = vst [vmem:[#allocation3 + $0x8] sm:$0xff] %v3692_v1 }
 0x492   : > { %v3687_v3 = vpop.f32.mrf.mxu3 }
 0x493   : > { %v3688_v36 = vadd.f32 %v3687_v3, %v3668_v59  ;;  %3701 = sbr.rel (%p4177_p1) target bundleno = 1353 (0x549), region = 156 }
 0x495   : > { %v3693_v4 = vadd.f32 %v3688_v36, %v3369_v51 }
 0x497   : > { %3697 = vst [vmem:[#allocation3 + $0x10] sm:$0xff] %v3693_v4 }
 0x498   : > { %v3702_v6 = vld [vmem:[#allocation2 + $0x10] sm:$0xff]  ;;  %v3703_v7 = vld [vmem:[#allocation2] sm:$0xff]  ;;  %v3704_v8 = vld [vmem:[#allocation2 + $0x18] sm:$0xff]  ;;  %vm3789_vm2 = vcmask 7168  }
 0x499   : > { %v3705_v9 = vld [vmem:[#allocation2 + $0x8] sm:$0xff]  ;;  %v3706_v10 = vld [vmem:[#allocation19] sm:$0xf]  ;;  %v3792_v35 = vld [vmem:[#allocation3 + $0x18] sm:$0xff] }
 0x49a   : > { %v3720_v11 = vld [vmem:[#allocation20] sm:$0xf]  ;;  %v3708_v61 = vperm.slane %v3706_v10, 0  ;;  %v3709_v58 = vperm.slane %v3706_v10, 1  ;;  %v3710_v12 = vperm.slane %v3706_v10, 2  ;;  %v3711_v13 = vperm.slane %v3706_v10, 3 }
 0x49b   : > { %v3746_v14 = vld [vmem:[#allocation22] sm:$0xf]  ;;  %v3722_v63 = vperm.slane %v3720_v11, 0  ;;  %v3723_v15 = vperm.slane %v3720_v11, 1  ;;  %v3724_v0 = vperm.slane %v3720_v11, 2  ;;  %v3725_v16 = vperm.slane %v3720_v11, 3 }
 0x49c   : > { %v3716_v17 = vmul.f32 %v3708_v61, %v3702_v6  ;;  %v3717_v19 = vmul.f32 %v3709_v58, %v3703_v7  ;;  %v3718_v5 = vmul.f32 %v3710_v12, %v3704_v8  ;;  %v3719_v20 = vmul.f32 %v3711_v13, %v3705_v9  ;;  %v3795_v21 = vld [vmem:[#allocation23] sm:$0xf]  ;;  %v3791_v26 = vld [vmem:[#allocation3] sm:$0xff]  ;;  %v3809_v23 = vld [vmem:[#allocation25] sm:$0xf] }
 0x49d   : > { %v3748_v62 = vperm.slane %v3746_v14, 0  ;;  %v3749_v22 = vperm.slane %v3746_v14, 1  ;;  %v3750_v24 = vperm.slane %v3746_v14, 2  ;;  %v3751_v25 = vperm.slane %v3746_v14, 3  ;;  %v3793_v31 = vld [vmem:[#allocation3 + $0x8] sm:$0xff] }
 0x49e   : > { %v3730_v27 = vadd.f32 %v3722_v63, %v3716_v17  ;;  %v3731_v28 = vadd.f32 %v3723_v15, %v3717_v19  ;;  %v3732_v29 = vadd.f32 %v3724_v0, %v3718_v5  ;;  %v3733_v30 = vadd.f32 %v3725_v16, %v3719_v20  ;;  %v3794_v42 = vld [vmem:[#allocation3 + $0x10] sm:$0xff] }
 0x49f   : > { %v3797_v2 = vperm.slane %v3795_v21, 0  ;;  %v3798_v32 = vperm.slane %v3795_v21, 1  ;;  %v3799_v18 = vperm.slane %v3795_v21, 2  ;;  %v3800_v34 = vperm.slane %v3795_v21, 3  ;;  %v3835_v49 = vld [vmem:[#allocation26] sm:$0xf] }
 0x4a0   : > { %vm3734_vm8 = vcmp.gt.f32.partialorder %v3730_v27, 0.0  ;;  %vm3735_vm9 = vcmp.gt.f32.partialorder %v3731_v28, 0.0  ;;  %vm3736_vm10 = vcmp.gt.f32.partialorder %v3732_v29, 0.0  ;;  %vm3737_vm11 = vcmp.gt.f32.partialorder %v3733_v30, 0.0 }
 0x4a1   : > { %v3738_v60 = vmul.f32 0.01, %v3730_v27  ;;  %v3739_v37 = vmul.f32 0.01, %v3731_v28  ;;  %v3740_v38 = vmul.f32 0.01, %v3732_v29  ;;  %v3805_v39 = vmul.f32 %v3797_v2, %v3791_v26 }
 0x4a2   : > { %v3741_v43 = vmul.f32 0.01, %v3733_v30  ;;  %v3806_v40 = vmul.f32 %v3798_v32, %v3792_v35  ;;  %v3807_v41 = vmul.f32 %v3799_v18, %v3793_v31  ;;  %v3808_v45 = vmul.f32 %v3800_v34, %v3794_v42  ;;  %v4332_v35 = vld [vmem:[#allocation5] ss:$0 sm:$0xff] }
 0x4a3   : > { %v3742_v46 = vsel %vm3734_vm8, %v3730_v27, %v3738_v60  ;;  %v3743_v44 = vsel %vm3735_vm9, %v3731_v28, %v3739_v37  ;;  %v3744_v47 = vsel %vm3736_vm10, %v3732_v29, %v3740_v38  ;;  %v3811_v48 = vperm.slane %v3809_v23, 0 }
 0x4a4   : > { %v3745_v50 = vsel %vm3737_vm11, %v3733_v30, %v3741_v43  ;;  %v3756_v52 = vmul.f32 %v3748_v62, %v3742_v46  ;;  %v3757_v53 = vmul.f32 %v3749_v22, %v3743_v44  ;;  %v3758_v33 = vmul.f32 %v3750_v24, %v3744_v47  ;;  %v4331_v62 = vld [vmem:[#allocation4] ss:$0 sm:$0xff] }
 0x4a5   : > { %v3759_v1 = vmul.f32 %v3751_v25, %v3745_v50  ;;  %v3812_v57 = vperm.slane %v3809_v23, 1  ;;  %v3813_v54 = vperm.slane %v3809_v23, 2  ;;  %v3814_v55 = vperm.slane %v3809_v23, 3 }
 0x4a6   : > { %v3760_v56 = vadd.f32 %v3757_v53, %v3756_v52  ;;  %v3819_v59 = vadd.f32 %v3811_v48, %v3805_v39  ;;  %v3837_v51 = vperm.slane %v3835_v49, 0  ;;  %v3838_v3 = vperm.slane %v3835_v49, 1 }
 0x4a7   : > { %v3820_v36 = vadd.f32 %v3812_v57, %v3806_v40  ;;  %v3821_v4 = vadd.f32 %v3813_v54, %v3807_v41  ;;  %v3822_v6 = vadd.f32 %v3814_v55, %v3808_v45  ;;  %v3839_v7 = vperm.slane %v3835_v49, 2 }
 0x4a8   : > { %v3761_v8 = vadd.f32 %v3760_v56, %v3758_v33  ;;  %vm3823_vm12 = vcmp.gt.f32.partialorder %v3819_v59, 0.0  ;;  %v3827_v9 = vmul.f32 0.01, %v3819_v59  ;;  %v3840_v10 = vperm.slane %v3835_v49, 3 }
 0x4a9   : > { %vm3824_vm13 = vcmp.gt.f32.partialorder %v3820_v36, 0.0  ;;  %vm3825_vm14 = vcmp.gt.f32.partialorder %v3821_v4, 0.0  ;;  %vm3826_vm15 = vcmp.gt.f32.partialorder %v3822_v6, 0.0  ;;  %v3828_v11 = vmul.f32 0.01, %v3820_v36 }
 0x4aa   : > { %v3762_v61 = vadd.f32 %v3761_v8, %v3759_v1  ;;  %v3829_v58 = vmul.f32 0.01, %v3821_v4  ;;  %v3830_v12 = vmul.f32 0.01, %v3822_v6  ;;  %v3831_v13 = vsel %vm3823_vm12, %v3819_v59, %v3827_v9 }
 0x4ab   : > { %v3832_v14 = vsel %vm3824_vm13, %v3820_v36, %v3828_v11  ;;  %v3845_v63 = vmul.f32 %v3837_v51, %v3831_v13 }
 0x4ac   : > { %3763 = vadd.xlane.f32.xlu0 %v3762_v61  ;;  %v3833_v15 = vsel %vm3825_vm14, %v3821_v4, %v3829_v58  ;;  %v3834_v0 = vsel %vm3826_vm15, %v3822_v6, %v3830_v12  ;;  %v3846_v16 = vmul.f32 %v3838_v3, %v3832_v14 }
 0x4ad   : > { %v3847_v17 = vmul.f32 %v3839_v7, %v3833_v15  ;;  %v3848_v19 = vmul.f32 %v3840_v10, %v3834_v0 }
 0x4ae   : > { %v3849_v5 = vadd.f32 %v3846_v16, %v3845_v63 }
 0x4b0   : > { %v3850_v20 = vadd.f32 %v3849_v5, %v3847_v17 }
 0x4b2   : > { %v3851_v21 = vadd.f32 %v3850_v20, %v3848_v19 }
 0x4b4   : > { %3852 = vadd.xlane.f32.xlu0 %v3851_v21 }
 0x51f   : > { %v3764_v22 = vpop.xlane.xlu0 %3763 }
 0x520   : > { %v3769_v24 = vadd.f32 %v4331_v62, %v3764_v22 }
 0x522   : > { %v3770_v25 = vsub.f32 0.0, %v3769_v24 }
 0x524   : > { %v3771_v26 = vmul.f32 1.442695, %v3770_v25 }
 0x526   : > { %4333 = vpow2.f32 %v3771_v26 }
 0x527   : > { %v3853_v27 = vpop.xlane.xlu0 %3852 }
 0x528   : > { %v3858_v28 = vadd.f32 %v4332_v35, %v3853_v27 }
 0x52a   : > { %v3859_v29 = vsub.f32 0.0, %v3858_v28 }
 0x52c   : > { %v4334_v30 = vpop.eup %4333  ;;  %v3860_v31 = vmul.f32 1.442695, %v3859_v29 }
 0x52d   : > { %v3773_v42 = vadd.f32 1.0, %v4334_v30 }
 0x52e   : > { %4335 = vpow2.f32 %v3860_v31 }
 0x52f   : > { %4337 = vrcp.f32 %v3773_v42  ;;  %v3785_v60 = vand.u32 2147483648, %v3773_v42  ;;  %v3783_v38 = vand.u32 2147483647, %v3773_v42  ;;  %vm3779_vm1 = vweird.f32 %v3773_v42 }
 0x531   : > { %v3786_v40 = vor.u32 1.1754944e-38, %v3785_v60  ;;  %vm3784_vm4 = vcmp.eq.f32.partialorder %v3783_v38, 8.507059e+37 }
 0x534   : > { %v4336_v2 = vpop.eup %4335 }
 0x535   : > { %v4338_v32 = vpop.eup %4337  ;;  %v3862_v18 = vadd.f32 1.0, %v4336_v2 }
 0x536   : > { %v3775_v34 = vmul.f32 %v4338_v32, %v3773_v42  ;;  %vm3780_vm0 = vweird.f32 %v4338_v32 }
 0x537   : > { %4339 = vrcp.f32 %v3862_v18  ;;  %vm3781_vm3 = vmor %vm3779_vm1, %vm3780_vm0  ;;  %v3874_v47 = vand.u32 2147483648, %v3862_v18  ;;  %v3872_v49 = vand.u32 2147483647, %v3862_v18  ;;  %vm3868_vm6 = vweird.f32 %v3862_v18 }
 0x538   : > { %v3776_v23 = vsub.f32 1.0, %v3775_v34 }
 0x539   : > { %v3875_v52 = vor.u32 1.1754944e-38, %v3874_v47  ;;  %vm3873_vm8 = vcmp.eq.f32.partialorder %v3872_v49, 8.507059e+37 }
 0x53a   : > { %v3777_v37 = vmul.f32 %v4338_v32, %v3776_v23 }
 0x53c   : > { %v3778_v39 = vadd.f32 %v4338_v32, %v3777_v37 }
 0x53d   : > { %v4340_v43 = vpop.eup %4339 }
 0x53e   : > { %v3782_v41 = vsel %vm3781_vm3, %v4338_v32, %v3778_v39  ;;  %v3864_v45 = vmul.f32 %v4340_v43, %v3862_v18  ;;  %vm3869_vm5 = vweird.f32 %v4340_v43 }
 0x53f   : > { %v3787_v46 = vsel %vm3784_vm4, %v3786_v40, %v3782_v41  ;;  %vm3870_vm7 = vmor %vm3868_vm6, %vm3869_vm5 }
 0x540   : > { %3790 = vst.msk [vmem:[%s6716_s10] sm:$0xff] %vm3789_vm2, %v3787_v46  ;;  %v3865_v44 = vsub.f32 1.0, %v3864_v45 }
 0x542   : > { %v3866_v48 = vmul.f32 %v4340_v43, %v3865_v44 }
 0x544   : > { %v3867_v50 = vadd.f32 %v4340_v43, %v3866_v48 }
 0x546   : > { %v3871_v53 = vsel %vm3870_vm7, %v4340_v43, %v3867_v50 }
 0x547   : > { %v3876_v33 = vsel %vm3873_vm8, %v3875_v52, %v3871_v53 }
 0x548   : > { %3878 = vst.msk [vmem:[%s6717_s28] sm:$0xff] %vm3789_vm2, %v3876_v33 }
 0x549 PF: > { %s6718_s22 = sld [smem:[#allocation41_spill]] }
 0x54a   : > { %s6719_s13 = sld [smem:[#allocation37_spill]] }
 0x54b   : > { %s6720_s1 = sld [smem:[#allocation38_spill]] }
 0x54c   : > { %s6721_s17 = sld [smem:[#allocation42_spill]] }
 0x54f   : > { %p49_p3 = scmp.ge.s32.totalorder %s6718_s22, 4  }
 0x551   :  { %51 = sbr.rel (!%p49_p3) target bundleno = 28 (0x1c), region = 253 }
 0x556   :  { %3896 = vsyncpa [#allocation7], 1 }
 0x557   :  { %3898 = vsyncpa [#allocation7 + $0x1], 1 }
 0x558   :  { %3899 = vsyncpa [#allocation9], 1 }
 0x559   :  { %3901 = vsyncpa [#allocation9 + $0x1], 1 }
 0x55a   :  { %3902 = vsyncpa [#allocation12], 1 }
 0x55b   :  { %3904 = vsyncpa [#allocation12 + $0x1], 1 }
 0x55c   :  { %3905 = vsyncpa [#allocation15], 1 }
 0x55d   :  { %3907 = vsyncpa [#allocation15 + $0x1], 1 }
 0x55e   :  { %3908 = vsyncpa [#allocation18], 1 }
 0x55f   :  { %3910 = vsyncpa [#allocation18 + $0x1], 1 }
 0x560   :  { %3911 = vsyncpa [#allocation21], 1 }
 0x561   :  { %3912 = vsyncpa [#allocation24], 1 }
 0x562   :  { %3913 = vsyncpa [#allocation27], 1 }

</bundles_post_ra>
